<compile_context>
chip_gen: v6e
topology: v6e:2x2x1
jax: 0.10.0
libtpu: 0.0.40
codegen_flags: <defaults>
</compile_context>

<pallas_src>
import functools

import jax
import jax.numpy as jnp
import numpy as np
from jax.experimental import pallas as pl
from jax.experimental.pallas import tpu as pltpu

MIN_V = 0.5
MAX_V = 1.0

# (name, in_channels, out_channels, kernel_size, padding)
# TODO(synk): the PyTorch module declares conv6 = Conv2d(16, 2, 1) but its forward
# feeds it the 2-channel v5 (which would raise in PyTorch); we use in_channels=2 so
# the forward pass is actually runnable, and the JAX reference matches this choice.
LAYERS = (
    ("conv",  2, 16, 5, 1),
    ("conv2", 16, 2, 3, 2),
    ("conv3", 2,  8, 5, 1),
    ("conv4", 8, 16, 3, 2),
    ("conv5", 16, 2, 3, 1),
    ("conv6", 2,  2, 1, 1),
)


def _round_up(x, m):
    return (x + m - 1) // m * m


def _layer_geometry(H0, W0):
    """Static per-layer geometry (all Python ints)."""
    geoms = []
    H, W = H0, W0
    for (_, cin, cout, k, pad) in LAYERS:
        Hp, Wp = H + 2 * pad, W + 2 * pad
        Ho, Wo = Hp - k + 1, Wp - k + 1
        Lacc = Hp * Wp                                             # flat slab "interior" length
        Lslab = _round_up(Lacc + max(k - 1, pad) * (Wp + 1), 128)  # over-allocated slab length
        geoms.append(dict(cin=cin, cout=cout, k=k, pad=pad, Hp=Hp, Wp=Wp,
                          Ho=Ho, Wo=Wo, Lacc=Lacc, Lslab=Lslab))
        H, W = Ho, Wo
    # The uniform-shift repack and the shared mask width rely on every layer seeing
    # the same padded spatial extent; this holds for this conv stack for any H0, W0.
    assert len({g["Hp"] for g in geoms}) == 1 and len({g["Wp"] for g in geoms}) == 1
    assert len({g["Lacc"] for g in geoms}) == 1
    # Last layer is 1x1 with pad=1: every flat slab position is a valid output.
    assert geoms[-1]["Ho"] * geoms[-1]["Wo"] == geoms[-1]["Lacc"]
    return geoms


def _fused_kernel(geoms, *refs):
    nl = len(geoms)
    x_ref = refs[0]                       # (Cin0, Lslab0) zero-padded flat input slab
    mask_ref = refs[1]                    # (nl-1, Lacc) int32 validity masks
    wb = refs[2:2 + 2 * nl]               # per layer: (Cout, k*k*Cin), (Cout, 1)
    o_ref = refs[2 + 2 * nl]              # (Cout_last, Lacc)
    scratch = refs[3 + 2 * nl:]
    n_stg = sum(1 for g in geoms if g["k"] > 1)
    stg_refs = list(scratch[:n_stg])      # im2col staging slabs (layers with k > 1)
    slab_refs = list(scratch[n_stg:])     # next-layer input slabs (one per transition)

    cur = x_ref
    si = 0
    for li, g in enumerate(geoms):
        k, Wp, Lacc = g["k"], g["Wp"], g["Lacc"]
        cin, cout = g["cin"], g["cout"]
        w_ref, b_ref = wb[2 * li], wb[2 * li + 1]

        # ---- im2col: stack the k*k lane-shifted slab copies on sublanes
        if k > 1:
            stg = stg_refs[si]
            si += 1
            for kh in range(k):
                for kw in range(k):
                    t = kh * Wp + kw                      # conv tap == flat lane shift
                    row = (kh * k + kw) * cin
                    stg[row:row + cin, :] = cur[:, t:t + Lacc]
            rhs = stg[...]
        else:                                             # 1x1 conv: slab is the im2col matrix
            rhs = cur[:, 0:Lacc]

        # ---- one MXU matmul per layer (+ bias)
        acc = jnp.dot(w_ref[...], rhs, preferred_element_type=jnp.float32) + b_ref[...]

        if li + 1 < nl:
            # ---- repack into next layer's zero-padded slab with ONE shifted,
            #      border-masked wide store (Wp is uniform, so the shift is uniform).
            pad2 = geoms[li + 1]["pad"]
            shift = pad2 * (Wp + 1)
            valid = mask_ref[li:li + 1, :] != 0           # (1, Lacc): valid conv outputs
            nxt = slab_refs[li]
            nxt[:, 0:shift] = jnp.zeros((cout, shift), jnp.float32)      # top/left zero border
            nxt[:, shift:shift + Lacc] = jnp.where(valid, acc, 0.0)
            cur = nxt
        else:
            # ---- fused clamp_min(0.5)/clamp_max(1.0), single lane-dense store
            o_ref[...] = jnp.minimum(jnp.maximum(acc, MIN_V), MAX_V).astype(o_ref.dtype)


@jax.jit
def model_forward(x_nchw, params):
    N, C0, H0, W0 = x_nchw.shape
    assert C0 == LAYERS[0][1]
    geoms = _layer_geometry(H0, W0)
    g0, gl = geoms[0], geoms[-1]
    Lacc = g0["Lacc"]
    n_layers = len(geoms)

    # ---- one-time layout prep (XLA glue outside the kernel) ----
    pad0 = g0["pad"]
    x_pad = jnp.pad(x_nchw.astype(jnp.float32),
                    ((0, 0), (0, 0), (pad0, pad0), (pad0, pad0)))
    x_slab = x_pad.reshape(N, C0, Lacc)
    x_slab = jnp.pad(x_slab, ((0, 0), (0, 0), (0, g0["Lslab"] - Lacc)))   # (N, C0, Lslab0)

    # static per-transition validity masks (which flat accumulator lanes are real outputs)
    mask_np = np.zeros((n_layers - 1, Lacc), np.int32)
    for li, g in enumerate(geoms[:-1]):
        for oh in range(g["Ho"]):
            mask_np[li, oh * g["Wp"]: oh * g["Wp"] + g["Wo"]] = 1
    masks = jnp.asarray(mask_np)

    inputs = [x_slab, masks]
    in_specs = [pl.BlockSpec((None, C0, g0["Lslab"]), lambda n: (n, 0, 0)),
                pl.BlockSpec((n_layers - 1, Lacc), lambda n: (0, 0))]
    for (name, cin, cout, k, pad), g in zip(LAYERS, geoms):
        w, b = params[name]
        # lane-dense 2D im2col weights: (Cout, k*k*Cin), tap-major, Cin minor
        w2d = jnp.transpose(w, (0, 2, 3, 1)).reshape(cout, k * k * cin)
        inputs += [w2d.astype(jnp.float32), b.reshape(cout, 1).astype(jnp.float32)]
        in_specs += [pl.BlockSpec((cout, k * k * cin), lambda n: (0, 0)),
                     pl.BlockSpec((cout, 1), lambda n: (0, 0))]

    out_shape = jax.ShapeDtypeStruct((N, gl["cout"], Lacc), x_nchw.dtype)
    out_spec = pl.BlockSpec((None, gl["cout"], Lacc), lambda n: (n, 0, 0))

    scratch = ([pltpu.VMEM((g["k"] * g["k"] * g["cin"], Lacc), jnp.float32)
                for g in geoms if g["k"] > 1] +
               [pltpu.VMEM((g["cin"], g["Lslab"]), jnp.float32) for g in geoms[1:]])

    out = pl.pallas_call(
        functools.partial(_fused_kernel, geoms),
        out_shape=out_shape,
        grid=(N,),
        in_specs=in_specs,
        out_specs=out_spec,
        scratch_shapes=scratch,
        compiler_params=pltpu.CompilerParams(
            dimension_semantics=("parallel",)),   # v7x: both TCs split the batch
    )(*inputs)
    return out.reshape(N, gl["cout"], gl["Ho"], gl["Wo"])                 # NCHW


def init_params(key):
    def conv_init(k, cout, cin, kh, kw):
        k1, k2 = jax.random.split(k)
        fan_in = cin * kh * kw
        w = jax.random.normal(k1, (cout, cin, kh, kw), jnp.float32) / np.sqrt(fan_in)
        b = 0.01 * jax.random.normal(k2, (cout,), jnp.float32)
        return w, b

    keys = jax.random.split(key, len(LAYERS))
    return {name: conv_init(keys[i], cout, cin, k, k)
            for i, (name, cin, cout, k, pad) in enumerate(LAYERS)}


# ---------------- pure-JAX reference (for correctness check) ----------------
def conv_ref(x, w, b, padding):
    out = jax.lax.conv_general_dilated(
        x, w, window_strides=(1, 1),
        padding=((padding, padding), (padding, padding)),
        dimension_numbers=("NCHW", "OIHW", "NCHW"))
    return out + b.reshape(1, -1, 1, 1)


def model_ref(x, params):
    h = x
    for (name, cin, cout, k, pad) in LAYERS:
        w, b = params[name]
        h = conv_ref(h, w, b, pad)
    return jnp.clip(h, MIN_V, MAX_V)


if __name__ == "__main__":
    key = jax.random.PRNGKey(0)
    k_x, k_p = jax.random.split(key)

    # small shapes consistent with the module: channels=2, spatial 16x16; batch=2
    # exercises the batch grid axis.
    x1 = jax.random.normal(k_x, (2, 2, 16, 16), jnp.float32)
    params = init_params(k_p)

    out = jax.block_until_ready(model_forward(x1, params))
    ref = model_ref(x1, params)

    assert out.shape == ref.shape, (out.shape, ref.shape)
    np.testing.assert_allclose(np.asarray(out), np.asarray(ref), rtol=1e-3, atol=1e-3)

    print("KERNEL_OK")
</pallas_src>

<mosaic_0001>
module attributes {stable_mosaic.version = 11 : i64} {
  func.func @_fused_kernel(%arg0: i32, %arg1: memref<1x2x512xf32, #tpu.memory_space<vmem>>, %arg2: memref<5x324xi32, #tpu.memory_space<vmem>>, %arg3: memref<16x50xf32, #tpu.memory_space<vmem>>, %arg4: memref<16x1xf32, #tpu.memory_space<vmem>>, %arg5: memref<2x144xf32, #tpu.memory_space<vmem>>, %arg6: memref<2x1xf32, #tpu.memory_space<vmem>>, %arg7: memref<8x50xf32, #tpu.memory_space<vmem>>, %arg8: memref<8x1xf32, #tpu.memory_space<vmem>>, %arg9: memref<16x72xf32, #tpu.memory_space<vmem>>, %arg10: memref<16x1xf32, #tpu.memory_space<vmem>>, %arg11: memref<2x144xf32, #tpu.memory_space<vmem>>, %arg12: memref<2x1xf32, #tpu.memory_space<vmem>>, %arg13: memref<2x2xf32, #tpu.memory_space<vmem>>, %arg14: memref<2x1xf32, #tpu.memory_space<vmem>>, %arg15: memref<1x2x324xf32, #tpu.memory_space<vmem>>, %arg16: memref<50x324xf32, #tpu.memory_space<vmem>>, %arg17: memref<144x324xf32, #tpu.memory_space<vmem>>, %arg18: memref<50x324xf32, #tpu.memory_space<vmem>>, %arg19: memref<72x324xf32, #tpu.memory_space<vmem>>, %arg20: memref<144x324xf32, #tpu.memory_space<vmem>>, %arg21: memref<16x384xf32, #tpu.memory_space<vmem>>, %arg22: memref<2x512xf32, #tpu.memory_space<vmem>>, %arg23: memref<8x384xf32, #tpu.memory_space<vmem>>, %arg24: memref<16x384xf32, #tpu.memory_space<vmem>>, %arg25: memref<2x384xf32, #tpu.memory_space<vmem>>) attributes {dimension_semantics = [#tpu.dimension_semantics<parallel>], iteration_bounds = array<i64: 2>, scalar_prefetch = 0 : i64, scratch_operands = 10 : i64, tpu.core_type = #tpu.core_type<tc>, window_params = [{transform_indices = @transform_0, window_bounds = array<i64: 1, 2, 512>}, {pipeline_mode = #tpu.pipeline_mode<synchronous>, transform_indices = @transform_1, window_bounds = array<i64: 5, 324>}, {pipeline_mode = #tpu.pipeline_mode<synchronous>, transform_indices = @transform_2, window_bounds = array<i64: 16, 50>}, {pipeline_mode = #tpu.pipeline_mode<synchronous>, transform_indices = @transform_3, window_bounds = array<i64: 16, 1>}, {pipeline_mode = #tpu.pipeline_mode<synchronous>, transform_indices = @transform_4, window_bounds = array<i64: 2, 144>}, {pipeline_mode = #tpu.pipeline_mode<synchronous>, transform_indices = @transform_5, window_bounds = array<i64: 2, 1>}, {pipeline_mode = #tpu.pipeline_mode<synchronous>, transform_indices = @transform_6, window_bounds = array<i64: 8, 50>}, {pipeline_mode = #tpu.pipeline_mode<synchronous>, transform_indices = @transform_7, window_bounds = array<i64: 8, 1>}, {pipeline_mode = #tpu.pipeline_mode<synchronous>, transform_indices = @transform_8, window_bounds = array<i64: 16, 72>}, {pipeline_mode = #tpu.pipeline_mode<synchronous>, transform_indices = @transform_9, window_bounds = array<i64: 16, 1>}, {pipeline_mode = #tpu.pipeline_mode<synchronous>, transform_indices = @transform_10, window_bounds = array<i64: 2, 144>}, {pipeline_mode = #tpu.pipeline_mode<synchronous>, transform_indices = @transform_11, window_bounds = array<i64: 2, 1>}, {pipeline_mode = #tpu.pipeline_mode<synchronous>, transform_indices = @transform_12, window_bounds = array<i64: 2, 2>}, {pipeline_mode = #tpu.pipeline_mode<synchronous>, transform_indices = @transform_13, window_bounds = array<i64: 2, 1>}, {transform_indices = @transform_14, window_bounds = array<i64: 1, 2, 324>}]} {
    %c0 = arith.constant 0 : index
    %c0_0 = arith.constant 0 : index
    %c0_1 = arith.constant 0 : index
    %0 = vector.load %arg1[%c0, %c0_0, %c0_1] : memref<1x2x512xf32, #tpu.memory_space<vmem>>, vector<1x2x324xf32>
    %1 = vector.shape_cast %0 : vector<1x2x324xf32> to vector<2x324xf32>
    %c0_2 = arith.constant 0 : index
    %c0_3 = arith.constant 0 : index
    %2 = vector.load %arg16[%c0_2, %c0_3] : memref<50x324xf32, #tpu.memory_space<vmem>>, vector<2x324xf32>
    tpu.vector_store %arg16[%c0_2, %c0_3], %1 {strides = array<i32>} : memref<50x324xf32, #tpu.memory_space<vmem>>, vector<2x324xf32>,
    %c0_4 = arith.constant 0 : index
    %c0_5 = arith.constant 0 : index
    %c1 = arith.constant 1 : index
    %3 = vector.load %arg1[%c0_4, %c0_5, %c1] : memref<1x2x512xf32, #tpu.memory_space<vmem>>, vector<1x2x324xf32>
    %4 = vector.shape_cast %3 : vector<1x2x324xf32> to vector<2x324xf32>
    %c2 = arith.constant 2 : index
    %c0_6 = arith.constant 0 : index
    %5 = vector.load %arg16[%c2, %c0_6] : memref<50x324xf32, #tpu.memory_space<vmem>>, vector<2x324xf32>
    tpu.vector_store %arg16[%c2, %c0_6], %4 {strides = array<i32>} : memref<50x324xf32, #tpu.memory_space<vmem>>, vector<2x324xf32>,
    %c0_7 = arith.constant 0 : index
    %c0_8 = arith.constant 0 : index
    %c2_9 = arith.constant 2 : index
    %6 = vector.load %arg1[%c0_7, %c0_8, %c2_9] : memref<1x2x512xf32, #tpu.memory_space<vmem>>, vector<1x2x324xf32>
    %7 = vector.shape_cast %6 : vector<1x2x324xf32> to vector<2x324xf32>
    %c4 = arith.constant 4 : index
    %c0_10 = arith.constant 0 : index
    %8 = vector.load %arg16[%c4, %c0_10] : memref<50x324xf32, #tpu.memory_space<vmem>>, vector<2x324xf32>
    tpu.vector_store %arg16[%c4, %c0_10], %7 {strides = array<i32>} : memref<50x324xf32, #tpu.memory_space<vmem>>, vector<2x324xf32>,
    %c0_11 = arith.constant 0 : index
    %c0_12 = arith.constant 0 : index
    %c3 = arith.constant 3 : index
    %9 = vector.load %arg1[%c0_11, %c0_12, %c3] : memref<1x2x512xf32, #tpu.memory_space<vmem>>, vector<1x2x324xf32>
    %10 = vector.shape_cast %9 : vector<1x2x324xf32> to vector<2x324xf32>
    %c6 = arith.constant 6 : index
    %c0_13 = arith.constant 0 : index
    %11 = vector.load %arg16[%c6, %c0_13] : memref<50x324xf32, #tpu.memory_space<vmem>>, vector<2x324xf32>
    tpu.vector_store %arg16[%c6, %c0_13], %10 {strides = array<i32>} : memref<50x324xf32, #tpu.memory_space<vmem>>, vector<2x324xf32>,
    %c0_14 = arith.constant 0 : index
    %c0_15 = arith.constant 0 : index
    %c4_16 = arith.constant 4 : index
    %12 = vector.load %arg1[%c0_14, %c0_15, %c4_16] : memref<1x2x512xf32, #tpu.memory_space<vmem>>, vector<1x2x324xf32>
    %13 = vector.shape_cast %12 : vector<1x2x324xf32> to vector<2x324xf32>
    %c8 = arith.constant 8 : index
    %c0_17 = arith.constant 0 : index
    %14 = vector.load %arg16[%c8, %c0_17] : memref<50x324xf32, #tpu.memory_space<vmem>>, vector<2x324xf32>
    tpu.vector_store %arg16[%c8, %c0_17], %13 {strides = array<i32>} : memref<50x324xf32, #tpu.memory_space<vmem>>, vector<2x324xf32>,
    %c0_18 = arith.constant 0 : index
    %c0_19 = arith.constant 0 : index
    %c18 = arith.constant 18 : index
    %15 = vector.load %arg1[%c0_18, %c0_19, %c18] : memref<1x2x512xf32, #tpu.memory_space<vmem>>, vector<1x2x324xf32>
    %16 = vector.shape_cast %15 : vector<1x2x324xf32> to vector<2x324xf32>
    %c10 = arith.constant 10 : index
    %c0_20 = arith.constant 0 : index
    %17 = vector.load %arg16[%c10, %c0_20] : memref<50x324xf32, #tpu.memory_space<vmem>>, vector<2x324xf32>
    tpu.vector_store %arg16[%c10, %c0_20], %16 {strides = array<i32>} : memref<50x324xf32, #tpu.memory_space<vmem>>, vector<2x324xf32>,
    %c0_21 = arith.constant 0 : index
    %c0_22 = arith.constant 0 : index
    %c19 = arith.constant 19 : index
    %18 = vector.load %arg1[%c0_21, %c0_22, %c19] : memref<1x2x512xf32, #tpu.memory_space<vmem>>, vector<1x2x324xf32>
    %19 = vector.shape_cast %18 : vector<1x2x324xf32> to vector<2x324xf32>
    %c12 = arith.constant 12 : index
    %c0_23 = arith.constant 0 : index
    %20 = vector.load %arg16[%c12, %c0_23] : memref<50x324xf32, #tpu.memory_space<vmem>>, vector<2x324xf32>
    tpu.vector_store %arg16[%c12, %c0_23], %19 {strides = array<i32>} : memref<50x324xf32, #tpu.memory_space<vmem>>, vector<2x324xf32>,
    %c0_24 = arith.constant 0 : index
    %c0_25 = arith.constant 0 : index
    %c20 = arith.constant 20 : index
    %21 = vector.load %arg1[%c0_24, %c0_25, %c20] : memref<1x2x512xf32, #tpu.memory_space<vmem>>, vector<1x2x324xf32>
    %22 = vector.shape_cast %21 : vector<1x2x324xf32> to vector<2x324xf32>
    %c14 = arith.constant 14 : index
    %c0_26 = arith.constant 0 : index
    %23 = vector.load %arg16[%c14, %c0_26] : memref<50x324xf32, #tpu.memory_space<vmem>>, vector<2x324xf32>
    tpu.vector_store %arg16[%c14, %c0_26], %22 {strides = array<i32>} : memref<50x324xf32, #tpu.memory_space<vmem>>, vector<2x324xf32>,
    %c0_27 = arith.constant 0 : index
    %c0_28 = arith.constant 0 : index
    %c21 = arith.constant 21 : index
    %24 = vector.load %arg1[%c0_27, %c0_28, %c21] : memref<1x2x512xf32, #tpu.memory_space<vmem>>, vector<1x2x324xf32>
    %25 = vector.shape_cast %24 : vector<1x2x324xf32> to vector<2x324xf32>
    %c16 = arith.constant 16 : index
    %c0_29 = arith.constant 0 : index
    %26 = vector.load %arg16[%c16, %c0_29] : memref<50x324xf32, #tpu.memory_space<vmem>>, vector<2x324xf32>
    tpu.vector_store %arg16[%c16, %c0_29], %25 {strides = array<i32>} : memref<50x324xf32, #tpu.memory_space<vmem>>, vector<2x324xf32>,
    %c0_30 = arith.constant 0 : index
    %c0_31 = arith.constant 0 : index
    %c22 = arith.constant 22 : index
    %27 = vector.load %arg1[%c0_30, %c0_31, %c22] : memref<1x2x512xf32, #tpu.memory_space<vmem>>, vector<1x2x324xf32>
    %28 = vector.shape_cast %27 : vector<1x2x324xf32> to vector<2x324xf32>
    %c18_32 = arith.constant 18 : index
    %c0_33 = arith.constant 0 : index
    %29 = vector.load %arg16[%c18_32, %c0_33] : memref<50x324xf32, #tpu.memory_space<vmem>>, vector<2x324xf32>
    tpu.vector_store %arg16[%c18_32, %c0_33], %28 {strides = array<i32>} : memref<50x324xf32, #tpu.memory_space<vmem>>, vector<2x324xf32>,
    %c0_34 = arith.constant 0 : index
    %c0_35 = arith.constant 0 : index
    %c36 = arith.constant 36 : index
    %30 = vector.load %arg1[%c0_34, %c0_35, %c36] : memref<1x2x512xf32, #tpu.memory_space<vmem>>, vector<1x2x324xf32>
    %31 = vector.shape_cast %30 : vector<1x2x324xf32> to vector<2x324xf32>
    %c20_36 = arith.constant 20 : index
    %c0_37 = arith.constant 0 : index
    %32 = vector.load %arg16[%c20_36, %c0_37] : memref<50x324xf32, #tpu.memory_space<vmem>>, vector<2x324xf32>
    tpu.vector_store %arg16[%c20_36, %c0_37], %31 {strides = array<i32>} : memref<50x324xf32, #tpu.memory_space<vmem>>, vector<2x324xf32>,
    %c0_38 = arith.constant 0 : index
    %c0_39 = arith.constant 0 : index
    %c37 = arith.constant 37 : index
    %33 = vector.load %arg1[%c0_38, %c0_39, %c37] : memref<1x2x512xf32, #tpu.memory_space<vmem>>, vector<1x2x324xf32>
    %34 = vector.shape_cast %33 : vector<1x2x324xf32> to vector<2x324xf32>
    %c22_40 = arith.constant 22 : index
    %c0_41 = arith.constant 0 : index
    %35 = vector.load %arg16[%c22_40, %c0_41] : memref<50x324xf32, #tpu.memory_space<vmem>>, vector<2x324xf32>
    tpu.vector_store %arg16[%c22_40, %c0_41], %34 {strides = array<i32>} : memref<50x324xf32, #tpu.memory_space<vmem>>, vector<2x324xf32>,
    %c0_42 = arith.constant 0 : index
    %c0_43 = arith.constant 0 : index
    %c38 = arith.constant 38 : index
    %36 = vector.load %arg1[%c0_42, %c0_43, %c38] : memref<1x2x512xf32, #tpu.memory_space<vmem>>, vector<1x2x324xf32>
    %37 = vector.shape_cast %36 : vector<1x2x324xf32> to vector<2x324xf32>
    %c24 = arith.constant 24 : index
    %c0_44 = arith.constant 0 : index
    %38 = vector.load %arg16[%c24, %c0_44] : memref<50x324xf32, #tpu.memory_space<vmem>>, vector<2x324xf32>
    tpu.vector_store %arg16[%c24, %c0_44], %37 {strides = array<i32>} : memref<50x324xf32, #tpu.memory_space<vmem>>, vector<2x324xf32>,
    %c0_45 = arith.constant 0 : index
    %c0_46 = arith.constant 0 : index
    %c39 = arith.constant 39 : index
    %39 = vector.load %arg1[%c0_45, %c0_46, %c39] : memref<1x2x512xf32, #tpu.memory_space<vmem>>, vector<1x2x324xf32>
    %40 = vector.shape_cast %39 : vector<1x2x324xf32> to vector<2x324xf32>
    %c26 = arith.constant 26 : index
    %c0_47 = arith.constant 0 : index
    %41 = vector.load %arg16[%c26, %c0_47] : memref<50x324xf32, #tpu.memory_space<vmem>>, vector<2x324xf32>
    tpu.vector_store %arg16[%c26, %c0_47], %40 {strides = array<i32>} : memref<50x324xf32, #tpu.memory_space<vmem>>, vector<2x324xf32>,
    %c0_48 = arith.constant 0 : index
    %c0_49 = arith.constant 0 : index
    %c40 = arith.constant 40 : index
    %42 = vector.load %arg1[%c0_48, %c0_49, %c40] : memref<1x2x512xf32, #tpu.memory_space<vmem>>, vector<1x2x324xf32>
    %43 = vector.shape_cast %42 : vector<1x2x324xf32> to vector<2x324xf32>
    %c28 = arith.constant 28 : index
    %c0_50 = arith.constant 0 : index
    %44 = vector.load %arg16[%c28, %c0_50] : memref<50x324xf32, #tpu.memory_space<vmem>>, vector<2x324xf32>
    tpu.vector_store %arg16[%c28, %c0_50], %43 {strides = array<i32>} : memref<50x324xf32, #tpu.memory_space<vmem>>, vector<2x324xf32>,
    %c0_51 = arith.constant 0 : index
    %c0_52 = arith.constant 0 : index
    %c54 = arith.constant 54 : index
    %45 = vector.load %arg1[%c0_51, %c0_52, %c54] : memref<1x2x512xf32, #tpu.memory_space<vmem>>, vector<1x2x324xf32>
    %46 = vector.shape_cast %45 : vector<1x2x324xf32> to vector<2x324xf32>
    %c30 = arith.constant 30 : index
    %c0_53 = arith.constant 0 : index
    %47 = vector.load %arg16[%c30, %c0_53] : memref<50x324xf32, #tpu.memory_space<vmem>>, vector<2x324xf32>
    tpu.vector_store %arg16[%c30, %c0_53], %46 {strides = array<i32>} : memref<50x324xf32, #tpu.memory_space<vmem>>, vector<2x324xf32>,
    %c0_54 = arith.constant 0 : index
    %c0_55 = arith.constant 0 : index
    %c55 = arith.constant 55 : index
    %48 = vector.load %arg1[%c0_54, %c0_55, %c55] : memref<1x2x512xf32, #tpu.memory_space<vmem>>, vector<1x2x324xf32>
    %49 = vector.shape_cast %48 : vector<1x2x324xf32> to vector<2x324xf32>
    %c32 = arith.constant 32 : index
    %c0_56 = arith.constant 0 : index
    %50 = vector.load %arg16[%c32, %c0_56] : memref<50x324xf32, #tpu.memory_space<vmem>>, vector<2x324xf32>
    tpu.vector_store %arg16[%c32, %c0_56], %49 {strides = array<i32>} : memref<50x324xf32, #tpu.memory_space<vmem>>, vector<2x324xf32>,
    %c0_57 = arith.constant 0 : index
    %c0_58 = arith.constant 0 : index
    %c56 = arith.constant 56 : index
    %51 = vector.load %arg1[%c0_57, %c0_58, %c56] : memref<1x2x512xf32, #tpu.memory_space<vmem>>, vector<1x2x324xf32>
    %52 = vector.shape_cast %51 : vector<1x2x324xf32> to vector<2x324xf32>
    %c34 = arith.constant 34 : index
    %c0_59 = arith.constant 0 : index
    %53 = vector.load %arg16[%c34, %c0_59] : memref<50x324xf32, #tpu.memory_space<vmem>>, vector<2x324xf32>
    tpu.vector_store %arg16[%c34, %c0_59], %52 {strides = array<i32>} : memref<50x324xf32, #tpu.memory_space<vmem>>, vector<2x324xf32>,
    %c0_60 = arith.constant 0 : index
    %c0_61 = arith.constant 0 : index
    %c57 = arith.constant 57 : index
    %54 = vector.load %arg1[%c0_60, %c0_61, %c57] : memref<1x2x512xf32, #tpu.memory_space<vmem>>, vector<1x2x324xf32>
    %55 = vector.shape_cast %54 : vector<1x2x324xf32> to vector<2x324xf32>
    %c36_62 = arith.constant 36 : index
    %c0_63 = arith.constant 0 : index
    %56 = vector.load %arg16[%c36_62, %c0_63] : memref<50x324xf32, #tpu.memory_space<vmem>>, vector<2x324xf32>
    tpu.vector_store %arg16[%c36_62, %c0_63], %55 {strides = array<i32>} : memref<50x324xf32, #tpu.memory_space<vmem>>, vector<2x324xf32>,
    %c0_64 = arith.constant 0 : index
    %c0_65 = arith.constant 0 : index
    %c58 = arith.constant 58 : index
    %57 = vector.load %arg1[%c0_64, %c0_65, %c58] : memref<1x2x512xf32, #tpu.memory_space<vmem>>, vector<1x2x324xf32>
    %58 = vector.shape_cast %57 : vector<1x2x324xf32> to vector<2x324xf32>
    %c38_66 = arith.constant 38 : index
    %c0_67 = arith.constant 0 : index
    %59 = vector.load %arg16[%c38_66, %c0_67] : memref<50x324xf32, #tpu.memory_space<vmem>>, vector<2x324xf32>
    tpu.vector_store %arg16[%c38_66, %c0_67], %58 {strides = array<i32>} : memref<50x324xf32, #tpu.memory_space<vmem>>, vector<2x324xf32>,
    %c0_68 = arith.constant 0 : index
    %c0_69 = arith.constant 0 : index
    %c72 = arith.constant 72 : index
    %60 = vector.load %arg1[%c0_68, %c0_69, %c72] : memref<1x2x512xf32, #tpu.memory_space<vmem>>, vector<1x2x324xf32>
    %61 = vector.shape_cast %60 : vector<1x2x324xf32> to vector<2x324xf32>
    %c40_70 = arith.constant 40 : index
    %c0_71 = arith.constant 0 : index
    %62 = vector.load %arg16[%c40_70, %c0_71] : memref<50x324xf32, #tpu.memory_space<vmem>>, vector<2x324xf32>
    tpu.vector_store %arg16[%c40_70, %c0_71], %61 {strides = array<i32>} : memref<50x324xf32, #tpu.memory_space<vmem>>, vector<2x324xf32>,
    %c0_72 = arith.constant 0 : index
    %c0_73 = arith.constant 0 : index
    %c73 = arith.constant 73 : index
    %63 = vector.load %arg1[%c0_72, %c0_73, %c73] : memref<1x2x512xf32, #tpu.memory_space<vmem>>, vector<1x2x324xf32>
    %64 = vector.shape_cast %63 : vector<1x2x324xf32> to vector<2x324xf32>
    %c42 = arith.constant 42 : index
    %c0_74 = arith.constant 0 : index
    %65 = vector.load %arg16[%c42, %c0_74] : memref<50x324xf32, #tpu.memory_space<vmem>>, vector<2x324xf32>
    tpu.vector_store %arg16[%c42, %c0_74], %64 {strides = array<i32>} : memref<50x324xf32, #tpu.memory_space<vmem>>, vector<2x324xf32>,
    %c0_75 = arith.constant 0 : index
    %c0_76 = arith.constant 0 : index
    %c74 = arith.constant 74 : index
    %66 = vector.load %arg1[%c0_75, %c0_76, %c74] : memref<1x2x512xf32, #tpu.memory_space<vmem>>, vector<1x2x324xf32>
    %67 = vector.shape_cast %66 : vector<1x2x324xf32> to vector<2x324xf32>
    %c44 = arith.constant 44 : index
    %c0_77 = arith.constant 0 : index
    %68 = vector.load %arg16[%c44, %c0_77] : memref<50x324xf32, #tpu.memory_space<vmem>>, vector<2x324xf32>
    tpu.vector_store %arg16[%c44, %c0_77], %67 {strides = array<i32>} : memref<50x324xf32, #tpu.memory_space<vmem>>, vector<2x324xf32>,
    %c0_78 = arith.constant 0 : index
    %c0_79 = arith.constant 0 : index
    %c75 = arith.constant 75 : index
    %69 = vector.load %arg1[%c0_78, %c0_79, %c75] : memref<1x2x512xf32, #tpu.memory_space<vmem>>, vector<1x2x324xf32>
    %70 = vector.shape_cast %69 : vector<1x2x324xf32> to vector<2x324xf32>
    %c46 = arith.constant 46 : index
    %c0_80 = arith.constant 0 : index
    %71 = vector.load %arg16[%c46, %c0_80] : memref<50x324xf32, #tpu.memory_space<vmem>>, vector<2x324xf32>
    tpu.vector_store %arg16[%c46, %c0_80], %70 {strides = array<i32>} : memref<50x324xf32, #tpu.memory_space<vmem>>, vector<2x324xf32>,
    %c0_81 = arith.constant 0 : index
    %c0_82 = arith.constant 0 : index
    %c76 = arith.constant 76 : index
    %72 = vector.load %arg1[%c0_81, %c0_82, %c76] : memref<1x2x512xf32, #tpu.memory_space<vmem>>, vector<1x2x324xf32>
    %73 = vector.shape_cast %72 : vector<1x2x324xf32> to vector<2x324xf32>
    %c48 = arith.constant 48 : index
    %c0_83 = arith.constant 0 : index
    %74 = vector.load %arg16[%c48, %c0_83] : memref<50x324xf32, #tpu.memory_space<vmem>>, vector<2x324xf32>
    tpu.vector_store %arg16[%c48, %c0_83], %73 {strides = array<i32>} : memref<50x324xf32, #tpu.memory_space<vmem>>, vector<2x324xf32>,
    %c0_84 = arith.constant 0 : index
    %c0_85 = arith.constant 0 : index
    %75 = vector.load %arg16[%c0_84, %c0_85] : memref<50x324xf32, #tpu.memory_space<vmem>>, vector<50x324xf32>
    %c0_86 = arith.constant 0 : index
    %c0_87 = arith.constant 0 : index
    %76 = vector.load %arg3[%c0_86, %c0_87] : memref<16x50xf32, #tpu.memory_space<vmem>>, vector<16x50xf32>
    %cst = arith.constant dense<0.000000e+00> : vector<16x324xf32>
    %77 = tpu.matmul %76, %75, %cst {dimension_numbers = #tpu.dot_dimension_numbers<[1], [0], [0], [1], [0, 0, 1, 1], [], []>} : vector<16x50xf32>, vector<50x324xf32>, vector<16x324xf32> -> vector<16x324xf32>
    %c0_88 = arith.constant 0 : index
    %c0_89 = arith.constant 0 : index
    %78 = vector.load %arg4[%c0_88, %c0_89] : memref<16x1xf32, #tpu.memory_space<vmem>>, vector<16x1xf32>
    %79 = vector.broadcast %78 : vector<16x1xf32> to vector<16x324xf32>
    %80 = arith.addf %77, %79 : vector<16x324xf32>
    %c0_90 = arith.constant 0 : index
    %c0_91 = arith.constant 0 : index
    %81 = vector.load %arg2[%c0_90, %c0_91] : memref<5x324xi32, #tpu.memory_space<vmem>>, vector<1x324xi32>
    %c0_i32 = arith.constant 0 : i32
    %82 = vector.broadcast %c0_i32 : i32 to vector<1x324xi32>
    %83 = arith.cmpi ne, %81, %82 : vector<1x324xi32>
    %cst_92 = arith.constant 0.000000e+00 : f32
    %84 = vector.broadcast %cst_92 : f32 to vector<16x38xf32>
    %c0_93 = arith.constant 0 : index
    %c0_94 = arith.constant 0 : index
    %85 = vector.load %arg21[%c0_93, %c0_94] : memref<16x384xf32, #tpu.memory_space<vmem>>, vector<16x38xf32>
    tpu.vector_store %arg21[%c0_93, %c0_94], %84 {strides = array<i32>} : memref<16x384xf32, #tpu.memory_space<vmem>>, vector<16x38xf32>,
    %cst_95 = arith.constant 0.000000e+00 : f32
    %86 = vector.shape_cast %83 : vector<1x324xi1> to vector<1x324xi1>
    %87 = vector.broadcast %86 : vector<1x324xi1> to vector<16x324xi1>
    %88 = vector.broadcast %cst_95 : f32 to vector<16x324xf32>
    %89 = arith.select %87, %80, %88 : vector<16x324xi1>, vector<16x324xf32>
    %c0_96 = arith.constant 0 : index
    %c38_97 = arith.constant 38 : index
    %90 = vector.load %arg21[%c0_96, %c38_97] : memref<16x384xf32, #tpu.memory_space<vmem>>, vector<16x324xf32>
    tpu.vector_store %arg21[%c0_96, %c38_97], %89 {strides = array<i32>} : memref<16x384xf32, #tpu.memory_space<vmem>>, vector<16x324xf32>,
    %c0_98 = arith.constant 0 : index
    %c0_99 = arith.constant 0 : index
    %91 = vector.load %arg21[%c0_98, %c0_99] : memref<16x384xf32, #tpu.memory_space<vmem>>, vector<16x324xf32>
    %c0_100 = arith.constant 0 : index
    %c0_101 = arith.constant 0 : index
    %92 = vector.load %arg17[%c0_100, %c0_101] : memref<144x324xf32, #tpu.memory_space<vmem>>, vector<16x324xf32>
    tpu.vector_store %arg17[%c0_100, %c0_101], %91 {strides = array<i32>} : memref<144x324xf32, #tpu.memory_space<vmem>>, vector<16x324xf32>,
    %c0_102 = arith.constant 0 : index
    %c1_103 = arith.constant 1 : index
    %93 = vector.load %arg21[%c0_102, %c1_103] : memref<16x384xf32, #tpu.memory_space<vmem>>, vector<16x324xf32>
    %c16_104 = arith.constant 16 : index
    %c0_105 = arith.constant 0 : index
    %94 = vector.load %arg17[%c16_104, %c0_105] : memref<144x324xf32, #tpu.memory_space<vmem>>, vector<16x324xf32>
    tpu.vector_store %arg17[%c16_104, %c0_105], %93 {strides = array<i32>} : memref<144x324xf32, #tpu.memory_space<vmem>>, vector<16x324xf32>,
    %c0_106 = arith.constant 0 : index
    %c2_107 = arith.constant 2 : index
    %95 = vector.load %arg21[%c0_106, %c2_107] : memref<16x384xf32, #tpu.memory_space<vmem>>, vector<16x324xf32>
    %c32_108 = arith.constant 32 : index
    %c0_109 = arith.constant 0 : index
    %96 = vector.load %arg17[%c32_108, %c0_109] : memref<144x324xf32, #tpu.memory_space<vmem>>, vector<16x324xf32>
    tpu.vector_store %arg17[%c32_108, %c0_109], %95 {strides = array<i32>} : memref<144x324xf32, #tpu.memory_space<vmem>>, vector<16x324xf32>,
    %c0_110 = arith.constant 0 : index
    %c18_111 = arith.constant 18 : index
    %97 = vector.load %arg21[%c0_110, %c18_111] : memref<16x384xf32, #tpu.memory_space<vmem>>, vector<16x324xf32>
    %c48_112 = arith.constant 48 : index
    %c0_113 = arith.constant 0 : index
    %98 = vector.load %arg17[%c48_112, %c0_113] : memref<144x324xf32, #tpu.memory_space<vmem>>, vector<16x324xf32>
    tpu.vector_store %arg17[%c48_112, %c0_113], %97 {strides = array<i32>} : memref<144x324xf32, #tpu.memory_space<vmem>>, vector<16x324xf32>,
    %c0_114 = arith.constant 0 : index
    %c19_115 = arith.constant 19 : index
    %99 = vector.load %arg21[%c0_114, %c19_115] : memref<16x384xf32, #tpu.memory_space<vmem>>, vector<16x324xf32>
    %c64 = arith.constant 64 : index
    %c0_116 = arith.constant 0 : index
    %100 = vector.load %arg17[%c64, %c0_116] : memref<144x324xf32, #tpu.memory_space<vmem>>, vector<16x324xf32>
    tpu.vector_store %arg17[%c64, %c0_116], %99 {strides = array<i32>} : memref<144x324xf32, #tpu.memory_space<vmem>>, vector<16x324xf32>,
    %c0_117 = arith.constant 0 : index
    %c20_118 = arith.constant 20 : index
    %101 = vector.load %arg21[%c0_117, %c20_118] : memref<16x384xf32, #tpu.memory_space<vmem>>, vector<16x324xf32>
    %c80 = arith.constant 80 : index
    %c0_119 = arith.constant 0 : index
    %102 = vector.load %arg17[%c80, %c0_119] : memref<144x324xf32, #tpu.memory_space<vmem>>, vector<16x324xf32>
    tpu.vector_store %arg17[%c80, %c0_119], %101 {strides = array<i32>} : memref<144x324xf32, #tpu.memory_space<vmem>>, vector<16x324xf32>,
    %c0_120 = arith.constant 0 : index
    %c36_121 = arith.constant 36 : index
    %103 = vector.load %arg21[%c0_120, %c36_121] : memref<16x384xf32, #tpu.memory_space<vmem>>, vector<16x324xf32>
    %c96 = arith.constant 96 : index
    %c0_122 = arith.constant 0 : index
    %104 = vector.load %arg17[%c96, %c0_122] : memref<144x324xf32, #tpu.memory_space<vmem>>, vector<16x324xf32>
    tpu.vector_store %arg17[%c96, %c0_122], %103 {strides = array<i32>} : memref<144x324xf32, #tpu.memory_space<vmem>>, vector<16x324xf32>,
    %c0_123 = arith.constant 0 : index
    %c37_124 = arith.constant 37 : index
    %105 = vector.load %arg21[%c0_123, %c37_124] : memref<16x384xf32, #tpu.memory_space<vmem>>, vector<16x324xf32>
    %c112 = arith.constant 112 : index
    %c0_125 = arith.constant 0 : index
    %106 = vector.load %arg17[%c112, %c0_125] : memref<144x324xf32, #tpu.memory_space<vmem>>, vector<16x324xf32>
    tpu.vector_store %arg17[%c112, %c0_125], %105 {strides = array<i32>} : memref<144x324xf32, #tpu.memory_space<vmem>>, vector<16x324xf32>,
    %c0_126 = arith.constant 0 : index
    %c38_127 = arith.constant 38 : index
    %107 = vector.load %arg21[%c0_126, %c38_127] : memref<16x384xf32, #tpu.memory_space<vmem>>, vector<16x324xf32>
    %c128 = arith.constant 128 : index
    %c0_128 = arith.constant 0 : index
    %108 = vector.load %arg17[%c128, %c0_128] : memref<144x324xf32, #tpu.memory_space<vmem>>, vector<16x324xf32>
    tpu.vector_store %arg17[%c128, %c0_128], %107 {strides = array<i32>} : memref<144x324xf32, #tpu.memory_space<vmem>>, vector<16x324xf32>,
    %c0_129 = arith.constant 0 : index
    %c0_130 = arith.constant 0 : index
    %109 = vector.load %arg17[%c0_129, %c0_130] : memref<144x324xf32, #tpu.memory_space<vmem>>, vector<144x324xf32>
    %c0_131 = arith.constant 0 : index
    %c0_132 = arith.constant 0 : index
    %110 = vector.load %arg5[%c0_131, %c0_132] : memref<2x144xf32, #tpu.memory_space<vmem>>, vector<2x144xf32>
    %cst_133 = arith.constant dense<0.000000e+00> : vector<2x324xf32>
    %111 = tpu.matmul %110, %109, %cst_133 {dimension_numbers = #tpu.dot_dimension_numbers<[1], [0], [0], [1], [0, 0, 1, 1], [], []>} : vector<2x144xf32>, vector<144x324xf32>, vector<2x324xf32> -> vector<2x324xf32>
    %c0_134 = arith.constant 0 : index
    %c0_135 = arith.constant 0 : index
    %112 = vector.load %arg6[%c0_134, %c0_135] : memref<2x1xf32, #tpu.memory_space<vmem>>, vector<2x1xf32>
    %113 = vector.broadcast %112 : vector<2x1xf32> to vector<2x324xf32>
    %114 = arith.addf %111, %113 : vector<2x324xf32>
    %c1_136 = arith.constant 1 : index
    %c0_137 = arith.constant 0 : index
    %115 = vector.load %arg2[%c1_136, %c0_137] : memref<5x324xi32, #tpu.memory_space<vmem>>, vector<1x324xi32>
    %c0_i32_138 = arith.constant 0 : i32
    %116 = vector.broadcast %c0_i32_138 : i32 to vector<1x324xi32>
    %117 = arith.cmpi ne, %115, %116 : vector<1x324xi32>
    %cst_139 = arith.constant 0.000000e+00 : f32
    %118 = vector.broadcast %cst_139 : f32 to vector<2x19xf32>
    %c0_140 = arith.constant 0 : index
    %c0_141 = arith.constant 0 : index
    %119 = vector.load %arg22[%c0_140, %c0_141] : memref<2x512xf32, #tpu.memory_space<vmem>>, vector<2x19xf32>
    tpu.vector_store %arg22[%c0_140, %c0_141], %118 {strides = array<i32>} : memref<2x512xf32, #tpu.memory_space<vmem>>, vector<2x19xf32>,
    %cst_142 = arith.constant 0.000000e+00 : f32
    %120 = vector.shape_cast %117 : vector<1x324xi1> to vector<1x324xi1>
    %121 = vector.broadcast %120 : vector<1x324xi1> to vector<2x324xi1>
    %122 = vector.broadcast %cst_142 : f32 to vector<2x324xf32>
    %123 = arith.select %121, %114, %122 : vector<2x324xi1>, vector<2x324xf32>
    %c0_143 = arith.constant 0 : index
    %c19_144 = arith.constant 19 : index
    %124 = vector.load %arg22[%c0_143, %c19_144] : memref<2x512xf32, #tpu.memory_space<vmem>>, vector<2x324xf32>
    tpu.vector_store %arg22[%c0_143, %c19_144], %123 {strides = array<i32>} : memref<2x512xf32, #tpu.memory_space<vmem>>, vector<2x324xf32>,
    %c0_145 = arith.constant 0 : index
    %c0_146 = arith.constant 0 : index
    %125 = vector.load %arg22[%c0_145, %c0_146] : memref<2x512xf32, #tpu.memory_space<vmem>>, vector<2x324xf32>
    %c0_147 = arith.constant 0 : index
    %c0_148 = arith.constant 0 : index
    %126 = vector.load %arg18[%c0_147, %c0_148] : memref<50x324xf32, #tpu.memory_space<vmem>>, vector<2x324xf32>
    tpu.vector_store %arg18[%c0_147, %c0_148], %125 {strides = array<i32>} : memref<50x324xf32, #tpu.memory_space<vmem>>, vector<2x324xf32>,
    %c0_149 = arith.constant 0 : index
    %c1_150 = arith.constant 1 : index
    %127 = vector.load %arg22[%c0_149, %c1_150] : memref<2x512xf32, #tpu.memory_space<vmem>>, vector<2x324xf32>
    %c2_151 = arith.constant 2 : index
    %c0_152 = arith.constant 0 : index
    %128 = vector.load %arg18[%c2_151, %c0_152] : memref<50x324xf32, #tpu.memory_space<vmem>>, vector<2x324xf32>
    tpu.vector_store %arg18[%c2_151, %c0_152], %127 {strides = array<i32>} : memref<50x324xf32, #tpu.memory_space<vmem>>, vector<2x324xf32>,
    %c0_153 = arith.constant 0 : index
    %c2_154 = arith.constant 2 : index
    %129 = vector.load %arg22[%c0_153, %c2_154] : memref<2x512xf32, #tpu.memory_space<vmem>>, vector<2x324xf32>
    %c4_155 = arith.constant 4 : index
    %c0_156 = arith.constant 0 : index
    %130 = vector.load %arg18[%c4_155, %c0_156] : memref<50x324xf32, #tpu.memory_space<vmem>>, vector<2x324xf32>
    tpu.vector_store %arg18[%c4_155, %c0_156], %129 {strides = array<i32>} : memref<50x324xf32, #tpu.memory_space<vmem>>, vector<2x324xf32>,
    %c0_157 = arith.constant 0 : index
    %c3_158 = arith.constant 3 : index
    %131 = vector.load %arg22[%c0_157, %c3_158] : memref<2x512xf32, #tpu.memory_space<vmem>>, vector<2x324xf32>
    %c6_159 = arith.constant 6 : index
    %c0_160 = arith.constant 0 : index
    %132 = vector.load %arg18[%c6_159, %c0_160] : memref<50x324xf32, #tpu.memory_space<vmem>>, vector<2x324xf32>
    tpu.vector_store %arg18[%c6_159, %c0_160], %131 {strides = array<i32>} : memref<50x324xf32, #tpu.memory_space<vmem>>, vector<2x324xf32>,
    %c0_161 = arith.constant 0 : index
    %c4_162 = arith.constant 4 : index
    %133 = vector.load %arg22[%c0_161, %c4_162] : memref<2x512xf32, #tpu.memory_space<vmem>>, vector<2x324xf32>
    %c8_163 = arith.constant 8 : index
    %c0_164 = arith.constant 0 : index
    %134 = vector.load %arg18[%c8_163, %c0_164] : memref<50x324xf32, #tpu.memory_space<vmem>>, vector<2x324xf32>
    tpu.vector_store %arg18[%c8_163, %c0_164], %133 {strides = array<i32>} : memref<50x324xf32, #tpu.memory_space<vmem>>, vector<2x324xf32>,
    %c0_165 = arith.constant 0 : index
    %c18_166 = arith.constant 18 : index
    %135 = vector.load %arg22[%c0_165, %c18_166] : memref<2x512xf32, #tpu.memory_space<vmem>>, vector<2x324xf32>
    %c10_167 = arith.constant 10 : index
    %c0_168 = arith.constant 0 : index
    %136 = vector.load %arg18[%c10_167, %c0_168] : memref<50x324xf32, #tpu.memory_space<vmem>>, vector<2x324xf32>
    tpu.vector_store %arg18[%c10_167, %c0_168], %135 {strides = array<i32>} : memref<50x324xf32, #tpu.memory_space<vmem>>, vector<2x324xf32>,
    %c0_169 = arith.constant 0 : index
    %c19_170 = arith.constant 19 : index
    %137 = vector.load %arg22[%c0_169, %c19_170] : memref<2x512xf32, #tpu.memory_space<vmem>>, vector<2x324xf32>
    %c12_171 = arith.constant 12 : index
    %c0_172 = arith.constant 0 : index
    %138 = vector.load %arg18[%c12_171, %c0_172] : memref<50x324xf32, #tpu.memory_space<vmem>>, vector<2x324xf32>
    tpu.vector_store %arg18[%c12_171, %c0_172], %137 {strides = array<i32>} : memref<50x324xf32, #tpu.memory_space<vmem>>, vector<2x324xf32>,
    %c0_173 = arith.constant 0 : index
    %c20_174 = arith.constant 20 : index
    %139 = vector.load %arg22[%c0_173, %c20_174] : memref<2x512xf32, #tpu.memory_space<vmem>>, vector<2x324xf32>
    %c14_175 = arith.constant 14 : index
    %c0_176 = arith.constant 0 : index
    %140 = vector.load %arg18[%c14_175, %c0_176] : memref<50x324xf32, #tpu.memory_space<vmem>>, vector<2x324xf32>
    tpu.vector_store %arg18[%c14_175, %c0_176], %139 {strides = array<i32>} : memref<50x324xf32, #tpu.memory_space<vmem>>, vector<2x324xf32>,
    %c0_177 = arith.constant 0 : index
    %c21_178 = arith.constant 21 : index
    %141 = vector.load %arg22[%c0_177, %c21_178] : memref<2x512xf32, #tpu.memory_space<vmem>>, vector<2x324xf32>
    %c16_179 = arith.constant 16 : index
    %c0_180 = arith.constant 0 : index
    %142 = vector.load %arg18[%c16_179, %c0_180] : memref<50x324xf32, #tpu.memory_space<vmem>>, vector<2x324xf32>
    tpu.vector_store %arg18[%c16_179, %c0_180], %141 {strides = array<i32>} : memref<50x324xf32, #tpu.memory_space<vmem>>, vector<2x324xf32>,
    %c0_181 = arith.constant 0 : index
    %c22_182 = arith.constant 22 : index
    %143 = vector.load %arg22[%c0_181, %c22_182] : memref<2x512xf32, #tpu.memory_space<vmem>>, vector<2x324xf32>
    %c18_183 = arith.constant 18 : index
    %c0_184 = arith.constant 0 : index
    %144 = vector.load %arg18[%c18_183, %c0_184] : memref<50x324xf32, #tpu.memory_space<vmem>>, vector<2x324xf32>
    tpu.vector_store %arg18[%c18_183, %c0_184], %143 {strides = array<i32>} : memref<50x324xf32, #tpu.memory_space<vmem>>, vector<2x324xf32>,
    %c0_185 = arith.constant 0 : index
    %c36_186 = arith.constant 36 : index
    %145 = vector.load %arg22[%c0_185, %c36_186] : memref<2x512xf32, #tpu.memory_space<vmem>>, vector<2x324xf32>
    %c20_187 = arith.constant 20 : index
    %c0_188 = arith.constant 0 : index
    %146 = vector.load %arg18[%c20_187, %c0_188] : memref<50x324xf32, #tpu.memory_space<vmem>>, vector<2x324xf32>
    tpu.vector_store %arg18[%c20_187, %c0_188], %145 {strides = array<i32>} : memref<50x324xf32, #tpu.memory_space<vmem>>, vector<2x324xf32>,
    %c0_189 = arith.constant 0 : index
    %c37_190 = arith.constant 37 : index
    %147 = vector.load %arg22[%c0_189, %c37_190] : memref<2x512xf32, #tpu.memory_space<vmem>>, vector<2x324xf32>
    %c22_191 = arith.constant 22 : index
    %c0_192 = arith.constant 0 : index
    %148 = vector.load %arg18[%c22_191, %c0_192] : memref<50x324xf32, #tpu.memory_space<vmem>>, vector<2x324xf32>
    tpu.vector_store %arg18[%c22_191, %c0_192], %147 {strides = array<i32>} : memref<50x324xf32, #tpu.memory_space<vmem>>, vector<2x324xf32>,
    %c0_193 = arith.constant 0 : index
    %c38_194 = arith.constant 38 : index
    %149 = vector.load %arg22[%c0_193, %c38_194] : memref<2x512xf32, #tpu.memory_space<vmem>>, vector<2x324xf32>
    %c24_195 = arith.constant 24 : index
    %c0_196 = arith.constant 0 : index
    %150 = vector.load %arg18[%c24_195, %c0_196] : memref<50x324xf32, #tpu.memory_space<vmem>>, vector<2x324xf32>
    tpu.vector_store %arg18[%c24_195, %c0_196], %149 {strides = array<i32>} : memref<50x324xf32, #tpu.memory_space<vmem>>, vector<2x324xf32>,
    %c0_197 = arith.constant 0 : index
    %c39_198 = arith.constant 39 : index
    %151 = vector.load %arg22[%c0_197, %c39_198] : memref<2x512xf32, #tpu.memory_space<vmem>>, vector<2x324xf32>
    %c26_199 = arith.constant 26 : index
    %c0_200 = arith.constant 0 : index
    %152 = vector.load %arg18[%c26_199, %c0_200] : memref<50x324xf32, #tpu.memory_space<vmem>>, vector<2x324xf32>
    tpu.vector_store %arg18[%c26_199, %c0_200], %151 {strides = array<i32>} : memref<50x324xf32, #tpu.memory_space<vmem>>, vector<2x324xf32>,
    %c0_201 = arith.constant 0 : index
    %c40_202 = arith.constant 40 : index
    %153 = vector.load %arg22[%c0_201, %c40_202] : memref<2x512xf32, #tpu.memory_space<vmem>>, vector<2x324xf32>
    %c28_203 = arith.constant 28 : index
    %c0_204 = arith.constant 0 : index
    %154 = vector.load %arg18[%c28_203, %c0_204] : memref<50x324xf32, #tpu.memory_space<vmem>>, vector<2x324xf32>
    tpu.vector_store %arg18[%c28_203, %c0_204], %153 {strides = array<i32>} : memref<50x324xf32, #tpu.memory_space<vmem>>, vector<2x324xf32>,
    %c0_205 = arith.constant 0 : index
    %c54_206 = arith.constant 54 : index
    %155 = vector.load %arg22[%c0_205, %c54_206] : memref<2x512xf32, #tpu.memory_space<vmem>>, vector<2x324xf32>
    %c30_207 = arith.constant 30 : index
    %c0_208 = arith.constant 0 : index
    %156 = vector.load %arg18[%c30_207, %c0_208] : memref<50x324xf32, #tpu.memory_space<vmem>>, vector<2x324xf32>
    tpu.vector_store %arg18[%c30_207, %c0_208], %155 {strides = array<i32>} : memref<50x324xf32, #tpu.memory_space<vmem>>, vector<2x324xf32>,
    %c0_209 = arith.constant 0 : index
    %c55_210 = arith.constant 55 : index
    %157 = vector.load %arg22[%c0_209, %c55_210] : memref<2x512xf32, #tpu.memory_space<vmem>>, vector<2x324xf32>
    %c32_211 = arith.constant 32 : index
    %c0_212 = arith.constant 0 : index
    %158 = vector.load %arg18[%c32_211, %c0_212] : memref<50x324xf32, #tpu.memory_space<vmem>>, vector<2x324xf32>
    tpu.vector_store %arg18[%c32_211, %c0_212], %157 {strides = array<i32>} : memref<50x324xf32, #tpu.memory_space<vmem>>, vector<2x324xf32>,
    %c0_213 = arith.constant 0 : index
    %c56_214 = arith.constant 56 : index
    %159 = vector.load %arg22[%c0_213, %c56_214] : memref<2x512xf32, #tpu.memory_space<vmem>>, vector<2x324xf32>
    %c34_215 = arith.constant 34 : index
    %c0_216 = arith.constant 0 : index
    %160 = vector.load %arg18[%c34_215, %c0_216] : memref<50x324xf32, #tpu.memory_space<vmem>>, vector<2x324xf32>
    tpu.vector_store %arg18[%c34_215, %c0_216], %159 {strides = array<i32>} : memref<50x324xf32, #tpu.memory_space<vmem>>, vector<2x324xf32>,
    %c0_217 = arith.constant 0 : index
    %c57_218 = arith.constant 57 : index
    %161 = vector.load %arg22[%c0_217, %c57_218] : memref<2x512xf32, #tpu.memory_space<vmem>>, vector<2x324xf32>
    %c36_219 = arith.constant 36 : index
    %c0_220 = arith.constant 0 : index
    %162 = vector.load %arg18[%c36_219, %c0_220] : memref<50x324xf32, #tpu.memory_space<vmem>>, vector<2x324xf32>
    tpu.vector_store %arg18[%c36_219, %c0_220], %161 {strides = array<i32>} : memref<50x324xf32, #tpu.memory_space<vmem>>, vector<2x324xf32>,
    %c0_221 = arith.constant 0 : index
    %c58_222 = arith.constant 58 : index
    %163 = vector.load %arg22[%c0_221, %c58_222] : memref<2x512xf32, #tpu.memory_space<vmem>>, vector<2x324xf32>
    %c38_223 = arith.constant 38 : index
    %c0_224 = arith.constant 0 : index
    %164 = vector.load %arg18[%c38_223, %c0_224] : memref<50x324xf32, #tpu.memory_space<vmem>>, vector<2x324xf32>
    tpu.vector_store %arg18[%c38_223, %c0_224], %163 {strides = array<i32>} : memref<50x324xf32, #tpu.memory_space<vmem>>, vector<2x324xf32>,
    %c0_225 = arith.constant 0 : index
    %c72_226 = arith.constant 72 : index
    %165 = vector.load %arg22[%c0_225, %c72_226] : memref<2x512xf32, #tpu.memory_space<vmem>>, vector<2x324xf32>
    %c40_227 = arith.constant 40 : index
    %c0_228 = arith.constant 0 : index
    %166 = vector.load %arg18[%c40_227, %c0_228] : memref<50x324xf32, #tpu.memory_space<vmem>>, vector<2x324xf32>
    tpu.vector_store %arg18[%c40_227, %c0_228], %165 {strides = array<i32>} : memref<50x324xf32, #tpu.memory_space<vmem>>, vector<2x324xf32>,
    %c0_229 = arith.constant 0 : index
    %c73_230 = arith.constant 73 : index
    %167 = vector.load %arg22[%c0_229, %c73_230] : memref<2x512xf32, #tpu.memory_space<vmem>>, vector<2x324xf32>
    %c42_231 = arith.constant 42 : index
    %c0_232 = arith.constant 0 : index
    %168 = vector.load %arg18[%c42_231, %c0_232] : memref<50x324xf32, #tpu.memory_space<vmem>>, vector<2x324xf32>
    tpu.vector_store %arg18[%c42_231, %c0_232], %167 {strides = array<i32>} : memref<50x324xf32, #tpu.memory_space<vmem>>, vector<2x324xf32>,
    %c0_233 = arith.constant 0 : index
    %c74_234 = arith.constant 74 : index
    %169 = vector.load %arg22[%c0_233, %c74_234] : memref<2x512xf32, #tpu.memory_space<vmem>>, vector<2x324xf32>
    %c44_235 = arith.constant 44 : index
    %c0_236 = arith.constant 0 : index
    %170 = vector.load %arg18[%c44_235, %c0_236] : memref<50x324xf32, #tpu.memory_space<vmem>>, vector<2x324xf32>
    tpu.vector_store %arg18[%c44_235, %c0_236], %169 {strides = array<i32>} : memref<50x324xf32, #tpu.memory_space<vmem>>, vector<2x324xf32>,
    %c0_237 = arith.constant 0 : index
    %c75_238 = arith.constant 75 : index
    %171 = vector.load %arg22[%c0_237, %c75_238] : memref<2x512xf32, #tpu.memory_space<vmem>>, vector<2x324xf32>
    %c46_239 = arith.constant 46 : index
    %c0_240 = arith.constant 0 : index
    %172 = vector.load %arg18[%c46_239, %c0_240] : memref<50x324xf32, #tpu.memory_space<vmem>>, vector<2x324xf32>
    tpu.vector_store %arg18[%c46_239, %c0_240], %171 {strides = array<i32>} : memref<50x324xf32, #tpu.memory_space<vmem>>, vector<2x324xf32>,
    %c0_241 = arith.constant 0 : index
    %c76_242 = arith.constant 76 : index
    %173 = vector.load %arg22[%c0_241, %c76_242] : memref<2x512xf32, #tpu.memory_space<vmem>>, vector<2x324xf32>
    %c48_243 = arith.constant 48 : index
    %c0_244 = arith.constant 0 : index
    %174 = vector.load %arg18[%c48_243, %c0_244] : memref<50x324xf32, #tpu.memory_space<vmem>>, vector<2x324xf32>
    tpu.vector_store %arg18[%c48_243, %c0_244], %173 {strides = array<i32>} : memref<50x324xf32, #tpu.memory_space<vmem>>, vector<2x324xf32>,
    %c0_245 = arith.constant 0 : index
    %c0_246 = arith.constant 0 : index
    %175 = vector.load %arg18[%c0_245, %c0_246] : memref<50x324xf32, #tpu.memory_space<vmem>>, vector<50x324xf32>
    %c0_247 = arith.constant 0 : index
    %c0_248 = arith.constant 0 : index
    %176 = vector.load %arg7[%c0_247, %c0_248] : memref<8x50xf32, #tpu.memory_space<vmem>>, vector<8x50xf32>
    %cst_249 = arith.constant dense<0.000000e+00> : vector<8x324xf32>
    %177 = tpu.matmul %176, %175, %cst_249 {dimension_numbers = #tpu.dot_dimension_numbers<[1], [0], [0], [1], [0, 0, 1, 1], [], []>} : vector<8x50xf32>, vector<50x324xf32>, vector<8x324xf32> -> vector<8x324xf32>
    %c0_250 = arith.constant 0 : index
    %c0_251 = arith.constant 0 : index
    %178 = vector.load %arg8[%c0_250, %c0_251] : memref<8x1xf32, #tpu.memory_space<vmem>>, vector<8x1xf32>
    %179 = vector.broadcast %178 : vector<8x1xf32> to vector<8x324xf32>
    %180 = arith.addf %177, %179 : vector<8x324xf32>
    %c2_252 = arith.constant 2 : index
    %c0_253 = arith.constant 0 : index
    %181 = vector.load %arg2[%c2_252, %c0_253] : memref<5x324xi32, #tpu.memory_space<vmem>>, vector<1x324xi32>
    %c0_i32_254 = arith.constant 0 : i32
    %182 = vector.broadcast %c0_i32_254 : i32 to vector<1x324xi32>
    %183 = arith.cmpi ne, %181, %182 : vector<1x324xi32>
    %cst_255 = arith.constant 0.000000e+00 : f32
    %184 = vector.broadcast %cst_255 : f32 to vector<8x38xf32>
    %c0_256 = arith.constant 0 : index
    %c0_257 = arith.constant 0 : index
    %185 = vector.load %arg23[%c0_256, %c0_257] : memref<8x384xf32, #tpu.memory_space<vmem>>, vector<8x38xf32>
    tpu.vector_store %arg23[%c0_256, %c0_257], %184 {strides = array<i32>} : memref<8x384xf32, #tpu.memory_space<vmem>>, vector<8x38xf32>,
    %cst_258 = arith.constant 0.000000e+00 : f32
    %186 = vector.shape_cast %183 : vector<1x324xi1> to vector<1x324xi1>
    %187 = vector.broadcast %186 : vector<1x324xi1> to vector<8x324xi1>
    %188 = vector.broadcast %cst_258 : f32 to vector<8x324xf32>
    %189 = arith.select %187, %180, %188 : vector<8x324xi1>, vector<8x324xf32>
    %c0_259 = arith.constant 0 : index
    %c38_260 = arith.constant 38 : index
    %190 = vector.load %arg23[%c0_259, %c38_260] : memref<8x384xf32, #tpu.memory_space<vmem>>, vector<8x324xf32>
    tpu.vector_store %arg23[%c0_259, %c38_260], %189 {strides = array<i32>} : memref<8x384xf32, #tpu.memory_space<vmem>>, vector<8x324xf32>,
    %c0_261 = arith.constant 0 : index
    %c0_262 = arith.constant 0 : index
    %191 = vector.load %arg23[%c0_261, %c0_262] : memref<8x384xf32, #tpu.memory_space<vmem>>, vector<8x324xf32>
    %c0_263 = arith.constant 0 : index
    %c0_264 = arith.constant 0 : index
    %192 = vector.load %arg19[%c0_263, %c0_264] : memref<72x324xf32, #tpu.memory_space<vmem>>, vector<8x324xf32>
    tpu.vector_store %arg19[%c0_263, %c0_264], %191 {strides = array<i32>} : memref<72x324xf32, #tpu.memory_space<vmem>>, vector<8x324xf32>,
    %c0_265 = arith.constant 0 : index
    %c1_266 = arith.constant 1 : index
    %193 = vector.load %arg23[%c0_265, %c1_266] : memref<8x384xf32, #tpu.memory_space<vmem>>, vector<8x324xf32>
    %c8_267 = arith.constant 8 : index
    %c0_268 = arith.constant 0 : index
    %194 = vector.load %arg19[%c8_267, %c0_268] : memref<72x324xf32, #tpu.memory_space<vmem>>, vector<8x324xf32>
    tpu.vector_store %arg19[%c8_267, %c0_268], %193 {strides = array<i32>} : memref<72x324xf32, #tpu.memory_space<vmem>>, vector<8x324xf32>,
    %c0_269 = arith.constant 0 : index
    %c2_270 = arith.constant 2 : index
    %195 = vector.load %arg23[%c0_269, %c2_270] : memref<8x384xf32, #tpu.memory_space<vmem>>, vector<8x324xf32>
    %c16_271 = arith.constant 16 : index
    %c0_272 = arith.constant 0 : index
    %196 = vector.load %arg19[%c16_271, %c0_272] : memref<72x324xf32, #tpu.memory_space<vmem>>, vector<8x324xf32>
    tpu.vector_store %arg19[%c16_271, %c0_272], %195 {strides = array<i32>} : memref<72x324xf32, #tpu.memory_space<vmem>>, vector<8x324xf32>,
    %c0_273 = arith.constant 0 : index
    %c18_274 = arith.constant 18 : index
    %197 = vector.load %arg23[%c0_273, %c18_274] : memref<8x384xf32, #tpu.memory_space<vmem>>, vector<8x324xf32>
    %c24_275 = arith.constant 24 : index
    %c0_276 = arith.constant 0 : index
    %198 = vector.load %arg19[%c24_275, %c0_276] : memref<72x324xf32, #tpu.memory_space<vmem>>, vector<8x324xf32>
    tpu.vector_store %arg19[%c24_275, %c0_276], %197 {strides = array<i32>} : memref<72x324xf32, #tpu.memory_space<vmem>>, vector<8x324xf32>,
    %c0_277 = arith.constant 0 : index
    %c19_278 = arith.constant 19 : index
    %199 = vector.load %arg23[%c0_277, %c19_278] : memref<8x384xf32, #tpu.memory_space<vmem>>, vector<8x324xf32>
    %c32_279 = arith.constant 32 : index
    %c0_280 = arith.constant 0 : index
    %200 = vector.load %arg19[%c32_279, %c0_280] : memref<72x324xf32, #tpu.memory_space<vmem>>, vector<8x324xf32>
    tpu.vector_store %arg19[%c32_279, %c0_280], %199 {strides = array<i32>} : memref<72x324xf32, #tpu.memory_space<vmem>>, vector<8x324xf32>,
    %c0_281 = arith.constant 0 : index
    %c20_282 = arith.constant 20 : index
    %201 = vector.load %arg23[%c0_281, %c20_282] : memref<8x384xf32, #tpu.memory_space<vmem>>, vector<8x324xf32>
    %c40_283 = arith.constant 40 : index
    %c0_284 = arith.constant 0 : index
    %202 = vector.load %arg19[%c40_283, %c0_284] : memref<72x324xf32, #tpu.memory_space<vmem>>, vector<8x324xf32>
    tpu.vector_store %arg19[%c40_283, %c0_284], %201 {strides = array<i32>} : memref<72x324xf32, #tpu.memory_space<vmem>>, vector<8x324xf32>,
    %c0_285 = arith.constant 0 : index
    %c36_286 = arith.constant 36 : index
    %203 = vector.load %arg23[%c0_285, %c36_286] : memref<8x384xf32, #tpu.memory_space<vmem>>, vector<8x324xf32>
    %c48_287 = arith.constant 48 : index
    %c0_288 = arith.constant 0 : index
    %204 = vector.load %arg19[%c48_287, %c0_288] : memref<72x324xf32, #tpu.memory_space<vmem>>, vector<8x324xf32>
    tpu.vector_store %arg19[%c48_287, %c0_288], %203 {strides = array<i32>} : memref<72x324xf32, #tpu.memory_space<vmem>>, vector<8x324xf32>,
    %c0_289 = arith.constant 0 : index
    %c37_290 = arith.constant 37 : index
    %205 = vector.load %arg23[%c0_289, %c37_290] : memref<8x384xf32, #tpu.memory_space<vmem>>, vector<8x324xf32>
    %c56_291 = arith.constant 56 : index
    %c0_292 = arith.constant 0 : index
    %206 = vector.load %arg19[%c56_291, %c0_292] : memref<72x324xf32, #tpu.memory_space<vmem>>, vector<8x324xf32>
    tpu.vector_store %arg19[%c56_291, %c0_292], %205 {strides = array<i32>} : memref<72x324xf32, #tpu.memory_space<vmem>>, vector<8x324xf32>,
    %c0_293 = arith.constant 0 : index
    %c38_294 = arith.constant 38 : index
    %207 = vector.load %arg23[%c0_293, %c38_294] : memref<8x384xf32, #tpu.memory_space<vmem>>, vector<8x324xf32>
    %c64_295 = arith.constant 64 : index
    %c0_296 = arith.constant 0 : index
    %208 = vector.load %arg19[%c64_295, %c0_296] : memref<72x324xf32, #tpu.memory_space<vmem>>, vector<8x324xf32>
    tpu.vector_store %arg19[%c64_295, %c0_296], %207 {strides = array<i32>} : memref<72x324xf32, #tpu.memory_space<vmem>>, vector<8x324xf32>,
    %c0_297 = arith.constant 0 : index
    %c0_298 = arith.constant 0 : index
    %209 = vector.load %arg19[%c0_297, %c0_298] : memref<72x324xf32, #tpu.memory_space<vmem>>, vector<72x324xf32>
    %c0_299 = arith.constant 0 : index
    %c0_300 = arith.constant 0 : index
    %210 = vector.load %arg9[%c0_299, %c0_300] : memref<16x72xf32, #tpu.memory_space<vmem>>, vector<16x72xf32>
    %cst_301 = arith.constant dense<0.000000e+00> : vector<16x324xf32>
    %211 = tpu.matmul %210, %209, %cst_301 {dimension_numbers = #tpu.dot_dimension_numbers<[1], [0], [0], [1], [0, 0, 1, 1], [], []>} : vector<16x72xf32>, vector<72x324xf32>, vector<16x324xf32> -> vector<16x324xf32>
    %c0_302 = arith.constant 0 : index
    %c0_303 = arith.constant 0 : index
    %212 = vector.load %arg10[%c0_302, %c0_303] : memref<16x1xf32, #tpu.memory_space<vmem>>, vector<16x1xf32>
    %213 = vector.broadcast %212 : vector<16x1xf32> to vector<16x324xf32>
    %214 = arith.addf %211, %213 : vector<16x324xf32>
    %c3_304 = arith.constant 3 : index
    %c0_305 = arith.constant 0 : index
    %215 = vector.load %arg2[%c3_304, %c0_305] : memref<5x324xi32, #tpu.memory_space<vmem>>, vector<1x324xi32>
    %c0_i32_306 = arith.constant 0 : i32
    %216 = vector.broadcast %c0_i32_306 : i32 to vector<1x324xi32>
    %217 = arith.cmpi ne, %215, %216 : vector<1x324xi32>
    %cst_307 = arith.constant 0.000000e+00 : f32
    %218 = vector.broadcast %cst_307 : f32 to vector<16x19xf32>
    %c0_308 = arith.constant 0 : index
    %c0_309 = arith.constant 0 : index
    %219 = vector.load %arg24[%c0_308, %c0_309] : memref<16x384xf32, #tpu.memory_space<vmem>>, vector<16x19xf32>
    tpu.vector_store %arg24[%c0_308, %c0_309], %218 {strides = array<i32>} : memref<16x384xf32, #tpu.memory_space<vmem>>, vector<16x19xf32>,
    %cst_310 = arith.constant 0.000000e+00 : f32
    %220 = vector.shape_cast %217 : vector<1x324xi1> to vector<1x324xi1>
    %221 = vector.broadcast %220 : vector<1x324xi1> to vector<16x324xi1>
    %222 = vector.broadcast %cst_310 : f32 to vector<16x324xf32>
    %223 = arith.select %221, %214, %222 : vector<16x324xi1>, vector<16x324xf32>
    %c0_311 = arith.constant 0 : index
    %c19_312 = arith.constant 19 : index
    %224 = vector.load %arg24[%c0_311, %c19_312] : memref<16x384xf32, #tpu.memory_space<vmem>>, vector<16x324xf32>
    tpu.vector_store %arg24[%c0_311, %c19_312], %223 {strides = array<i32>} : memref<16x384xf32, #tpu.memory_space<vmem>>, vector<16x324xf32>,
    %c0_313 = arith.constant 0 : index
    %c0_314 = arith.constant 0 : index
    %225 = vector.load %arg24[%c0_313, %c0_314] : memref<16x384xf32, #tpu.memory_space<vmem>>, vector<16x324xf32>
    %c0_315 = arith.constant 0 : index
    %c0_316 = arith.constant 0 : index
    %226 = vector.load %arg20[%c0_315, %c0_316] : memref<144x324xf32, #tpu.memory_space<vmem>>, vector<16x324xf32>
    tpu.vector_store %arg20[%c0_315, %c0_316], %225 {strides = array<i32>} : memref<144x324xf32, #tpu.memory_space<vmem>>, vector<16x324xf32>,
    %c0_317 = arith.constant 0 : index
    %c1_318 = arith.constant 1 : index
    %227 = vector.load %arg24[%c0_317, %c1_318] : memref<16x384xf32, #tpu.memory_space<vmem>>, vector<16x324xf32>
    %c16_319 = arith.constant 16 : index
    %c0_320 = arith.constant 0 : index
    %228 = vector.load %arg20[%c16_319, %c0_320] : memref<144x324xf32, #tpu.memory_space<vmem>>, vector<16x324xf32>
    tpu.vector_store %arg20[%c16_319, %c0_320], %227 {strides = array<i32>} : memref<144x324xf32, #tpu.memory_space<vmem>>, vector<16x324xf32>,
    %c0_321 = arith.constant 0 : index
    %c2_322 = arith.constant 2 : index
    %229 = vector.load %arg24[%c0_321, %c2_322] : memref<16x384xf32, #tpu.memory_space<vmem>>, vector<16x324xf32>
    %c32_323 = arith.constant 32 : index
    %c0_324 = arith.constant 0 : index
    %230 = vector.load %arg20[%c32_323, %c0_324] : memref<144x324xf32, #tpu.memory_space<vmem>>, vector<16x324xf32>
    tpu.vector_store %arg20[%c32_323, %c0_324], %229 {strides = array<i32>} : memref<144x324xf32, #tpu.memory_space<vmem>>, vector<16x324xf32>,
    %c0_325 = arith.constant 0 : index
    %c18_326 = arith.constant 18 : index
    %231 = vector.load %arg24[%c0_325, %c18_326] : memref<16x384xf32, #tpu.memory_space<vmem>>, vector<16x324xf32>
    %c48_327 = arith.constant 48 : index
    %c0_328 = arith.constant 0 : index
    %232 = vector.load %arg20[%c48_327, %c0_328] : memref<144x324xf32, #tpu.memory_space<vmem>>, vector<16x324xf32>
    tpu.vector_store %arg20[%c48_327, %c0_328], %231 {strides = array<i32>} : memref<144x324xf32, #tpu.memory_space<vmem>>, vector<16x324xf32>,
    %c0_329 = arith.constant 0 : index
    %c19_330 = arith.constant 19 : index
    %233 = vector.load %arg24[%c0_329, %c19_330] : memref<16x384xf32, #tpu.memory_space<vmem>>, vector<16x324xf32>
    %c64_331 = arith.constant 64 : index
    %c0_332 = arith.constant 0 : index
    %234 = vector.load %arg20[%c64_331, %c0_332] : memref<144x324xf32, #tpu.memory_space<vmem>>, vector<16x324xf32>
    tpu.vector_store %arg20[%c64_331, %c0_332], %233 {strides = array<i32>} : memref<144x324xf32, #tpu.memory_space<vmem>>, vector<16x324xf32>,
    %c0_333 = arith.constant 0 : index
    %c20_334 = arith.constant 20 : index
    %235 = vector.load %arg24[%c0_333, %c20_334] : memref<16x384xf32, #tpu.memory_space<vmem>>, vector<16x324xf32>
    %c80_335 = arith.constant 80 : index
    %c0_336 = arith.constant 0 : index
    %236 = vector.load %arg20[%c80_335, %c0_336] : memref<144x324xf32, #tpu.memory_space<vmem>>, vector<16x324xf32>
    tpu.vector_store %arg20[%c80_335, %c0_336], %235 {strides = array<i32>} : memref<144x324xf32, #tpu.memory_space<vmem>>, vector<16x324xf32>,
    %c0_337 = arith.constant 0 : index
    %c36_338 = arith.constant 36 : index
    %237 = vector.load %arg24[%c0_337, %c36_338] : memref<16x384xf32, #tpu.memory_space<vmem>>, vector<16x324xf32>
    %c96_339 = arith.constant 96 : index
    %c0_340 = arith.constant 0 : index
    %238 = vector.load %arg20[%c96_339, %c0_340] : memref<144x324xf32, #tpu.memory_space<vmem>>, vector<16x324xf32>
    tpu.vector_store %arg20[%c96_339, %c0_340], %237 {strides = array<i32>} : memref<144x324xf32, #tpu.memory_space<vmem>>, vector<16x324xf32>,
    %c0_341 = arith.constant 0 : index
    %c37_342 = arith.constant 37 : index
    %239 = vector.load %arg24[%c0_341, %c37_342] : memref<16x384xf32, #tpu.memory_space<vmem>>, vector<16x324xf32>
    %c112_343 = arith.constant 112 : index
    %c0_344 = arith.constant 0 : index
    %240 = vector.load %arg20[%c112_343, %c0_344] : memref<144x324xf32, #tpu.memory_space<vmem>>, vector<16x324xf32>
    tpu.vector_store %arg20[%c112_343, %c0_344], %239 {strides = array<i32>} : memref<144x324xf32, #tpu.memory_space<vmem>>, vector<16x324xf32>,
    %c0_345 = arith.constant 0 : index
    %c38_346 = arith.constant 38 : index
    %241 = vector.load %arg24[%c0_345, %c38_346] : memref<16x384xf32, #tpu.memory_space<vmem>>, vector<16x324xf32>
    %c128_347 = arith.constant 128 : index
    %c0_348 = arith.constant 0 : index
    %242 = vector.load %arg20[%c128_347, %c0_348] : memref<144x324xf32, #tpu.memory_space<vmem>>, vector<16x324xf32>
    tpu.vector_store %arg20[%c128_347, %c0_348], %241 {strides = array<i32>} : memref<144x324xf32, #tpu.memory_space<vmem>>, vector<16x324xf32>,
    %c0_349 = arith.constant 0 : index
    %c0_350 = arith.constant 0 : index
    %243 = vector.load %arg20[%c0_349, %c0_350] : memref<144x324xf32, #tpu.memory_space<vmem>>, vector<144x324xf32>
    %c0_351 = arith.constant 0 : index
    %c0_352 = arith.constant 0 : index
    %244 = vector.load %arg11[%c0_351, %c0_352] : memref<2x144xf32, #tpu.memory_space<vmem>>, vector<2x144xf32>
    %cst_353 = arith.constant dense<0.000000e+00> : vector<2x324xf32>
    %245 = tpu.matmul %244, %243, %cst_353 {dimension_numbers = #tpu.dot_dimension_numbers<[1], [0], [0], [1], [0, 0, 1, 1], [], []>} : vector<2x144xf32>, vector<144x324xf32>, vector<2x324xf32> -> vector<2x324xf32>
    %c0_354 = arith.constant 0 : index
    %c0_355 = arith.constant 0 : index
    %246 = vector.load %arg12[%c0_354, %c0_355] : memref<2x1xf32, #tpu.memory_space<vmem>>, vector<2x1xf32>
    %247 = vector.broadcast %246 : vector<2x1xf32> to vector<2x324xf32>
    %248 = arith.addf %245, %247 : vector<2x324xf32>
    %c4_356 = arith.constant 4 : index
    %c0_357 = arith.constant 0 : index
    %249 = vector.load %arg2[%c4_356, %c0_357] : memref<5x324xi32, #tpu.memory_space<vmem>>, vector<1x324xi32>
    %c0_i32_358 = arith.constant 0 : i32
    %250 = vector.broadcast %c0_i32_358 : i32 to vector<1x324xi32>
    %251 = arith.cmpi ne, %249, %250 : vector<1x324xi32>
    %cst_359 = arith.constant 0.000000e+00 : f32
    %252 = vector.broadcast %cst_359 : f32 to vector<2x19xf32>
    %c0_360 = arith.constant 0 : index
    %c0_361 = arith.constant 0 : index
    %253 = vector.load %arg25[%c0_360, %c0_361] : memref<2x384xf32, #tpu.memory_space<vmem>>, vector<2x19xf32>
    tpu.vector_store %arg25[%c0_360, %c0_361], %252 {strides = array<i32>} : memref<2x384xf32, #tpu.memory_space<vmem>>, vector<2x19xf32>,
    %cst_362 = arith.constant 0.000000e+00 : f32
    %254 = vector.shape_cast %251 : vector<1x324xi1> to vector<1x324xi1>
    %255 = vector.broadcast %254 : vector<1x324xi1> to vector<2x324xi1>
    %256 = vector.broadcast %cst_362 : f32 to vector<2x324xf32>
    %257 = arith.select %255, %248, %256 : vector<2x324xi1>, vector<2x324xf32>
    %c0_363 = arith.constant 0 : index
    %c19_364 = arith.constant 19 : index
    %258 = vector.load %arg25[%c0_363, %c19_364] : memref<2x384xf32, #tpu.memory_space<vmem>>, vector<2x324xf32>
    tpu.vector_store %arg25[%c0_363, %c19_364], %257 {strides = array<i32>} : memref<2x384xf32, #tpu.memory_space<vmem>>, vector<2x324xf32>,
    %c0_365 = arith.constant 0 : index
    %c0_366 = arith.constant 0 : index
    %259 = vector.load %arg25[%c0_365, %c0_366] : memref<2x384xf32, #tpu.memory_space<vmem>>, vector<2x324xf32>
    %c0_367 = arith.constant 0 : index
    %c0_368 = arith.constant 0 : index
    %260 = vector.load %arg13[%c0_367, %c0_368] : memref<2x2xf32, #tpu.memory_space<vmem>>, vector<2x2xf32>
    %cst_369 = arith.constant dense<0.000000e+00> : vector<2x324xf32>
    %261 = tpu.matmul %260, %259, %cst_369 {dimension_numbers = #tpu.dot_dimension_numbers<[1], [0], [0], [1], [0, 0, 1, 1], [], []>} : vector<2x2xf32>, vector<2x324xf32>, vector<2x324xf32> -> vector<2x324xf32>
    %c0_370 = arith.constant 0 : index
    %c0_371 = arith.constant 0 : index
    %262 = vector.load %arg14[%c0_370, %c0_371] : memref<2x1xf32, #tpu.memory_space<vmem>>, vector<2x1xf32>
    %263 = vector.broadcast %262 : vector<2x1xf32> to vector<2x324xf32>
    %264 = arith.addf %261, %263 : vector<2x324xf32>
    %cst_372 = arith.constant 5.000000e-01 : f32
    %265 = vector.broadcast %cst_372 : f32 to vector<2x324xf32>
    %266 = arith.maximumf %264, %265 : vector<2x324xf32>
    %cst_373 = arith.constant 1.000000e+00 : f32
    %267 = vector.broadcast %cst_373 : f32 to vector<2x324xf32>
    %268 = arith.minimumf %266, %267 : vector<2x324xf32>
    %c0_374 = arith.constant 0 : index
    %c0_375 = arith.constant 0 : index
    %c0_376 = arith.constant 0 : index
    %269 = vector.load %arg15[%c0_374, %c0_375, %c0_376] : memref<1x2x324xf32, #tpu.memory_space<vmem>>, vector<1x2x324xf32>
    %270 = vector.shape_cast %269 : vector<1x2x324xf32> to vector<2x324xf32>
    %271 = vector.shape_cast %268 : vector<2x324xf32> to vector<1x2x324xf32>
    tpu.vector_store %arg15[%c0_374, %c0_375, %c0_376], %271 {strides = array<i32>} : memref<1x2x324xf32, #tpu.memory_space<vmem>>, vector<1x2x324xf32>,
    return
  }
  func.func @transform_0(%arg0: i32) -> (i32, i32, i32) {
    %c0_i32 = arith.constant 0 : i32
    %c0_i32_0 = arith.constant 0 : i32
    %c0_i32_1 = arith.constant 0 : i32
    return %arg0, %c0_i32, %c0_i32_0 : i32, i32, i32
  }
  func.func @transform_1(%arg0: i32) -> (i32, i32) {
    %c0_i32 = arith.constant 0 : i32
    %c0_i32_0 = arith.constant 0 : i32
    %c0_i32_1 = arith.constant 0 : i32
    return %c0_i32, %c0_i32_0 : i32, i32
  }
  func.func @transform_2(%arg0: i32) -> (i32, i32) {
    %c0_i32 = arith.constant 0 : i32
    %c0_i32_0 = arith.constant 0 : i32
    %c0_i32_1 = arith.constant 0 : i32
    return %c0_i32, %c0_i32_0 : i32, i32
  }
  func.func @transform_3(%arg0: i32) -> (i32, i32) {
    %c0_i32 = arith.constant 0 : i32
    %c0_i32_0 = arith.constant 0 : i32
    %c0_i32_1 = arith.constant 0 : i32
    return %c0_i32, %c0_i32_0 : i32, i32
  }
  func.func @transform_4(%arg0: i32) -> (i32, i32) {
    %c0_i32 = arith.constant 0 : i32
    %c0_i32_0 = arith.constant 0 : i32
    %c0_i32_1 = arith.constant 0 : i32
    return %c0_i32, %c0_i32_0 : i32, i32
  }
  func.func @transform_5(%arg0: i32) -> (i32, i32) {
    %c0_i32 = arith.constant 0 : i32
    %c0_i32_0 = arith.constant 0 : i32
    %c0_i32_1 = arith.constant 0 : i32
    return %c0_i32, %c0_i32_0 : i32, i32
  }
  func.func @transform_6(%arg0: i32) -> (i32, i32) {
    %c0_i32 = arith.constant 0 : i32
    %c0_i32_0 = arith.constant 0 : i32
    %c0_i32_1 = arith.constant 0 : i32
    return %c0_i32, %c0_i32_0 : i32, i32
  }
  func.func @transform_7(%arg0: i32) -> (i32, i32) {
    %c0_i32 = arith.constant 0 : i32
    %c0_i32_0 = arith.constant 0 : i32
    %c0_i32_1 = arith.constant 0 : i32
    return %c0_i32, %c0_i32_0 : i32, i32
  }
  func.func @transform_8(%arg0: i32) -> (i32, i32) {
    %c0_i32 = arith.constant 0 : i32
    %c0_i32_0 = arith.constant 0 : i32
    %c0_i32_1 = arith.constant 0 : i32
    return %c0_i32, %c0_i32_0 : i32, i32
  }
  func.func @transform_9(%arg0: i32) -> (i32, i32) {
    %c0_i32 = arith.constant 0 : i32
    %c0_i32_0 = arith.constant 0 : i32
    %c0_i32_1 = arith.constant 0 : i32
    return %c0_i32, %c0_i32_0 : i32, i32
  }
  func.func @transform_10(%arg0: i32) -> (i32, i32) {
    %c0_i32 = arith.constant 0 : i32
    %c0_i32_0 = arith.constant 0 : i32
    %c0_i32_1 = arith.constant 0 : i32
    return %c0_i32, %c0_i32_0 : i32, i32
  }
  func.func @transform_11(%arg0: i32) -> (i32, i32) {
    %c0_i32 = arith.constant 0 : i32
    %c0_i32_0 = arith.constant 0 : i32
    %c0_i32_1 = arith.constant 0 : i32
    return %c0_i32, %c0_i32_0 : i32, i32
  }
  func.func @transform_12(%arg0: i32) -> (i32, i32) {
    %c0_i32 = arith.constant 0 : i32
    %c0_i32_0 = arith.constant 0 : i32
    %c0_i32_1 = arith.constant 0 : i32
    return %c0_i32, %c0_i32_0 : i32, i32
  }
  func.func @transform_13(%arg0: i32) -> (i32, i32) {
    %c0_i32 = arith.constant 0 : i32
    %c0_i32_0 = arith.constant 0 : i32
    %c0_i32_1 = arith.constant 0 : i32
    return %c0_i32, %c0_i32_0 : i32, i32
  }
  func.func @transform_14(%arg0: i32) -> (i32, i32, i32) {
    %c0_i32 = arith.constant 0 : i32
    %c0_i32_0 = arith.constant 0 : i32
    %c0_i32_1 = arith.constant 0 : i32
    return %arg0, %c0_i32, %c0_i32_0 : i32, i32, i32
  }
}

</mosaic_0001>

<bundles_post_ra>
// kernel: model_forward.1
= control target key start
LH: loop header
LB: loop body
LE: loop exit
PB: predicated region body
PF: predicated region fallthrough
CT: control target
= control target key end

     0   :  { %s4844_s29 = smov 0   ;;  %s6385_s0 = inlined_call_operand.vmem [shape: f32[2,2,512], index: 0, kind: input, shape index: {}]   ;;  %s6386_s1 = inlined_call_operand.vmem [shape: s32[5,324], index: 1, kind: input, shape index: {}]   ;;  %s6387_s2 = inlined_call_operand.vmem [shape: f32[16,50], index: 2, kind: input, shape index: {}]   ;;  %s6388_s3 = inlined_call_operand.vmem [shape: f32[16,1], index: 3, kind: input, shape index: {}]   ;;  %s6389_s4 = inlined_call_operand.vmem [shape: f32[2,144], index: 4, kind: input, shape index: {}]   ;;  %s6390_s5 = inlined_call_operand.vmem [shape: f32[2,1], index: 5, kind: input, shape index: {}]   ;;  %s6391_s6 = inlined_call_operand.vmem [shape: f32[8,50], index: 6, kind: input, shape index: {}]   ;;  %s6392_s7 = inlined_call_operand.vmem [shape: f32[8,1], index: 7, kind: input, shape index: {}]   ;;  %s6393_s8 = inlined_call_operand.vmem [shape: f32[16,72], index: 8, kind: input, shape index: {}]   ;;  %s6394_s9 = inlined_call_operand.vmem [shape: f32[16,1], index: 9, kind: input, shape index: {}]   ;;  %s6395_s10 = inlined_call_operand.vmem [shape: f32[2,144], index: 10, kind: input, shape index: {}]   ;;  %s6396_s11 = inlined_call_operand.vmem [shape: f32[2,1], index: 11, kind: input, shape index: {}]   ;;  %s6397_s12 = inlined_call_operand.vmem [shape: f32[2,2], index: 12, kind: input, shape index: {}]   ;;  %s6398_s13 = inlined_call_operand.vmem [shape: f32[2,1], index: 13, kind: input, shape index: {}]   ;;  %s6399_s14 = inlined_call_operand.vmem [shape: f32[2,2,324], index: 14, kind: output, shape index: {}]  }
   0x1   :  { %6481 = sst [smem:[#allocation13_spill]] %s6385_s0 }
   0x2   :  { %6482 = sst [smem:[#allocation14_spill]] %s6387_s2 }
   0x3   :  { %6483 = sst [smem:[#allocation15_spill]] %s6388_s3 }
   0x4   :  { %6484 = sst [smem:[#allocation16_spill]] %s6389_s4 }
   0x5   :  { %6485 = sst [smem:[#allocation17_spill]] %s6390_s5 }
   0x6   :  { %6486 = sst [smem:[#allocation18_spill]] %s6399_s14 }
   0x7 LB: > { %6487 = sst [smem:[#allocation12_spill]] %s4737_s29  ;;  %s4512_s30 = sadd.s32 4294967295, %s4737_s29   ;;  %s4737_s29 = sphi %s4844_s29, %s24_s29  }
   0x8   : > { %p4516_p0 = scmp.ge.s32.totalorder %s4737_s29, 1  ;;  %p412_p1 = scmp.lt.s32.totalorder %s4737_s29, 3 }
   0xa   : > { %p413_p2 = pnand %p4516_p0, %p412_p1 }
   0xb   : > { %p458_p3 = scmp.lt.s32.totalorder (!%p413_p2), %s4512_s30, 1  ;;  %s6488_s0 = sld [smem:[#allocation13_spill]] (!%p413_p2) }
   0xc   : > { %416 = sbr.rel (%p413_p2) target bundleno = 3025 (0xbd1), region = 76  ;;  %s6465_s19 = smov (!%p413_p2), 52  }
   0xd   : > { %s6422_s20 = smov (!%p413_p2), 56   ;;  %s6426_s21 = smov (!%p413_p2), 54  }
   0xe   : > { %s6424_s22 = smov (!%p413_p2), 55   ;;  %s6414_s23 = smov (!%p413_p2), 53  }
   0xf   : > { %s6412_s24 = smov (!%p413_p2), 73   ;;  %s6418_s25 = smov (!%p413_p2), 72  }
  0x10   : > { %s6420_s26 = smov (!%p413_p2), 71   ;;  %s6400_s27 = smov (!%p413_p2), 70  }
  0x11   : > { %v474_v0 = vlaneseq  ;;  %v4739_v1 = vmov 1983009808   ;;  %s6638_s30 = smov (!%p458_p3, %s4512_s30), 1  ;;  %s6469_s28 = smov 90   ;;  %vm6441_vm0 = vcmask 424960   ;;  %vm6446_vm1 = vcmask 457728  }
  0x12   : > { %v472_v2 = vunpack.c.l.s4 %v4739_v1  ;;  %s4555_s15 = sshll.u32 %s6638_s30, 3  ;;  %s6406_s16 = smov 88   ;;  %vm6435_vm2 = vcmask 449536   ;;  %vm6437_vm3 = vcmask 1041408   ;;  %vm6439_vm4 = vcmask 441344  }
  0x13   : > { %v4854_v3 = vshrl.u32 %v474_v0, 7  ;;  %s4860_s18 = scalar_lea.vmem %s6488_s0, %s4555_s15  ;;  %s6404_s15 = smov 89   ;;  %vm491_vm5 = vcmask 549888   ;;  %vm6438_vm6 = vcmask 433152   ;;  %vm6444_vm7 = vcmask 408576  }
  0x14   : > { %v473_v4 = vunpack.c.0.s8 %v472_v2  ;;  %v1281_v6 = vld [vmem:[%s4860_s18] sm:$0xff]  ;;  %s6402_s17 = smov 74   ;;  %s6489_s2 = sld [smem:[#allocation14_spill]]  ;;  %vm6434_vm8 = vcmask 596992   ;;  %vm525_vm9 = vcmask 551938   ;;  %vm6429_vm10 = vcmask 588800  }
  0x15   : > { %v1283_v8 = vcombine.high %v1281_v6, %v1281_v6  ;;  %v1172_v10 = vcombine.low %v1281_v6, %v1281_v6  ;;  %v999_v15 = vld [vmem:[%s4860_s18] sm:$0x3f]  ;;  %vm6442_vm11 = vcmask 553988   ;;  %vm6428_vm12 = vcmask 580608   ;;  %s6490_s3 = sld [smem:[#allocation15_spill]]  ;;  %s6511_s0 = smov 126  }
  0x16   : > { %v4863_v5 = vsub.s32 %v473_v4, %v4854_v3  ;;  %v1032_v16 = vld [vmem:[%s4860_s18] sm:$0x3f]  ;;  %v1001_v23 = vcombine.high %v999_v15, %v999_v15  ;;  %vm6445_vm13 = vcmask 556038   ;;  %vm6430_vm14 = vcmask 572416   ;;  %s6493_s4 = sld [smem:[#allocation16_spill]]  ;;  %s6518_s29 = smov 110  }
  0x17   : > { %v1034_v19 = vcombine.low %v1032_v16, %v1032_v16  ;;  %v1065_v25 = vld [vmem:[%s4860_s18] sm:$0x3f]  ;;  %vm889_vm15 = vcmask 736256   ;;  %s6494_s5 = sld [smem:[#allocation17_spill]]  ;;  %s6519_s14 = smov 125  }
  0x18   : > { %v4867_v7 = vrot.slane %v1281_v6, %v4863_v5  ;;  %v4878_v11 = vrot.slane %v1283_v8, %v4863_v5  ;;  %v1179_v12 = vrot.slane %v1172_v10, %v4863_v5  ;;  %v1008_v18 = vrot.slane %v999_v15, %v4863_v5  ;;  %v1099_v26 = vld [vmem:[%s4860_s18] sm:$0x3f] }
  0x19   : > { %v1041_v21 = vrot.slane %v1034_v19, %v4863_v5  ;;  %v1015_v27 = vrot.slane %v1001_v23, %v4863_v5  ;;  %v1067_v28 = vcombine.high %v1065_v25, %v1065_v25  ;;  %v1074_v29 = vrot.slane %v1065_v25, %v4863_v5  ;;  %v865_v36 = vld [vmem:[%s4860_s18] sm:$0x3f] }
  0x1a   : > { %1300 = vrot.lane.b32.xlu1 %v4867_v7, %s6465_s19  ;;  %v4873_v9 = vcombine.high %v4867_v7, %v4867_v7  ;;  %v1187_v13 = vcombine.high %v1179_v12, %v1179_v12  ;;  %v1225_v14 = vcombine.low %v4878_v11, %v4878_v11  ;;  %v1262_v17 = vcombine.low %v4867_v7, %v4867_v7  ;;  %v898_v37 = vld [vmem:[%s4860_s18] sm:$0x3f] }
  0x1b   : > { %v1016_v20 = vcombine.high %v1008_v18, %v1008_v18  ;;  %v1261_v22 = vcombine.low %v1179_v12, %v1179_v12  ;;  %v1049_v24 = vcombine.high %v1041_v21, %v1041_v21  ;;  %v1101_v30 = vcombine.low %v1099_v26, %v1099_v26  ;;  %v931_v47 = vld [vmem:[%s4860_s18] sm:$0x3f] }
  0x1c   : > { %1302 = vrot.lane.b32.xlu0 %v4873_v9, %s6465_s19  ;;  %v1048_v31 = vrot.slane %v1032_v16, %v4863_v5  ;;  %v1081_v32 = vrot.slane %v1067_v28, %v4863_v5  ;;  %v1115_v35 = vrot.slane %v1099_v26, %v4863_v5  ;;  %v1082_v39 = vcombine.low %v1074_v29, %v1074_v29  ;;  %v965_v48 = vld [vmem:[%s4860_s18] sm:$0x3f] }
  0x1d   : > { %v1108_v33 = vrot.slane %v1101_v30, %v4863_v5  ;;  %v874_v40 = vrot.slane %v865_v36, %v4863_v5  ;;  %v900_v41 = vcombine.low %v898_v37, %v898_v37  ;;  %v867_v45 = vcombine.high %v865_v36, %v865_v36  ;;  %v731_v60 = vld [vmem:[%s4860_s18] sm:$0x3f] }
  0x1e   : > { %1154 = vrot.lane.b32.xlu1 %v4873_v9, %s6422_s20  ;;  %v1083_v34 = vcombine.low %v1081_v32, %v1081_v32  ;;  %v1117_v38 = vcombine.low %v1115_v35, %v1115_v35  ;;  %v933_v50 = vcombine.high %v931_v47, %v931_v47  ;;  %v940_v51 = vrot.slane %v931_v47, %v4863_v5  ;;  %v764_v61 = vld [vmem:[%s4860_s18] sm:$0x3f] }
  0x1f   : > { %v882_v42 = vcombine.high %v874_v40, %v874_v40  ;;  %v907_v43 = vrot.slane %v900_v41, %v4863_v5  ;;  %v1116_v44 = vcombine.low %v1108_v33, %v1108_v33  ;;  %v881_v49 = vrot.slane %v867_v45, %v4863_v5  ;;  %v797_v0 = vld [vmem:[%s4860_s18] sm:$0x3f] }
  0x20   : > { %1304 = vrot.lane.b32.xlu0 %v4878_v11, %s6465_s19  ;;  %v967_v52 = vcombine.low %v965_v48, %v965_v48  ;;  %v914_v53 = vrot.slane %v898_v37, %v4863_v5  ;;  %v947_v54 = vrot.slane %v933_v50, %v4863_v5  ;;  %v981_v57 = vrot.slane %v965_v48, %v4863_v5  ;;  %v831_v15 = vld [vmem:[%s4860_s18] sm:$0x3f] }
  0x21   : > { %v915_v46 = vcombine.high %v907_v43, %v907_v43  ;;  %v1299_v58 = vcombine.high %v4878_v11, %v4878_v11  ;;  %v733_v63 = vcombine.high %v731_v60, %v731_v60  ;;  %v948_v1 = vcombine.low %v940_v51, %v940_v51  ;;  %v597_v23 = vld [vmem:[%s4860_s18] sm:$0x3f] }
  0x22   : > { %1228 = vrot.lane.b32.xlu1 %v4867_v7, %s6426_s21  ;;  %v974_v55 = vrot.slane %v967_v52, %v4863_v5  ;;  %v949_v56 = vcombine.low %v947_v54, %v947_v54  ;;  %v983_v59 = vcombine.low %v981_v57, %v981_v57  ;;  %v740_v2 = vrot.slane %v731_v60, %v4863_v5  ;;  %v527_v52 = vld [vmem:[%s4860_s18] sm:$0x3f] }
  0x23   : > { %v766_v4 = vcombine.low %v764_v61, %v764_v61  ;;  %v747_v6 = vrot.slane %v733_v63, %v4863_v5  ;;  %v799_v8 = vcombine.high %v797_v0, %v797_v0  ;;  %v806_v19 = vrot.slane %v797_v0, %v4863_v5 }
  0x24   : > { %1156 = vrot.lane.b32.xlu0 %v4878_v11, %s6422_s20  ;;  %v982_v62 = vcombine.low %v974_v55, %v974_v55  ;;  %v748_v10 = vcombine.high %v740_v2, %v740_v2  ;;  %v599_v26 = vcombine.high %v597_v23, %v597_v23 }
  0x25   : > { %v814_v28 = vcombine.low %v806_v19, %v806_v19 }
  0x26   : > { %1191 = vrot.lane.b32.xlu1 %v1187_v13, %s6424_s22  ;;  %v780_v13 = vrot.slane %v764_v61, %v4863_v5 }
  0x28   : > { %1193 = vrot.lane.b32.xlu0 %v4867_v7, %s6424_s22 }
  0x2a   : > { %1265 = vrot.lane.b32.xlu1 %v1179_v12, %s6414_s23 }
  0x2c   : > { %1230 = vrot.lane.b32.xlu0 %v1225_v14, %s6426_s21  ;;  %v813_v14 = vrot.slane %v799_v8, %v4863_v5 }
  0x2e   : > { %1152 = vrot.lane.b32.xlu1 %v4867_v7, %s6422_s20 }
  0x30   : > { %1267 = vrot.lane.b32.xlu0 %v1262_v17, %s6414_s23 }
  0x32   : > { %1226 = vrot.lane.b32.xlu1 %v1262_v17, %s6426_s21  ;;  %v815_v17 = vcombine.low %v813_v14, %v813_v14  ;;  %v562_v14 = vld [vmem:[%s4860_s18] sm:$0x3f] }
  0x34   : > { %1189 = vrot.lane.b32.xlu0 %v1179_v12, %s6424_s22  ;;  %v773_v12 = vrot.slane %v766_v4, %v4863_v5 }
  0x36   : > { %1019 = vrot.lane.b32.xlu1 %v1016_v20, %s6412_s24  ;;  %v781_v16 = vcombine.high %v773_v12, %v773_v12  ;;  %v833_v20 = vcombine.low %v831_v15, %v831_v15 }
  0x38   : > { %1263 = vrot.lane.b32.xlu0 %v1261_v22, %s6414_s23  ;;  %v840_v22 = vrot.slane %v833_v20, %v4863_v5  ;;  %v578_v20 = vrot.slane %v562_v14, %v4863_v5 }
  0x3a   : > { %1052 = vrot.lane.b32.xlu1 %v1049_v24, %s6418_s25  ;;  %v630_v24 = vld [vmem:[%s4860_s18] sm:$0x3f]  ;;  %v848_v25 = vcombine.low %v840_v22, %v840_v22 }
  0x3b   : > { %v646_v32 = vrot.slane %v630_v24, %v4863_v5 }
  0x3c   : > { %1021 = vrot.lane.b32.xlu0 %v1015_v27, %s6412_s24  ;;  %v663_v27 = vld [vmem:[%s4860_s18] sm:$0x3f] }
  0x3d   : > { %v665_v30 = vcombine.high %v663_v27, %v663_v27 }
  0x3e   : > { %1086 = vrot.lane.b32.xlu1 %v1074_v29, %s6420_s26  ;;  %v632_v29 = vcombine.low %v630_v24, %v630_v24  ;;  %v564_v24 = vcombine.low %v562_v14, %v562_v14 }
  0x40   : > { %1054 = vrot.lane.b32.xlu0 %v1048_v31, %s6418_s25  ;;  %v639_v31 = vrot.slane %v632_v29, %v4863_v5  ;;  %v571_v29 = vrot.slane %v564_v24, %v4863_v5 }
  0x42   : > { %1120 = vrot.lane.b32.xlu1 %v1108_v33, %s6400_s27  ;;  %v679_v33 = vrot.slane %v665_v30, %v4863_v5  ;;  %v647_v36 = vcombine.high %v639_v31, %v639_v31 }
  0x44   : > { %1088 = vrot.lane.b32.xlu0 %v1083_v34, %s6420_s26  ;;  %v697_v34 = vld [vmem:[%s4860_s18] sm:$0x3f] }
  0x46   : > { %1017 = vrot.lane.b32.xlu1 %v1008_v18, %s6412_s24  ;;  %v847_v18 = vrot.slane %v831_v15, %v4863_v5  ;;  %s6467_s24 = smov 109  }
  0x48   : > { %1122 = vrot.lane.b32.xlu0 %v1117_v38, %s6400_s27  ;;  %v681_v38 = vcombine.low %v679_v33, %v679_v33 }
  0x4a   : > { %1084 = vrot.lane.b32.xlu1 %v1082_v39, %s6420_s26  ;;  %v713_v39 = vrot.slane %v697_v34, %v4863_v5  ;;  %s6498_s26 = smov 55  }
  0x4c   : > { %1050 = vrot.lane.b32.xlu0 %v1041_v21, %s6418_s25  ;;  %v849_v21 = vcombine.low %v847_v18, %v847_v18  ;;  %v715_v45 = vcombine.low %v713_v39, %v713_v39  ;;  %s6497_s25 = smov 54  }
  0x4e   : > { %885 = vrot.lane.b32.xlu1 %v882_v42, %s6469_s28  ;;  %v672_v42 = vrot.slane %v663_v27, %v4863_v5  ;;  %v580_v27 = vcombine.low %v578_v20, %v578_v20 }
  0x50   : > { %1118 = vrot.lane.b32.xlu0 %v1116_v44, %s6400_s27  ;;  %s6410_s27 = smov 107  }
  0x52   : > { %918 = vrot.lane.b32.xlu1 %v915_v46, %s6404_s15 }
  0x54   : > { %887 = vrot.lane.b32.xlu0 %v881_v49, %s6469_s28  ;;  %v493_v49 = vld [vmem:[%s4860_s18] sm:$0x3f] }
  0x55   : > { %v495_v54 = vcombine.low %v493_v49, %v493_v49  ;;  %v509_v8 = vrot.slane %v493_v49, %v4863_v5 }
  0x56   : > { %952 = vrot.lane.b32.xlu1 %v940_v51, %s6406_s16 }
  0x58   : > { %920 = vrot.lane.b32.xlu0 %v914_v53, %s6404_s15 }
  0x5a   : > { %986 = vrot.lane.b32.xlu1 %v974_v55, %s6402_s17  ;;  %v468_v55 = vld [vmem:[%s4860_s18] sm:$0x3f]  ;;  %s6463_s18 = smov 126  }
  0x5b   : > { %4520 = vst.sshfl [vmem:[#allocation2] sm:$0x3 pattern:$0x76325410] %v468_v55  ;;  %v477_v4 = vrot.slane %v468_v55, %v4863_v5 }
  0x5c   : > { %954 = vrot.lane.b32.xlu0 %v949_v56, %s6406_s16  ;;  %v470_v56 = vcombine.high %v468_v55, %v468_v55 }
  0x5e   : > { %1306 = vrot.lane.b32.xlu1 %v1299_v58, %s6465_s19 }
  0x60   : > { %988 = vrot.lane.b32.xlu0 %v983_v59, %s6402_s17  ;;  %v529_v59 = vcombine.high %v527_v52, %v527_v52 }
  0x62   : > { %916 = vrot.lane.b32.xlu1 %v907_v43, %s6404_s15  ;;  %s6473_s15 = smov 92   ;;  %v699_v43 = vcombine.low %v697_v34, %v697_v34 }
  0x64   : > { %883 = vrot.lane.b32.xlu0 %v874_v40, %s6469_s28  ;;  %v706_v48 = vrot.slane %v699_v43, %v4863_v5  ;;  %v1342_v43 = vld [vmem:[%s6490_s3 + $0x8] sm:$0xff] }
  0x66   : > { %984 = vrot.lane.b32.xlu1 %v982_v62, %s6402_s17  ;;  %s6408_s17 = smov 106   ;;  %v484_v62 = vrot.slane %v470_v56, %v4863_v5 }
  0x68   : > { %950 = vrot.lane.b32.xlu0 %v948_v1, %s6406_s16  ;;  %s6461_s16 = smov 91   ;;  %v680_v1 = vcombine.low %v672_v42, %v672_v42  ;;  %492 = vst.msk [vmem:[#allocation2 + $0x10] sm:$0x3] %vm491_vm5, %v484_v62 }
  0x6a   : > { %753 = vrot.lane.b32.xlu1 %v747_v6, %s6410_s27 }
  0x6c   : > { %751 = vrot.lane.b32.xlu0 %v748_v10, %s6410_s27  ;;  %v543_v10 = vrot.slane %v529_v59, %v4863_v5 }
  0x6e   : > { %786 = vrot.lane.b32.xlu1 %v780_v13, %s6408_s17 }
  0x70   : > { %784 = vrot.lane.b32.xlu0 %v781_v16, %s6408_s17 }
  0x72   : > { %820 = vrot.lane.b32.xlu1 %v815_v17, %s6473_s15 }
  0x74   : > { %818 = vrot.lane.b32.xlu0 %v806_v19, %s6473_s15  ;;  %v545_v19 = vcombine.low %v543_v10, %v543_v10 }
  0x76   : > { %854 = vrot.lane.b32.xlu1 %v849_v21, %s6461_s16 }
  0x78   : > { %852 = vrot.lane.b32.xlu0 %v840_v22, %s6461_s16 }
  0x7a   : > { %1195 = vrot.lane.b32.xlu1 %v4873_v9, %s6424_s22  ;;  %v4988_v9 = vrot.slane %v597_v23, %v4863_v5  ;;  %v536_v23 = vrot.slane %v527_v52, %v4863_v5  ;;  %s6453_s22 = smov 19  }
  0x7c   : > { %1158 = vrot.lane.b32.xlu0 %v1299_v58, %s6422_s20  ;;  %v714_v58 = vcombine.low %v706_v48, %v706_v48  ;;  %s6457_s20 = smov 125  }
  0x7e   : > { %1269 = vrot.lane.b32.xlu1 %v4867_v7, %s6414_s23  ;;  %v613_v7 = vrot.slane %v599_v26, %v4863_v5  ;;  %s6459_s23 = smov 108  }
  0x80   : > { %1232 = vrot.lane.b32.xlu0 %v4878_v11, %s6426_s21  ;;  %v614_v11 = vcombine.high %v4988_v9, %v4988_v9  ;;  %s6455_s21 = smov 38  }
  0x82   : > { %782 = vrot.lane.b32.xlu1 %v773_v12, %s6408_s17  ;;  %s6416_s17 = smov 124   ;;  %v485_v12 = vcombine.high %v477_v4, %v477_v4 }
  0x84   : > { %749 = vrot.lane.b32.xlu0 %v740_v2, %s6410_s27  ;;  %s6471_s27 = smov 110   ;;  %v502_v2 = vrot.slane %v495_v54, %v4863_v5  ;;  %490 = vst [vmem:[#allocation2 + $0x8] sm:$0x3] %v485_v12 }
  0x86   : > { %850 = vrot.lane.b32.xlu1 %v848_v25, %s6461_s16  ;;  %v510_v16 = vcombine.high %v502_v2, %v502_v2 }
  0x88   : > { %816 = vrot.lane.b32.xlu0 %v814_v28, %s6473_s15 }
  0x8a   : > { %619 = vrot.lane.b32.xlu1 %v613_v7, %s6416_s17  ;;  %v5065_v7 = vld [vmem:[%s6489_s2] sm:$0xff] }
  0x8b   : > { %4600 = vmatprep.mubr.msk.f32.mxu1 %vm6444_vm7, %v5065_v7 }
  0x8c   : > { %v1301_v35 = vpop.permute.xlu1 %1300  ;;  %617 = vrot.lane.b32.xlu0 %v614_v11, %s6416_s17  ;;  %v544_v11 = vcombine.low %v536_v23, %v536_v23 }
  0x8e   : > { %v1303_v37 = vpop.permute.xlu0 %1302  ;;  %652 = vrot.lane.b32.xlu1 %v646_v32, %s6471_s27 }
  0x8f   : > { %v1309_v40 = vsel %vm6441_vm0, %v1301_v35, %v1303_v37 }
  0x90   : > { %1315 = vst [vmem:[#allocation2 + $0x90] sm:$0x3] %v1309_v40  ;;  %v1155_v41 = vpop.permute.xlu1 %1154  ;;  %650 = vrot.lane.b32.xlu0 %v647_v36, %s6471_s27 }
  0x92   : > { %v5006_v44 = vpop.permute.xlu0 %1304  ;;  %686 = vrot.lane.b32.xlu1 %v681_v38, %s6467_s24  ;;  %v4764_v38 = vmov 0.0  }
  0x93   : > { %v1310_v46 = vsel %vm6441_vm0, %v1303_v37, %v5006_v44  ;;  %v579_v37 = vcombine.low %v571_v29, %v571_v29  ;;  %1434 = vmatprep.mubr.f32.mxu0 %v4764_v38 }
  0x94   : > { %1316 = vst [vmem:[#allocation2 + $0x98] sm:$0x3] %v1310_v46  ;;  %v5011_v47 = vpop.permute.xlu1 %1228  ;;  %684 = vrot.lane.b32.xlu0 %v672_v42, %s6467_s24 }
  0x96   : > { %v5016_v50 = vpop.permute.xlu0 %1156  ;;  %720 = vrot.lane.b32.xlu1 %v715_v45, %s6459_s23  ;;  %v1341_v45 = vld [vmem:[%s6490_s3] sm:$0xff]  ;;  %s6513_s3 = smov 90  }
  0x97   : > { %v1162_v51 = vsel %vm6446_vm1, %v1155_v41, %v5016_v50  ;;  %v1336_v0 = vld [vmem:[#allocation2 + $0x90] sm:$0x3] }
  0x98   : > { %1168 = vst [vmem:[#allocation2 + $0x80] sm:$0x3] %v1162_v51  ;;  %v1192_v53 = vpop.permute.xlu1 %1191  ;;  %718 = vrot.lane.b32.xlu0 %v706_v48, %s6459_s23 }
  0x9a   : > { %v5024_v57 = vpop.permute.xlu0 %1193  ;;  %648 = vrot.lane.b32.xlu1 %v639_v31, %s6471_s27 }
  0x9b   : > { %v1199_v60 = vsel %vm6435_vm2, %v1192_v53, %v5024_v57  ;;  %v1337_v61 = vld [vmem:[#allocation2 + $0x98] sm:$0x3] }
  0x9c   : > { %1205 = vst [vmem:[#allocation2 + $0x80] sm:$0xc] %v1199_v60  ;;  %4521 = vmatprep.subr.msk.mxu0 %vm6437_vm3, %v1337_v61  ;;  %v1266_v63 = vpop.permute.xlu1 %1265  ;;  %615 = vrot.lane.b32.xlu0 %v4988_v9, %s6416_s17  ;;  %s6475_s17 = smov 127  }
  0x9d   : > { %4522 = vmatpush1.msk.msra.mxu0 %vm6437_vm3, %v1336_v0 }
  0x9e   : > { %v5037_v6 = vpop.permute.xlu0 %1230  ;;  %716 = vrot.lane.b32.xlu1 %v714_v58, %s6459_s23 }
  0x9f   : > { %v1236_v13 = vsel %vm6439_vm4, %v5011_v47, %v5037_v6 }
  0xa0   : > { %1242 = vst [vmem:[#allocation2 + $0x80] sm:$0x30] %v1236_v13  ;;  %v1153_v15 = vpop.permute.xlu1 %1152  ;;  %682 = vrot.lane.b32.xlu0 %v680_v1, %s6467_s24 }
  0xa1   : > { %v1161_v17 = vsel %vm6446_vm1, %v1153_v15, %v1155_v41 }
  0xa2   : > { %1167 = vst [vmem:[#allocation2 + $0x78] sm:$0x3] %v1161_v17  ;;  %v5048_v18 = vpop.permute.xlu0 %1267  ;;  %515 = vrot.lane.b32.xlu1 %v509_v8, %s6475_s17 }
  0xa3   : > { %v1273_v21 = vsel %vm6438_vm6, %v1266_v63, %v5048_v18 }
  0xa4   : > { %1279 = vst [vmem:[#allocation2 + $0x80] sm:$0xc0] %v1273_v21  ;;  %v1227_v22 = vpop.permute.xlu1 %1226  ;;  %513 = vrot.lane.b32.xlu0 %v510_v16, %s6475_s17 }
  0xa5   : > { %v1235_v25 = vsel %vm6439_vm4, %v1227_v22, %v5011_v47  ;;  %v4765_v47 = vmov 0  }
  0xa6   : > { %1241 = vst [vmem:[#allocation2 + $0x78] sm:$0x30] %v1235_v25  ;;  %v1190_v26 = vpop.permute.xlu0 %1189  ;;  %550 = vrot.lane.b32.xlu1 %v545_v19, %s6463_s18  ;;  %4686 = vset.pattern.permute.xlu0 %v4765_v47 }
  0xa7   : > { %v1198_v28 = vsel %vm6435_vm2, %v1190_v26, %v1192_v53  ;;  %4685 = vset.pattern.permute.xlu1 %v4765_v47 }
  0xa8   : > { %1204 = vst [vmem:[#allocation2 + $0x78] sm:$0xc] %v1198_v28  ;;  %v1020_v9 = vpop.permute.xlu1 %1019  ;;  %548 = vrot.lane.b32.xlu0 %v536_v23, %s6463_s18 }
  0xaa   : > { %v1264_v30 = vpop.permute.xlu0 %1263  ;;  %585 = vrot.lane.b32.xlu1 %v580_v27, %s6457_s20 }
  0xab   : > { %v1272_v31 = vsel %vm6438_vm6, %v1264_v30, %v1266_v63  ;;  %v1334_v32 = vld [vmem:[#allocation2 + $0x80] sm:$0xff] }
  0xac   : > { %1278 = vst [vmem:[#allocation2 + $0x78] sm:$0xc0] %v1272_v31  ;;  %1390 = vmatprep.subr.mxu0 %v1334_v32  ;;  %v1053_v33 = vpop.permute.xlu1 %1052  ;;  %583 = vrot.lane.b32.xlu0 %v571_v29, %s6457_s20 }
  0xae   : > { %v1022_v34 = vpop.permute.xlu0 %1021  ;;  %546 = vrot.lane.b32.xlu1 %v544_v11, %s6463_s18 }
  0xaf   : > { %v1025_v35 = vsel %vm6434_vm8, %v1020_v9, %v1022_v34  ;;  %1031 = vst.msk [vmem:[#allocation2 + $0x70] sm:$0x3] %vm491_vm5, %v1022_v34 }
  0xb0   : > { %1030 = vst [vmem:[#allocation2 + $0x68] sm:$0x3] %v1025_v35  ;;  %v1087_v36 = vpop.permute.xlu1 %1086  ;;  %511 = vrot.lane.b32.xlu0 %v502_v2, %s6475_s17 }
  0xb2   : > { %v1055_v39 = vpop.permute.xlu0 %1054  ;;  %1350 = vperm.xlu1 %4685, %v1342_v43  }
  0xb3   : > { %v1058_v40 = vsel %vm6429_vm10, %v1053_v33, %v1055_v39  ;;  %1064 = vst.msk [vmem:[#allocation2 + $0x70] sm:$0xc] %vm525_vm9, %v1055_v39  ;;  %v1333_v41 = vld [vmem:[#allocation2 + $0x78] sm:$0xff] }
  0xb4   : > { %1063 = vst [vmem:[#allocation2 + $0x68] sm:$0xc] %v1058_v40  ;;  %1391 = vmatpush1.msra.mxu0 %v1333_v41  ;;  %v1121_v42 = vpop.permute.xlu1 %1120  ;;  %581 = vrot.lane.b32.xlu0 %v579_v37, %s6457_s20  ;;  %s6501_s20 = smov 72  }
  0xb6   : > { %v1089_v46 = vpop.permute.xlu0 %1088 }
  0xb7   : > { %v1092_v48 = vsel %vm6428_vm12, %v1087_v36, %v1089_v46  ;;  %1098 = vst.msk [vmem:[#allocation2 + $0x70] sm:$0x30] %vm6442_vm11, %v1089_v46 }
  0xb8   : > { %1097 = vst [vmem:[#allocation2 + $0x68] sm:$0x30] %v1092_v48  ;;  %v1018_v49 = vpop.permute.xlu1 %1017  ;;  %1345 = vperm.xlu0 %4686, %v1341_v45  }
  0xb9   : > { %v1024_v51 = vsel %vm6434_vm8, %v1018_v49, %v1020_v9  ;;  %vm856_vm8 = vcmask 744448  }
  0xba   : > { %1029 = vst [vmem:[#allocation2 + $0x60] sm:$0x3] %v1024_v51  ;;  %v1123_v52 = vpop.permute.xlu0 %1122 }
  0xbb   : > { %v1126_v53 = vsel %vm6430_vm14, %v1121_v42, %v1123_v52  ;;  %1132 = vst.msk [vmem:[#allocation2 + $0x70] sm:$0xc0] %vm6445_vm13, %v1123_v52 }
  0xbc   : > { %1131 = vst [vmem:[#allocation2 + $0x68] sm:$0xc0] %v1126_v53  ;;  %v1085_v54 = vpop.permute.xlu1 %1084 }
  0xbd   : > { %v1091_v55 = vsel %vm6428_vm12, %v1085_v54, %v1087_v36  ;;  %vm6431_vm12 = vcmask 728064  }
  0xbe   : > { %1096 = vst [vmem:[#allocation2 + $0x60] sm:$0x30] %v1091_v55  ;;  %v1051_v56 = vpop.permute.xlu0 %1050 }
  0xbf   : > { %v1057_v58 = vsel %vm6429_vm10, %v1051_v56, %v1053_v33  ;;  %vm6433_vm10 = vcmask 719872  }
  0xc0   : > { %1062 = vst [vmem:[#allocation2 + $0x60] sm:$0xc] %v1057_v58  ;;  %v886_v59 = vpop.permute.xlu1 %885 }
  0xc2   : > { %v1119_v60 = vpop.permute.xlu0 %1118 }
  0xc3   : > { %v1125_v61 = vsel %vm6430_vm14, %v1119_v60, %v1121_v42  ;;  %v1331_v62 = vld [vmem:[#allocation2 + $0x68] sm:$0xff]  ;;  %vm6432_vm14 = vcmask 605184   ;;  %v1332_v60 = vld [vmem:[#allocation2 + $0x70] sm:$0xff] }
  0xc4   : > { %1130 = vst [vmem:[#allocation2 + $0x60] sm:$0xc0] %v1125_v61  ;;  %1392 = vmatprep.subr.mxu0 %v1331_v62  ;;  %v919_v63 = vpop.permute.xlu1 %918 }
  0xc6   : > { %v888_v0 = vpop.permute.xlu0 %887 }
  0xc7   : > { %v891_v1 = vsel %vm889_vm15, %v886_v59, %v888_v0  ;;  %897 = vst.msk [vmem:[#allocation2 + $0x58] sm:$0x3] %vm491_vm5, %v888_v0 }
  0xc8   : > { %896 = vst [vmem:[#allocation2 + $0x50] sm:$0x3] %v891_v1  ;;  %v953_v2 = vpop.permute.xlu1 %952 }
  0xca   : > { %v921_v4 = vpop.permute.xlu0 %920 }
  0xcb   : > { %v924_v8 = vsel %vm6431_vm12, %v919_v63, %v921_v4  ;;  %930 = vst.msk [vmem:[#allocation2 + $0x58] sm:$0xc] %vm525_vm9, %v921_v4  ;;  %v1330_v10 = vld [vmem:[#allocation2 + $0x60] sm:$0xff] }
  0xcc   : > { %929 = vst [vmem:[#allocation2 + $0x50] sm:$0xc] %v924_v8  ;;  %1393 = vmatpush1.msra.mxu0 %v1330_v10  ;;  %v987_v12 = vpop.permute.xlu1 %986 }
  0xce   : > { %v955_v13 = vpop.permute.xlu0 %954 }
  0xcf   : > { %v958_v14 = vsel %vm6433_vm10, %v953_v2, %v955_v13  ;;  %964 = vst.msk [vmem:[#allocation2 + $0x58] sm:$0x30] %vm6442_vm11, %v955_v13 }
  0xd0   : > { %963 = vst [vmem:[#allocation2 + $0x50] sm:$0x30] %v958_v14  ;;  %v1307_v15 = vpop.permute.xlu1 %1306 }
  0xd1   : > { %v1311_v16 = vsel %vm6441_vm0, %v5006_v44, %v1307_v15  ;;  %vm6443_vm0 = vcmask 1022976  }
  0xd2   : > { %1317 = vst.msk [vmem:[#allocation2 + $0xa0] sm:$0x3] %vm491_vm5, %v1311_v16  ;;  %v989_v17 = vpop.permute.xlu0 %988 }
  0xd3   : > { %v992_v19 = vsel %vm6432_vm14, %v987_v12, %v989_v17  ;;  %998 = vst.msk [vmem:[#allocation2 + $0x58] sm:$0xc0] %vm6445_vm13, %v989_v17 }
  0xd4   : > { %997 = vst [vmem:[#allocation2 + $0x50] sm:$0xc0] %v992_v19  ;;  %v917_v20 = vpop.permute.xlu1 %916 }
  0xd5   : > { %v923_v21 = vsel %vm6431_vm12, %v917_v20, %v919_v63  ;;  %vm6436_vm12 = vcmask 875520  }
  0xd6   : > { %928 = vst [vmem:[#allocation2 + $0x48] sm:$0xc] %v923_v21  ;;  %v884_v22 = vpop.permute.xlu0 %883 }
  0xd7   : > { %v890_v23 = vsel %vm889_vm15, %v884_v22, %v886_v59 }
  0xd8   : > { %895 = vst [vmem:[#allocation2 + $0x48] sm:$0x3] %v890_v23  ;;  %v985_v24 = vpop.permute.xlu1 %984 }
  0xd9   : > { %v991_v25 = vsel %vm6432_vm14, %v985_v24, %v987_v12  ;;  %v1338_v44 = vld [vmem:[#allocation2 + $0xa0] sm:$0x3]  ;;  %vm788_vm14 = vcmask 867328  }
  0xda   : > { %996 = vst [vmem:[#allocation2 + $0x48] sm:$0xc0] %v991_v25  ;;  %4586 = vmatprep.subr.msk.mxu1 %vm6437_vm3, %v1338_v44  ;;  %v951_v26 = vpop.permute.xlu0 %950  ;;  %v1329_v63 = vld [vmem:[#allocation2 + $0x58] sm:$0xff] }
  0xdb   : > { %v957_v27 = vsel %vm6433_vm10, %v951_v26, %v953_v2  ;;  %4587 = vmatpush3.msk.msra.mxu1 %vm6437_vm3, %v1338_v44  ;;  %v1328_v28 = vld [vmem:[#allocation2 + $0x50] sm:$0xff]  ;;  %vm822_vm10 = vcmask 752640   ;;  %vm688_vm3 = vcmask 891904  }
  0xdc   : > { %962 = vst [vmem:[#allocation2 + $0x48] sm:$0x30] %v957_v27  ;;  %1394 = vmatprep.subr.mxu0 %v1328_v28  ;;  %v754_v9 = vpop.permute.xlu1 %753 }
  0xdd   : > { %763 = vst.msk [vmem:[#allocation2 + $0x40] sm:$0x3] %vm491_vm5, %v754_v9 }
  0xde   : > { %v752_v29 = vpop.permute.xlu0 %751 }
  0xdf   : > { %v757_v30 = vsel %vm6436_vm12, %v752_v29, %v754_v9 }
  0xe0   : > { %762 = vst [vmem:[#allocation2 + $0x38] sm:$0x3] %v757_v30  ;;  %v787_v11 = vpop.permute.xlu1 %786 }
  0xe1   : > { %796 = vst.msk [vmem:[#allocation2 + $0x40] sm:$0xc] %vm525_vm9, %v787_v11 }
  0xe2   : > { %v785_v31 = vpop.permute.xlu0 %784 }
  0xe3   : > { %v790_v32 = vsel %vm788_vm14, %v785_v31, %v787_v11  ;;  %v1327_v33 = vld [vmem:[#allocation2 + $0x48] sm:$0xff] }
  0xe4   : > { %795 = vst [vmem:[#allocation2 + $0x38] sm:$0xc] %v790_v32  ;;  %1395 = vmatpush1.msra.mxu0 %v1327_v33  ;;  %v821_v34 = vpop.permute.xlu1 %820 }
  0xe5   : > { %830 = vst.msk [vmem:[#allocation2 + $0x40] sm:$0x30] %vm6442_vm11, %v821_v34 }
  0xe6   : > { %v819_v35 = vpop.permute.xlu0 %818 }
  0xe7   : > { %v824_v36 = vsel %vm822_vm10, %v819_v35, %v821_v34 }
  0xe8   : > { %829 = vst [vmem:[#allocation2 + $0x38] sm:$0x30] %v824_v36  ;;  %v855_v37 = vpop.permute.xlu1 %854 }
  0xe9   : > { %864 = vst.msk [vmem:[#allocation2 + $0x40] sm:$0xc0] %vm6445_vm13, %v855_v37 }
  0xea   : > { %v853_v39 = vpop.permute.xlu0 %852 }
  0xeb   : > { %v858_v40 = vsel %vm856_vm8, %v853_v39, %v855_v37 }
  0xec   : > { %863 = vst [vmem:[#allocation2 + $0x38] sm:$0xc0] %v858_v40  ;;  %v1196_v41 = vpop.permute.xlu1 %1195 }
  0xed   : > { %v1200_v42 = vsel %vm6435_vm2, %v5024_v57, %v1196_v41  ;;  %vm6440_vm2 = vcmask 1014784   ;;  %v1340_v41 = vld [vmem:[%s6489_s2 + $0x8] sm:$0xff]  ;;  %s6512_s2 = smov 70  }
  0xee   : > { %1206 = vst.msk [vmem:[#allocation2 + $0x88] sm:$0xc] %vm525_vm9, %v1200_v42  ;;  %v1159_v43 = vpop.permute.xlu0 %1158 }
  0xef   : > { %v1163_v45 = vsel %vm6446_vm1, %v5016_v50, %v1159_v43  ;;  %vm6450_vm1 = vcmask 1047856  }
  0xf0   : > { %1169 = vst.msk [vmem:[#allocation2 + $0x88] sm:$0x3] %vm491_vm5, %v1163_v45  ;;  %v1270_v46 = vpop.permute.xlu1 %1269  ;;  %v1326_v1 = vld [vmem:[#allocation2 + $0x40] sm:$0xff] }
  0xf1   : > { %v1274_v48 = vsel %vm6438_vm6, %v5048_v18, %v1270_v46  ;;  %vm722_vm6 = vcmask 883712  }
  0xf2   : > { %1280 = vst.msk [vmem:[#allocation2 + $0x88] sm:$0xc0] %vm6445_vm13, %v1274_v48  ;;  %v1233_v49 = vpop.permute.xlu0 %1232  ;;  %v1522_v48 = vld [vmem:[%s6386_s1] ss:$8 sm:$0x7] }
  0xf3   : > { %v1237_v51 = vsel %vm6439_vm4, %v5037_v6, %v1233_v49  ;;  %v1325_v52 = vld [vmem:[#allocation2 + $0x38] sm:$0xff]  ;;  %vm6451_vm4 = vcmask 1039360  }
  0xf4   : > { %1243 = vst.msk [vmem:[#allocation2 + $0x88] sm:$0x30] %vm6442_vm11, %v1237_v51  ;;  %1396 = vmatprep.subr.mxu0 %v1325_v52  ;;  %v783_v57 = vpop.permute.xlu1 %782 }
  0xf5   : > { %v789_v53 = vsel %vm788_vm14, %v783_v57, %v785_v31 }
  0xf6   : > { %794 = vst [vmem:[#allocation2 + $0x30] sm:$0xc] %v789_v53  ;;  %v750_v50 = vpop.permute.xlu0 %749 }
  0xf7   : > { %v756_v54 = vsel %vm6436_vm12, %v750_v50, %v752_v29  ;;  %vm6452_vm12 = vcmask 900096  }
  0xf8   : > { %761 = vst [vmem:[#allocation2 + $0x30] sm:$0x3] %v756_v54  ;;  %v851_v55 = vpop.permute.xlu1 %850  ;;  %v5186_v54 = vsub.s32 0, %v4854_v3 }
  0xf9   : > { %v857_v18 = vsel %vm856_vm8, %v851_v55, %v853_v39 }
  0xfa   : > { %862 = vst [vmem:[#allocation2 + $0x30] sm:$0xc0] %v857_v18  ;;  %v817_v56 = vpop.permute.xlu0 %816  ;;  %v5192_v18 = vsub.s32 1, %v4854_v3 }
  0xfb   : > { %v823_v58 = vsel %vm822_vm10, %v817_v56, %v819_v35  ;;  %v1335_v6 = vld [vmem:[#allocation2 + $0x88] sm:$0xff] }
  0xfc   : > { %828 = vst [vmem:[#allocation2 + $0x30] sm:$0x30] %v823_v58  ;;  %4588 = vmatprep.subr.mxu1 %v1335_v6  ;;  %v620_v59 = vpop.permute.xlu1 %619 }
  0xfd   : > { %629 = vst.msk [vmem:[#allocation2 + $0x28] sm:$0x3] %vm491_vm5, %v620_v59  ;;  %4589 = vmatpush3.msra.mxu1 %v1335_v6 }
  0xfe   : > { %4590 = vmatprep.subr.mxu1 %v1332_v60  ;;  %v618_v61 = vpop.permute.xlu0 %617 }
  0xff   : > { %v623_v62 = vsel %vm6440_vm2, %v618_v61, %v620_v59  ;;  %4591 = vmatpush3.msra.mxu1 %v1332_v60 }
 0x100   : > { %628 = vst [vmem:[#allocation2 + $0x20] sm:$0x3] %v623_v62  ;;  %4592 = vmatprep.subr.mxu1 %v1329_v63  ;;  %v653_v0 = vpop.permute.xlu1 %652 }
 0x101   : > { %662 = vst.msk [vmem:[#allocation2 + $0x28] sm:$0xc] %vm525_vm9, %v653_v0  ;;  %4593 = vmatpush3.msra.mxu1 %v1329_v63 }
 0x102   : > { %4594 = vmatprep.subr.mxu1 %v1326_v1  ;;  %v651_v2 = vpop.permute.xlu0 %650 }
 0x103   : > { %v656_v4 = vsel %vm6452_vm12, %v651_v2, %v653_v0  ;;  %4595 = vmatpush3.msra.mxu1 %v1326_v1  ;;  %v1324_v8 = vld [vmem:[#allocation2 + $0x30] sm:$0xff] }
 0x104   : > { %661 = vst [vmem:[#allocation2 + $0x20] sm:$0xc] %v656_v4  ;;  %1397 = vmatpush1.msra.mxu0 %v1324_v8  ;;  %v687_v10 = vpop.permute.xlu1 %686 }
 0x105   : > { %696 = vst.msk [vmem:[#allocation2 + $0x28] sm:$0x30] %vm6442_vm11, %v687_v10 }
 0x106   : > { %v685_v12 = vpop.permute.xlu0 %684 }
 0x107   : > { %v690_v13 = vsel %vm688_vm3, %v685_v12, %v687_v10 }
 0x108   : > { %695 = vst [vmem:[#allocation2 + $0x20] sm:$0x30] %v690_v13  ;;  %v721_v14 = vpop.permute.xlu1 %720 }
 0x109   : > { %730 = vst.msk [vmem:[#allocation2 + $0x28] sm:$0xc0] %vm6445_vm13, %v721_v14 }
 0x10a   : > { %v719_v15 = vpop.permute.xlu0 %718 }
 0x10b   : > { %v724_v16 = vsel %vm722_vm6, %v719_v15, %v721_v14 }
 0x10c   : > { %729 = vst [vmem:[#allocation2 + $0x20] sm:$0xc0] %v724_v16  ;;  %v649_v17 = vpop.permute.xlu1 %648 }
 0x10d   : > { %v655_v19 = vsel %vm6452_vm12, %v649_v17, %v651_v2 }
 0x10e   : > { %660 = vst [vmem:[#allocation2 + $0x18] sm:$0xc] %v655_v19  ;;  %v616_v20 = vpop.permute.xlu0 %615 }
 0x10f   : > { %v622_v21 = vsel %vm6440_vm2, %v616_v20, %v618_v61  ;;  %vm552_vm2 = vcmask 1031168  }
 0x110   : > { %627 = vst [vmem:[#allocation2 + $0x18] sm:$0x3] %v622_v21  ;;  %v717_v22 = vpop.permute.xlu1 %716  ;;  %v1323_v23 = vld [vmem:[#allocation2 + $0x28] sm:$0xff] }
 0x111   : > { %v723_v24 = vsel %vm722_vm6, %v717_v22, %v719_v15  ;;  %4596 = vmatprep.subr.mxu1 %v1323_v23 }
 0x112   : > { %728 = vst [vmem:[#allocation2 + $0x18] sm:$0xc0] %v723_v24  ;;  %v683_v25 = vpop.permute.xlu0 %682  ;;  %4597 = vmatpush3.msra.mxu1 %v1323_v23 }
 0x113   : > { %v689_v44 = vsel %vm688_vm3, %v683_v25, %v685_v12  ;;  %v1322_v26 = vld [vmem:[#allocation2 + $0x20] sm:$0xff] }
 0x114   : > { %694 = vst [vmem:[#allocation2 + $0x18] sm:$0x30] %v689_v44  ;;  %1398 = vmatprep.subr.mxu0 %v1322_v26  ;;  %v516_v27 = vpop.permute.xlu1 %515 }
 0x115   : > { %526 = vst.msk [vmem:[#allocation2 + $0x10] sm:$0xc] %vm525_vm9, %v516_v27 }
 0x116   : > { %v514_v28 = vpop.permute.xlu0 %513 }
 0x117   : > { %v519_v9 = vsel %vm6451_vm4, %v514_v28, %v516_v27 }
 0x118   : > { %524 = vst [vmem:[#allocation2 + $0x8] sm:$0xc] %v519_v9  ;;  %v551_v29 = vpop.permute.xlu1 %550  ;;  %v5292_v9 = vld.sshfl [vmem:[%s6493_s4] sm:$0x33 pattern:$0x76325410] }
 0x119   : > { %561 = vst.msk [vmem:[#allocation2 + $0x10] sm:$0x30] %vm6442_vm11, %v551_v29  ;;  %vm1523_vm11 = vcmp.ne.s32.totalorder %v1522_v48, 0  ;;  %s6515_s4 = smov 91  }
 0x11a   : > { %v549_v30 = vpop.permute.xlu0 %548  ;;  %v1527_v49 = vsel %vm1523_vm11, 1, %v4765_v47 }
 0x11b   : > { %v554_v11 = vsel %vm552_vm2, %v549_v30, %v551_v29  ;;  %v1321_v31 = vld [vmem:[#allocation2 + $0x18] sm:$0xff]  ;;  %v1531_v56 = vrot.slane %v1527_v49, %v5186_v54  ;;  %v1535_v6 = vrot.slane %v1527_v49, %v5192_v18  ;;  %v1986_v29 = vcombine.high %v5292_v9, %v5292_v9 }
 0x11c   : > { %559 = vst [vmem:[#allocation2 + $0x8] sm:$0x30] %v554_v11  ;;  %1399 = vmatpush1.msra.mxu0 %v1321_v31  ;;  %v586_v32 = vpop.permute.xlu1 %585 }
 0x11d   : > { %596 = vst.msk [vmem:[#allocation2 + $0x10] sm:$0xc0] %vm6445_vm13, %v586_v32  ;;  %vm1540_vm11 = vcmp.eq.s32.totalorder %v1531_v56, 1  ;;  %vm1541_vm13 = vcmp.eq.s32.totalorder %v1535_v6, 1 }
 0x11e   : > { %v584_v33 = vpop.permute.xlu0 %583 }
 0x11f   : > { %v589_v34 = vsel %vm6443_vm0, %v584_v33, %v586_v32 }
 0x120   : > { %594 = vst [vmem:[#allocation2 + $0x8] sm:$0xc0] %v589_v34  ;;  %v547_v35 = vpop.permute.xlu1 %546 }
 0x121   : > { %v553_v36 = vsel %vm552_vm2, %v547_v35, %v549_v30  ;;  %v1972_v30 = vld [vmem:[%s6494_s5] sm:$0x3]  ;;  %s6516_s5 = smov 108  }
 0x122   : > { %558 = vst [vmem:[#allocation2] sm:$0x30] %v553_v36  ;;  %v512_v37 = vpop.permute.xlu0 %511 }
 0x123   : > { %v518_v39 = vsel %vm6451_vm4, %v512_v37, %v514_v28 }
 0x124   : > { %523 = vst [vmem:[#allocation2] sm:$0xc] %v518_v39  ;;  %v1320_v40 = vld [vmem:[#allocation2 + $0x10] sm:$0xff] }
 0x125   : > { %4598 = vmatprep.subr.mxu1 %v1320_v40 }
 0x126   : > { %v582_v42 = vpop.permute.xlu0 %581  ;;  %4599 = vmatpush3.msra.mxu1 %v1320_v40 }
 0x127   : > { %v588_v43 = vsel %vm6443_vm0, %v582_v42, %v584_v33  ;;  %v1319_v45 = vld [vmem:[#allocation2 + $0x8] sm:$0xff]  ;;  %4601 = vmatmul.mubr.msk.f32.vlgmr.msra.gmra.mxu1 %vm6444_vm7, %v1340_v41  ;;  %2062 = vmatprep.subr.mxu1 %v4764_v38  ;;  %vm6449_vm0 = vcmask 310272  }
 0x128   : > { %593 = vst [vmem:[#allocation2] sm:$0xc0] %v588_v43  ;;  %1400 = vmatprep.subr.mxu0 %v1319_v45  ;;  %1525 = vst.msk [vmem:[#allocation7] sm:$0xff] %vm6449_vm0, %v4764_v38 }
 0x129   : > { %1526 = vst.msk [vmem:[#allocation7 + $0x18] sm:$0xff] %vm6449_vm0, %v4764_v38  ;;  %3193 = vst.msk [vmem:[#allocation9] sm:$0xff] %vm6449_vm0, %v4764_v38 }
 0x12d   : > { %v1351_v52 = vpop.permute.xlu1 %1350 }
 0x12f   : > { %v1318_v46 = vld [vmem:[#allocation2] sm:$0xff] }
 0x130   : > { %1401 = vmatpush1.msra.mxu0 %v1318_v46 }
 0x131   : > { %4523 = vmatmul.mubr.msk.f32.vlgmr.msra.gmra.mxu0 %vm6444_vm7, %v5065_v7  ;;  %v5177_v7 = vsub.s32 2, %v4854_v3 }
 0x132   : > { %1440 = vmatprep.mubr.f32.mxu0 %v4764_v38 }
 0x133   : > { %v1539_v51 = vrot.slane %v1527_v49, %v5177_v7  ;;  %v1346_v58 = vpop.permute.xlu0 %1345 }
 0x135   : > { %4524 = vmatmul.mubr.msk.f32.gmra.mxu0 %vm6444_vm7, %v1340_v41  ;;  %vm5181_vm7 = vcmp.eq.s32.totalorder %v1539_v51, 1 }
 0x1e7   : > { %v4602_v57 = vpop.f32.mrf.mxu1 }
 0x1e8   : > { %v1519_v50 = vadd.f32 %v4602_v57, %v1351_v52 }
 0x1e9   : > { %v1513_v10 = vpop.f32.mrf.mxu1 }
 0x1ea   : > { %v1548_v55 = vsel %vm5181_vm7, %v1519_v50, 0.0  ;;  %v1514_v12 = vadd.f32 %v1513_v10, %v1346_v58 }
 0x1eb   : > { %1565 = vrot.lane.b32.xlu0 %v1548_v55, %s6455_s21 }
 0x1ec   : > { %v1545_v14 = vsel %vm5181_vm7, %v1514_v12, 0.0  ;;  %vm6448_vm7 = vcmask 556032  }
 0x1f1   : > { %v1436_v59 = vpop.f32.mrf.mxu0 }
 0x1f2   : > { %v1437_v60 = vadd.f32 %v1436_v59, %v1346_v58 }
 0x1f3   : > { %v1438_v61 = vpop.f32.mrf.mxu0 }
 0x1f4   : > { %v1439_v62 = vadd.f32 %v1438_v61, %v1346_v58  ;;  %v1543_v63 = vsel %vm1540_vm11, %v1437_v60, 0.0 }
 0x1f5   : > { %v1442_v0 = vpop.f32.mrf.mxu0  ;;  %1555 = vrot.lane.b32.xlu1 %v1543_v63, %s6455_s21 }
 0x1f6   : > { %v1443_v1 = vadd.f32 %v1442_v0, %v1351_v52  ;;  %v1544_v2 = vsel %vm1541_vm13, %v1439_v62, 0.0 }
 0x1f7   : > { %v1444_v4 = vpop.f32.mrf.mxu0  ;;  %1557 = vrot.lane.b32.xlu0 %v1544_v2, %s6455_s21 }
 0x1f8   : > { %v1445_v3 = vadd.f32 %v1444_v4, %v1351_v52  ;;  %v1546_v8 = vsel %vm1540_vm11, %v1443_v1, 0.0  ;;  %vm2135_vm11 = vcmask 148480  }
 0x1f9   : > { %1561 = vrot.lane.b32.xlu1 %v1546_v8, %s6455_s21  ;;  %2136 = vst.msk [vmem:[#allocation8] sm:$0x3] %vm2135_vm11, %v4764_v38  ;;  %4207 = vst.msk [vmem:[#allocation11] sm:$0x3] %vm2135_vm11, %v4764_v38 }
 0x1fa   : > { %v1547_v13 = vsel %vm1541_vm13, %v1445_v3, 0.0  ;;  %vm6447_vm13 = vcmask 130048  }
 0x1fb   : > { %4530 = vmatprep.mubr.msk.f32.mxu1 %vm6447_vm13, %v1986_v29  ;;  %4529 = vmatprep.mubr.msk.f32.mxu0 %vm6447_vm13, %v1986_v29  ;;  %vm6480_vm13 = vcmask 154624  }
 0x1fc   : > { %3598 = vst.msk [vmem:[#allocation10] sm:$0xff] %vm6480_vm13, %v4764_v38  ;;  %3599 = vst.msk [vmem:[#allocation10 + $0x18] sm:$0xff] %vm6480_vm13, %v4764_v38 }
 0x1fd   : > { %1563 = vrot.lane.b32.xlu1 %v1547_v13, %s6455_s21 }
 0x201   : > { %1559 = vrot.lane.b32.xlu1 %v1545_v14, %s6455_s21  ;;  %s6500_s21 = smov 71  }
 0x25d   : > { %v1566_v15 = vpop.permute.xlu0 %1565 }
 0x267   : > { %v1556_v16 = vpop.permute.xlu1 %1555 }
 0x268   : > { %1578 = vst.msk [vmem:[#allocation7] sm:$0xff] %vm6450_vm1, %v1556_v16 }
 0x269   : > { %v1558_v17 = vpop.permute.xlu0 %1557 }
 0x26a   : > { %v5205_v19 = vsel %vm6449_vm0, %v1556_v16, %v1558_v17 }
 0x26b   : > { %v1562_v20 = vpop.permute.xlu1 %1561 }
 0x26c   : > { %1581 = vst.msk [vmem:[#allocation7 + $0x18] sm:$0xff] %vm6450_vm1, %v1562_v20 }
 0x26f   : > { %v5208_v21 = vld [vmem:[#allocation7] sm:$0xff]  ;;  %v1564_v22 = vpop.permute.xlu1 %1563 }
 0x270   : > { %v5211_v23 = vsel %vm6449_vm0, %v1562_v20, %v1564_v22  ;;  %v1570_v24 = vsel %vm6449_vm0, %v1564_v22, %v1566_v15  ;;  %1849 = vrot.lane.b32.xlu1 %v5208_v21, %s6461_s16 }
 0x271   : > { %1583 = vst.msk [vmem:[#allocation7 + $0x28] sm:$0xff] %vm788_vm14, %v1570_v24 }
 0x273   : > { %v5217_v25 = vld [vmem:[#allocation7 + $0x18] sm:$0xff]  ;;  %v1560_v44 = vpop.permute.xlu1 %1559 }
 0x274   : > { %v1568_v26 = vsel %vm6449_vm0, %v1558_v17, %v1560_v44  ;;  %1855 = vrot.lane.b32.xlu0 %v5217_v25, %s6461_s16  ;;  %1809 = vrot.lane.b32.xlu1 %v5208_v21, %s6473_s15 }
 0x275   : > { %1580 = vst.msk [vmem:[#allocation7 + $0x10] sm:$0xff] %vm788_vm14, %v1568_v26 }
 0x278   : > { %1815 = vrot.lane.b32.xlu0 %v5217_v25, %s6473_s15  ;;  %1769 = vrot.lane.b32.xlu1 %v5208_v21, %s6459_s23  ;;  %v1842_v27 = vld [vmem:[#allocation7 + $0x28] sm:$0xff] }
 0x279   : > { %1596 = vst.msk [vmem:[#allocation3 + $0x28] sm:$0xff] %vm6448_vm7, %v1842_v27 }
 0x27c   : > { %v1586_v28 = vld [vmem:[#allocation7 + $0x10] sm:$0xff]  ;;  %1775 = vrot.lane.b32.xlu0 %v5217_v25, %s6459_s23  ;;  %1729 = vrot.lane.b32.xlu1 %v5208_v21, %s6467_s24 }
 0x27d   : > { %1593 = vst.msk [vmem:[#allocation3 + $0x10] sm:$0xff] %vm6448_vm7, %v1586_v28 }
 0x280   : > { %1735 = vrot.lane.b32.xlu0 %v5217_v25, %s6467_s24  ;;  %1689 = vrot.lane.b32.xlu1 %v5208_v21, %s6471_s27 }
 0x284   : > { %1695 = vrot.lane.b32.xlu0 %v5217_v25, %s6471_s27  ;;  %1649 = vrot.lane.b32.xlu1 %v5208_v21, %s6463_s18 }
 0x288   : > { %1655 = vrot.lane.b32.xlu0 %v5217_v25, %s6463_s18  ;;  %1609 = vrot.lane.b32.xlu1 %v5208_v21, %s6475_s17 }
 0x28c   : > { %1615 = vrot.lane.b32.xlu0 %v5217_v25, %s6475_s17  ;;  %1851 = vrot.lane.b32.xlu1 %v5205_v19, %s6461_s16 }
 0x290   : > { %1811 = vrot.lane.b32.xlu1 %v5205_v19, %s6473_s15  ;;  %1853 = vrot.lane.b32.xlu0 %v1586_v28, %s6461_s16 }
 0x294   : > { %1771 = vrot.lane.b32.xlu1 %v5205_v19, %s6459_s23  ;;  %1813 = vrot.lane.b32.xlu0 %v1586_v28, %s6473_s15 }
 0x298   : > { %1731 = vrot.lane.b32.xlu1 %v5205_v19, %s6467_s24  ;;  %1773 = vrot.lane.b32.xlu0 %v1586_v28, %s6459_s23 }
 0x29c   : > { %1691 = vrot.lane.b32.xlu1 %v5205_v19, %s6471_s27  ;;  %1733 = vrot.lane.b32.xlu0 %v1586_v28, %s6467_s24 }
 0x2a0   : > { %1651 = vrot.lane.b32.xlu1 %v5205_v19, %s6463_s18  ;;  %1693 = vrot.lane.b32.xlu0 %v1586_v28, %s6471_s27 }
 0x2a4   : > { %1611 = vrot.lane.b32.xlu1 %v5205_v19, %s6475_s17  ;;  %1653 = vrot.lane.b32.xlu0 %v1586_v28, %s6463_s18 }
 0x2a8   : > { %1859 = vrot.lane.b32.xlu1 %v1842_v27, %s6461_s16  ;;  %1613 = vrot.lane.b32.xlu0 %v1586_v28, %s6475_s17 }
 0x2ac   : > { %1819 = vrot.lane.b32.xlu1 %v1842_v27, %s6473_s15  ;;  %1857 = vrot.lane.b32.xlu0 %v5211_v23, %s6461_s16  ;;  %s6503_s16 = smov 73  }
 0x2b0   : > { %1779 = vrot.lane.b32.xlu1 %v1842_v27, %s6459_s23  ;;  %1817 = vrot.lane.b32.xlu0 %v5211_v23, %s6473_s15 }
 0x2b4   : > { %1739 = vrot.lane.b32.xlu1 %v1842_v27, %s6467_s24  ;;  %1777 = vrot.lane.b32.xlu0 %v5211_v23, %s6459_s23  ;;  %s6502_s23 = smov 53  }
 0x2b8   : > { %1699 = vrot.lane.b32.xlu1 %v1842_v27, %s6471_s27  ;;  %1737 = vrot.lane.b32.xlu0 %v5211_v23, %s6467_s24  ;;  %s6506_s24 = smov 106  }
 0x2bc   : > { %1659 = vrot.lane.b32.xlu1 %v1842_v27, %s6463_s18  ;;  %1697 = vrot.lane.b32.xlu0 %v5211_v23, %s6471_s27 }
 0x2c0   : > { %1619 = vrot.lane.b32.xlu1 %v1842_v27, %s6475_s17  ;;  %1657 = vrot.lane.b32.xlu0 %v5211_v23, %s6463_s18  ;;  %s6504_s18 = smov 88  }
 0x2c4   : > { %1891 = vrot.lane.b32.xlu1 %v5205_v19, %s6469_s28  ;;  %1617 = vrot.lane.b32.xlu0 %v5211_v23, %s6475_s17 }
 0x2c8   : > { %1899 = vrot.lane.b32.xlu1 %v1842_v27, %s6469_s28  ;;  %1895 = vrot.lane.b32.xlu0 %v5217_v25, %s6469_s28 }
 0x2cc   : > { %1889 = vrot.lane.b32.xlu1 %v5208_v21, %s6469_s28  ;;  %1897 = vrot.lane.b32.xlu0 %v5211_v23, %s6469_s28 }
 0x2d0   : > { %1893 = vrot.lane.b32.xlu0 %v1586_v28, %s6469_s28 }
 0x2d4   : > { %1975 = vperm.xlu0 %4686, %v1972_v30  }
 0x2e2   : > { %v1850_v11 = vpop.permute.xlu1 %1849 }
 0x2e6   : > { %v1856_v31 = vpop.permute.xlu0 %1855  ;;  %v1810_v32 = vpop.permute.xlu1 %1809 }
 0x2ea   : > { %v1816_v33 = vpop.permute.xlu0 %1815  ;;  %v1770_v34 = vpop.permute.xlu1 %1769 }
 0x2ee   : > { %v5313_v35 = vpop.permute.xlu0 %1775  ;;  %v1730_v36 = vpop.permute.xlu1 %1729 }
 0x2f2   : > { %v5315_v37 = vpop.permute.xlu0 %1735  ;;  %v1690_v39 = vpop.permute.xlu1 %1689 }
 0x2f6   : > { %v5317_v40 = vpop.permute.xlu0 %1695  ;;  %v1650_v41 = vpop.permute.xlu1 %1649 }
 0x2fa   : > { %v5319_v42 = vpop.permute.xlu0 %1655  ;;  %v1610_v43 = vpop.permute.xlu1 %1609 }
 0x2fe   : > { %v5321_v45 = vpop.permute.xlu0 %1615  ;;  %v1852_v46 = vpop.permute.xlu1 %1851 }
 0x2ff   : > { %v1861_v48 = vsel %vm856_vm8, %v1850_v11, %v1852_v46 }
 0x302   : > { %v1854_v49 = vpop.permute.xlu0 %1853  ;;  %v1812_v51 = vpop.permute.xlu1 %1811 }
 0x303   : > { %v1862_v52 = vsel %vm856_vm8, %v1852_v46, %v1854_v49  ;;  %1873 = vst.msk [vmem:[#allocation3 + $0x160] sm:$0xff] %vm6448_vm7, %v1854_v49  ;;  %v1821_v57 = vsel %vm822_vm10, %v1810_v32, %v1812_v51 }
 0x306   : > { %v1814_v53 = vpop.permute.xlu0 %1813  ;;  %v1772_v50 = vpop.permute.xlu1 %1771 }
 0x307   : > { %v1822_v55 = vsel %vm822_vm10, %v1812_v51, %v1814_v53  ;;  %1833 = vst.msk [vmem:[#allocation3 + $0x130] sm:$0xff] %vm6448_vm7, %v1814_v53  ;;  %v5330_v56 = vsel %vm722_vm6, %v1770_v34, %v1772_v50 }
 0x30a   : > { %v1774_v58 = vpop.permute.xlu0 %1773  ;;  %v1732_v6 = vpop.permute.xlu1 %1731  ;;  %v1961_v30 = vld [vmem:[#allocation3 + $0x160] sm:$0xff] }
 0x30b   : > { %v1782_v59 = vsel %vm722_vm6, %v1772_v50, %v1774_v58  ;;  %1793 = vst.msk [vmem:[#allocation3 + $0x100] sm:$0xff] %vm6448_vm7, %v1774_v58  ;;  %v5335_v60 = vsel %vm688_vm3, %v1730_v36, %v1732_v6 }
 0x30e   : > { %v1734_v61 = vpop.permute.xlu0 %1733  ;;  %v1692_v62 = vpop.permute.xlu1 %1691  ;;  %v1955_v36 = vld [vmem:[#allocation3 + $0x130] sm:$0xff] }
 0x30f   : > { %v5338_v63 = vsel %vm688_vm3, %v1732_v6, %v1734_v61  ;;  %1753 = vst.msk [vmem:[#allocation3 + $0xd0] sm:$0xff] %vm6448_vm7, %v1734_v61  ;;  %v5342_v0 = vsel %vm6452_vm12, %v1690_v39, %v1692_v62 }
 0x312   : > { %v1694_v1 = vpop.permute.xlu0 %1693  ;;  %v1652_v2 = vpop.permute.xlu1 %1651 }
 0x313   : > { %v5345_v4 = vsel %vm6452_vm12, %v1692_v62, %v1694_v1  ;;  %1713 = vst.msk [vmem:[#allocation3 + $0xa0] sm:$0xff] %vm6448_vm7, %v1694_v1  ;;  %v5349_v3 = vsel %vm552_vm2, %v1650_v41, %v1652_v2 }
 0x316   : > { %v1654_v8 = vpop.permute.xlu0 %1653  ;;  %v1612_v10 = vpop.permute.xlu1 %1611  ;;  %v1943_v53 = vld [vmem:[#allocation3 + $0xd0] sm:$0xff] }
 0x317   : > { %v5352_v12 = vsel %vm552_vm2, %v1652_v2, %v1654_v8  ;;  %1673 = vst.msk [vmem:[#allocation3 + $0x70] sm:$0xff] %vm6448_vm7, %v1654_v8  ;;  %v5356_v13 = vsel %vm6451_vm4, %v1610_v43, %v1612_v10  ;;  %v1922_v8 = vld [vmem:[#allocation3 + $0x28] sm:$0xff] }
 0x31a   : > { %v1614_v14 = vpop.permute.xlu0 %1613  ;;  %v1860_v15 = vpop.permute.xlu1 %1859  ;;  %v1937_v6 = vld [vmem:[#allocation3 + $0xa0] sm:$0xff] }
 0x31b   : > { %v5359_v16 = vsel %vm6451_vm4, %v1612_v10, %v1614_v14  ;;  %1633 = vst.msk [vmem:[#allocation3 + $0x40] sm:$0xff] %vm6448_vm7, %v1614_v14  ;;  %1876 = vst.msk [vmem:[#allocation3 + $0x178] sm:$0xff] %vm6448_vm7, %v1860_v15 }
 0x31e   : > { %v1858_v17 = vpop.permute.xlu0 %1857  ;;  %v1820_v20 = vpop.permute.xlu1 %1819 }
 0x31f   : > { %v1863_v22 = vsel %vm856_vm8, %v1856_v31, %v1858_v17  ;;  %v1864_v24 = vsel %vm856_vm8, %v1858_v17, %v1860_v15  ;;  %1836 = vst.msk [vmem:[#allocation3 + $0x148] sm:$0xff] %vm6448_vm7, %v1820_v20  ;;  %v4531_v15 = vld [vmem:[%s6386_s1 + $0x1] ss:$8 sm:$0x7] }
 0x320   : > { %1991 = vmatprep.subr.mxu0 %v1864_v24 }
 0x321   : > { %1992 = vmatpush1.msra.mxu0 %v1863_v22 }
 0x322   : > { %v1818_v44 = vpop.permute.xlu0 %1817  ;;  %v1780_v26 = vpop.permute.xlu1 %1779  ;;  %v1964_v27 = vld [vmem:[#allocation3 + $0x178] sm:$0xff]  ;;  %1993 = vmatprep.subr.mxu0 %v1862_v52 }
 0x323   : > { %v1823_v28 = vsel %vm822_vm10, %v1816_v33, %v1818_v44  ;;  %v1824_v29 = vsel %vm822_vm10, %v1818_v44, %v1820_v20  ;;  %1796 = vst.msk [vmem:[#allocation3 + $0x118] sm:$0xff] %vm6448_vm7, %v1780_v26  ;;  %2063 = vmatpush1.msra.mxu1 %v1964_v27  ;;  %1994 = vmatpush1.msra.mxu0 %v1861_v48  ;;  %v1949_v48 = vld [vmem:[#allocation3 + $0x100] sm:$0xff] }
 0x324   : > { %2064 = vmatprep.subr.mxu1 %v4764_v38  ;;  %1995 = vmatprep.subr.mxu0 %v1824_v29 }
 0x325   : > { %2065 = vmatpush1.msra.mxu1 %v1961_v30  ;;  %1996 = vmatpush1.msra.mxu0 %v1823_v28 }
 0x326   : > { %v1778_v11 = vpop.permute.xlu0 %1777  ;;  %2066 = vmatprep.subr.mxu1 %v4764_v38  ;;  %v1740_v31 = vpop.permute.xlu1 %1739  ;;  %v1958_v32 = vld [vmem:[#allocation3 + $0x148] sm:$0xff]  ;;  %1997 = vmatprep.subr.mxu0 %v1822_v55 }
 0x327   : > { %v1783_v33 = vsel %vm722_vm6, %v5313_v35, %v1778_v11  ;;  %v1784_v34 = vsel %vm722_vm6, %v1778_v11, %v1780_v26  ;;  %1756 = vst.msk [vmem:[#allocation3 + $0xe8] sm:$0xff] %vm6448_vm7, %v1740_v31  ;;  %2067 = vmatpush1.msra.mxu1 %v1958_v32  ;;  %1998 = vmatpush1.msra.mxu0 %v1821_v57 }
 0x328   : > { %2068 = vmatprep.subr.mxu1 %v4764_v38  ;;  %1999 = vmatprep.subr.mxu0 %v1784_v34 }
 0x329   : > { %2069 = vmatpush1.msra.mxu1 %v1955_v36  ;;  %2000 = vmatpush1.msra.mxu0 %v1783_v33 }
 0x32a   : > { %v1738_v39 = vpop.permute.xlu0 %1737  ;;  %2070 = vmatprep.subr.mxu1 %v4764_v38  ;;  %v1700_v41 = vpop.permute.xlu1 %1699  ;;  %v1952_v43 = vld [vmem:[#allocation3 + $0x118] sm:$0xff]  ;;  %2001 = vmatprep.subr.mxu0 %v1782_v59 }
 0x32b   : > { %v1743_v35 = vsel %vm688_vm3, %v5315_v37, %v1738_v39  ;;  %v1744_v46 = vsel %vm688_vm3, %v1738_v39, %v1740_v31  ;;  %1716 = vst.msk [vmem:[#allocation3 + $0xb8] sm:$0xff] %vm6448_vm7, %v1700_v41  ;;  %2071 = vmatpush1.msra.mxu1 %v1952_v43  ;;  %2002 = vmatpush1.msra.mxu0 %v5330_v56 }
 0x32c   : > { %2072 = vmatprep.subr.mxu1 %v4764_v38  ;;  %2003 = vmatprep.subr.mxu0 %v1744_v46 }
 0x32d   : > { %2073 = vmatpush1.msra.mxu1 %v1949_v48  ;;  %2004 = vmatpush1.msra.mxu0 %v1743_v35 }
 0x32e   : > { %v1698_v49 = vpop.permute.xlu0 %1697  ;;  %2074 = vmatprep.subr.mxu1 %v4764_v38  ;;  %v1660_v51 = vpop.permute.xlu1 %1659  ;;  %v1946_v52 = vld [vmem:[#allocation3 + $0xe8] sm:$0xff]  ;;  %2005 = vmatprep.subr.mxu0 %v5338_v63  ;;  %v1931_v63 = vld [vmem:[#allocation3 + $0x70] sm:$0xff] }
 0x32f   : > { %v1703_v37 = vsel %vm6452_vm12, %v5317_v40, %v1698_v49  ;;  %v1704_v57 = vsel %vm6452_vm12, %v1698_v49, %v1700_v41  ;;  %1676 = vst.msk [vmem:[#allocation3 + $0x88] sm:$0xff] %vm6448_vm7, %v1660_v51  ;;  %2075 = vmatpush1.msra.mxu1 %v1946_v52  ;;  %2006 = vmatpush1.msra.mxu0 %v5335_v60 }
 0x330   : > { %2076 = vmatprep.subr.mxu1 %v4764_v38  ;;  %2007 = vmatprep.subr.mxu0 %v1704_v57 }
 0x331   : > { %2077 = vmatpush1.msra.mxu1 %v1943_v53  ;;  %2008 = vmatpush1.msra.mxu0 %v1703_v37 }
 0x332   : > { %v1658_v50 = vpop.permute.xlu0 %1657  ;;  %2078 = vmatprep.subr.mxu1 %v4764_v38  ;;  %v1620_v55 = vpop.permute.xlu1 %1619  ;;  %v1940_v56 = vld [vmem:[#allocation3 + $0xb8] sm:$0xff]  ;;  %2009 = vmatprep.subr.mxu0 %v5345_v4 }
 0x333   : > { %v1663_v40 = vsel %vm552_vm2, %v5319_v42, %v1658_v50  ;;  %v1664_v58 = vsel %vm552_vm2, %v1658_v50, %v1660_v51  ;;  %1636 = vst.msk [vmem:[#allocation3 + $0x58] sm:$0xff] %vm6448_vm7, %v1620_v55  ;;  %2079 = vmatpush1.msra.mxu1 %v1940_v56  ;;  %2010 = vmatpush1.msra.mxu0 %v5342_v0 }
 0x334   : > { %2080 = vmatprep.subr.mxu1 %v4764_v38  ;;  %2011 = vmatprep.subr.mxu0 %v1664_v58 }
 0x335   : > { %2081 = vmatpush1.msra.mxu1 %v1937_v6  ;;  %2012 = vmatpush1.msra.mxu0 %v1663_v40 }
 0x336   : > { %v1618_v59 = vpop.permute.xlu0 %1617  ;;  %2082 = vmatprep.subr.mxu1 %v4764_v38  ;;  %v1892_v60 = vpop.permute.xlu1 %1891  ;;  %v1934_v61 = vld [vmem:[#allocation3 + $0x88] sm:$0xff]  ;;  %2013 = vmatprep.subr.mxu0 %v5352_v12 }
 0x337   : > { %v1623_v42 = vsel %vm6451_vm4, %v5321_v45, %v1618_v59  ;;  %v1624_v62 = vsel %vm6451_vm4, %v1618_v59, %v1620_v55  ;;  %2083 = vmatpush1.msra.mxu1 %v1934_v61  ;;  %2014 = vmatpush1.msra.mxu0 %v5349_v3  ;;  %v1925_v45 = vld [vmem:[#allocation3 + $0x40] sm:$0xff]  ;;  %vm6478_vm4 = vcmask 1043458  }
 0x338   : > { %2084 = vmatprep.subr.mxu1 %v4764_v38  ;;  %2015 = vmatprep.subr.mxu0 %v1624_v62 }
 0x339   : > { %2085 = vmatpush1.msra.mxu1 %v1931_v63  ;;  %2016 = vmatpush1.msra.mxu0 %v1623_v42 }
 0x33a   : > { %v1896_v0 = vpop.permute.xlu0 %1895  ;;  %2086 = vmatprep.subr.mxu1 %v4764_v38  ;;  %v1900_v1 = vpop.permute.xlu1 %1899  ;;  %v1928_v2 = vld [vmem:[#allocation3 + $0x58] sm:$0xff]  ;;  %2017 = vmatprep.subr.mxu0 %v5359_v16 }
 0x33b   : > { %1916 = vst.msk [vmem:[#allocation3 + $0x1a8] sm:$0xff] %vm6448_vm7, %v1900_v1  ;;  %2087 = vmatpush1.msra.mxu1 %v1928_v2  ;;  %2018 = vmatpush1.msra.mxu0 %v5356_v13 }
 0x33c   : > { %2088 = vmatprep.subr.mxu1 %v4764_v38  ;;  %2019 = vmatprep.subr.mxu0 %v5211_v23  ;;  %v1919_v23 = vld [vmem:[#allocation3 + $0x10] sm:$0xff] }
 0x33d   : > { %2089 = vmatpush1.msra.mxu1 %v1925_v45  ;;  %2020 = vmatpush1.msra.mxu0 %v5217_v25 }
 0x33e   : > { %v1898_v4 = vpop.permute.xlu0 %1897  ;;  %2090 = vmatprep.subr.mxu1 %v4764_v38  ;;  %v1890_v3 = vpop.permute.xlu1 %1889  ;;  %2021 = vmatprep.subr.mxu0 %v5205_v19 }
 0x33f   : > { %v1903_v10 = vsel %vm889_vm15, %v1896_v0, %v1898_v4  ;;  %v1904_v12 = vsel %vm889_vm15, %v1898_v4, %v1900_v1  ;;  %v1901_v13 = vsel %vm889_vm15, %v1890_v3, %v1892_v60  ;;  %2091 = vmatpush1.msra.mxu1 %v1922_v8  ;;  %2022 = vmatpush1.msra.mxu0 %v5208_v21 }
 0x340   : > { %2092 = vmatprep.subr.mxu1 %v4764_v38  ;;  %2051 = vmatprep.subr.mxu0 %v1904_v12 }
 0x341   : > { %2093 = vmatpush1.msra.mxu1 %v1919_v23  ;;  %2052 = vmatpush2.msra.mxu0 %v1903_v10 }
 0x342   : > { %v1894_v25 = vpop.permute.xlu0 %1893  ;;  %2122 = vmatprep.subr.mxu1 %v4764_v38  ;;  %v1970_v14 = vld [vmem:[#allocation3 + $0x1a8] sm:$0xff] }
 0x343   : > { %v1902_v19 = vsel %vm889_vm15, %v1892_v60, %v1894_v25  ;;  %1913 = vst.msk [vmem:[#allocation3 + $0x190] sm:$0xff] %vm6448_vm7, %v1894_v25  ;;  %2123 = vmatpush2.msra.mxu1 %v1970_v14  ;;  %vm2134_vm7 = vcmp.ne.s32.totalorder %v4531_v15, 0 }
 0x344   : > { %2124 = vmatprep.subr.mxu1 %v4764_v38  ;;  %2053 = vmatprep.subr.mxu0 %v1902_v19 }
 0x345   : > { %2054 = vmatpush2.msra.mxu0 %v1901_v13 }
 0x346   : > { %2056 = vmatmul.mubr.f32.vlgmr.msra.gmra.mxu0 %v5292_v9 }
 0x347   : > { %3113 = vmatprep.mubr.f32.mxu0 %v4764_v38 }
 0x34a   : > { %v1967_v21 = vld [vmem:[#allocation3 + $0x190] sm:$0xff] }
 0x34b   : > { %2125 = vmatpush2.msra.mxu1 %v1967_v21 }
 0x34c   : > { %2127 = vmatmul.mubr.f32.vlgmr.msra.gmra.mxu1 %v5292_v9  ;;  %4603 = vmatprep.subr.mxu1 %v4764_v38  ;;  %v2137_v9 = vsel %vm2134_vm7, 1, %v4765_v47  ;;  %vm2181_vm7 = vcmask 1041560  }
 0x34d   : > { %v2141_v16 = vrot.slane %v2137_v9, %v5186_v54  ;;  %v2145_v17 = vrot.slane %v2137_v9, %v5192_v18  ;;  %v2149_v44 = vrot.slane %v2137_v9, %v5177_v7  ;;  %vm2183_vm12 = vmor %vm6478_vm4, %vm2181_vm7  ;;  %vm6522_vm7 = vcmask 424960  }
 0x34e   : > { %vm6524_vm4 = vcmask 441344  }
 0x34f   : > { %v1976_v20 = vpop.permute.xlu0 %1975  ;;  %vm2150_vm0 = vcmp.eq.s32.totalorder %v2141_v16, 1  ;;  %vm2151_vm1 = vcmp.eq.s32.totalorder %v2145_v17, 1  ;;  %vm2152_vm11 = vcmp.eq.s32.totalorder %v2149_v44, 1 }
 0x406   : > { %v2057_v22 = vpop.f32.mrf.mxu0 }
 0x407   : > { %v2058_v24 = vadd.f32 %v2057_v22, %v1976_v20 }
 0x408   : > { %v2059_v26 = vpop.f32.mrf.mxu0 }
 0x409   : > { %v2060_v27 = vadd.f32 %v2059_v26, %v1976_v20  ;;  %v2153_v28 = vsel %vm2150_vm0, %v2058_v24, 0.0  ;;  %vm2184_vm0 = vcmask 709636  }
 0x40b   : > { %v2154_v29 = vsel %vm2151_vm1, %v2060_v27, 0.0  ;;  %vm5445_vm1 = vmor %vm2184_vm0, %vm2183_vm12  ;;  %vm6479_vm12 = vmmov 0  }
 0x40c   : > { %v2128_v30 = vpop.f32.mrf.mxu1  ;;  %v2159_v11 = vcombine.low %v2153_v28, %v2154_v29  ;;  %4617 = vmatprep.mubr.msk.f32.mxu1 %vm6479_vm12, %v4764_v38  ;;  %vm6523_vm0 = vmmov %vm6522_vm7 }
 0x40d   : > { %v2129_v31 = vadd.f32 %v2128_v30, %v1976_v20 }
 0x40e   : > { %v2130_v32 = vpop.f32.mrf.mxu1  ;;  %v2166_v36 = vrot.slane %v2159_v11, %v4863_v5 }
 0x40f   : > { %v2155_v33 = vsel %vm2152_vm11, %v2129_v31, 0.0  ;;  %vm6521_vm11 = vcmask 457728  }
 0x410   : > { %v2173_v34 = vrot.slane %v2155_v33, %v4863_v5 }
 0x412   : > { %v2174_v39 = vcombine.low %v2166_v36, %v2173_v34 }
 0x414   : > { %2175 = vrot.lane.b32.xlu1 %v2174_v39, %s6453_s22  ;;  %s6499_s22 = smov 56  }
 0x486   : > { %v2176_v41 = vpop.permute.xlu1 %2175 }
 0x487   : > { %v2177_v35 = vrot.slane %v2176_v41, 6 }
 0x489   : > { %v2179_v46 = vsel %vm6480_vm13, %v2177_v35, %v2176_v41  ;;  %vm6529_vm13 = vcmask 1041408  }
 0x48a   : > { %2186 = vst.msk [vmem:[#allocation8] sm:$0x3f] %vm5445_vm1, %v2179_v46 }
 0x491   : > { %v2187_v48 = vld [vmem:[#allocation8] sm:$0x3f] }
 0x492   : > { %v2973_v49 = vld [vmem:[#allocation8] sm:$0xff]  ;;  %4532 = vst.sshfl [vmem:[#allocation4] sm:$0x3 pattern:$0x76325410] %v2187_v48  ;;  %v2189_v4 = vcombine.high %v2187_v48, %v2187_v48  ;;  %v2196_v3 = vrot.slane %v2187_v48, %v4863_v5 }
 0x493   : > { %v2982_v51 = vrot.slane %v2973_v49, %v4863_v5  ;;  %v5455_v52 = vld [vmem:[#allocation8] sm:$0x3f]  ;;  %v2975_v8 = vcombine.high %v2973_v49, %v2973_v49  ;;  %v2939_v16 = vcombine.low %v2973_v49, %v2973_v49 }
 0x494   : > { %v5457_v37 = vld [vmem:[#allocation8] sm:$0x3f]  ;;  %v5463_v57 = vrot.slane %v5455_v52, %v4863_v5  ;;  %v2203_v13 = vrot.slane %v2189_v4, %v4863_v5  ;;  %v2204_v23 = vcombine.high %v2196_v3, %v2196_v3 }
 0x495   : > { %2992 = vrot.lane.b32.xlu0 %v2982_v51, %s6465_s19  ;;  %2922 = vrot.lane.b32.xlu1 %v2982_v51, %s6497_s25  ;;  %v2747_v53 = vrot.slane %v5457_v37, %v4863_v5  ;;  %v2699_v50 = vld [vmem:[#allocation8] sm:$0x3f]  ;;  %s6505_s19 = smov 89   ;;  %v5538_v19 = vrot.slane %v2975_v8, %v4863_v5  ;;  %v2846_v9 = vcombine.high %v2982_v51, %v2982_v51 }
 0x496   : > { %v5471_v55 = vrot.slane %v2699_v50, %v4863_v5  ;;  %v5473_v56 = vld [vmem:[#allocation8] sm:$0x3f]  ;;  %2210 = vst.msk [vmem:[#allocation4 + $0x10] sm:$0x3] %vm491_vm5, %v2203_v13  ;;  %2209 = vst [vmem:[#allocation4 + $0x8] sm:$0x3] %v2204_v23  ;;  %v5560_v22 = vrot.slane %v2939_v16, %v4863_v5  ;;  %v2918_v24 = vcombine.low %v2982_v51, %v2982_v51 }
 0x497   : > { %v5475_v40 = vld [vmem:[#allocation8] sm:$0x3f]  ;;  %v5482_v58 = vrot.slane %v5473_v56, %v4863_v5  ;;  %v2701_v44 = vcombine.high %v2699_v50, %v2699_v50  ;;  %v2733_v30 = vcombine.low %v5457_v37, %v5457_v37  ;;  %v2780_v35 = vcombine.low %v5463_v57, %v5463_v57 }
 0x498   : > { %v2617_v6 = vrot.slane %v5475_v40, %v4863_v5  ;;  %v5486_v59 = vld [vmem:[#allocation8] sm:$0x3f]  ;;  %v2716_v31 = vcombine.high %v5471_v55, %v5471_v55  ;;  %v2603_v48 = vcombine.low %v5475_v40, %v5475_v40 }
 0x499   : > { %2888 = vrot.lane.b32.xlu0 %v2982_v51, %s6498_s26  ;;  %2848 = vrot.lane.b32.xlu1 %v2982_v51, %s6499_s22  ;;  %v5488_v60 = vld [vmem:[#allocation8] sm:$0x3f]  ;;  %v5495_v61 = vrot.slane %v5486_v59, %v4863_v5  ;;  %v2715_v27 = vrot.slane %v2701_v44, %v4863_v5  ;;  %v5578_v11 = vrot.slane %v2733_v30, %v4863_v5 }
 0x49a   : > { %v2487_v42 = vrot.slane %v5488_v60, %v4863_v5  ;;  %v5499_v62 = vld [vmem:[#allocation8] sm:$0x3f]  ;;  %v2571_v33 = vcombine.high %v5486_v59, %v5486_v59  ;;  %v5605_v49 = vrot.slane %v2603_v48, %v4863_v5  ;;  %v2473_v59 = vcombine.low %v5488_v60, %v5488_v60 }
 0x49b   : > { %v5501_v63 = vld [vmem:[#allocation8] sm:$0x3f]  ;;  %v5508_v0 = vrot.slane %v5499_v62, %v4863_v5 }
 0x49c   : > { %v2357_v1 = vrot.slane %v5501_v63, %v4863_v5  ;;  %v5512_v2 = vld [vmem:[#allocation8] sm:$0x3f]  ;;  %v2585_v39 = vrot.slane %v2571_v33, %v4863_v5  ;;  %v2343_v13 = vcombine.low %v5501_v63, %v5501_v63 }
 0x49d   : > { %2784 = vrot.lane.b32.xlu0 %v5463_v57, %s6500_s21  ;;  %2753 = vrot.lane.b32.xlu1 %v2747_v53, %s6501_s20  ;;  %v5514_v45 = vld [vmem:[#allocation8] sm:$0x3f]  ;;  %v5522_v10 = vrot.slane %v5512_v2, %v4863_v5  ;;  %v2586_v57 = vcombine.high %v5495_v61, %v5495_v61 }
 0x49e   : > { %v2227_v12 = vrot.slane %v5514_v45, %v4863_v5  ;;  %v5527_v25 = vld [vmem:[#allocation8] sm:$0x3f] }
 0x49f   : > { %v5535_v14 = vrot.slane %v5527_v25, %v4863_v5  ;;  %v5540_v21 = vld [vmem:[#allocation8] sm:$0x3f]  ;;  %v2456_v60 = vcombine.high %v5522_v10, %v5522_v10 }
 0x4a0   : > { %v5548_v15 = vrot.slane %v5540_v21, %v4863_v5  ;;  %v5550_v17 = vld [vmem:[#allocation8] sm:$0x3f] }
 0x4a1   : > { %2962 = vrot.lane.b32.xlu1 %v2982_v51, %s6502_s23  ;;  %2717 = vrot.lane.b32.xlu0 %v5471_v55, %s6503_s16  ;;  %v5557_v20 = vrot.slane %v5550_v17, %v4863_v5  ;;  %v2796_v26 = vld [vmem:[#allocation8] sm:$0x3f]  ;;  %v2441_v51 = vcombine.high %v5512_v2, %v5512_v2 }
 0x4a2   : > { %v2812_v28 = vrot.slane %v2796_v26, %v4863_v5  ;;  %v2798_v32 = vcombine.low %v2796_v26, %v2796_v26  ;;  %v2666_v34 = vld [vmem:[#allocation8] sm:$0x3f]  ;;  %v2326_v63 = vcombine.high %v5548_v15, %v5548_v15  ;;  %v2882_v26 = vcombine.high %v5560_v22, %v5560_v22 }
 0x4a3   : > { %v2682_v41 = vrot.slane %v2666_v34, %v4863_v5  ;;  %v2536_v37 = vld [vmem:[#allocation8] sm:$0x3f]  ;;  %v2455_v53 = vrot.slane %v2441_v51, %v4863_v5  ;;  %v2668_v50 = vcombine.low %v2666_v34, %v2666_v34 }
 0x4a4   : > { %v2814_v29 = vcombine.low %v2812_v28, %v2812_v28  ;;  %v5591_v36 = vrot.slane %v2798_v32, %v4863_v5  ;;  %v2552_v55 = vrot.slane %v2536_v37, %v4863_v5  ;;  %v2406_v2 = vld [vmem:[#allocation8] sm:$0x3f]  ;;  %v2538_v3 = vcombine.low %v2536_v37, %v2536_v37 }
 0x4a5   : > { %2654 = vrot.lane.b32.xlu0 %v5482_v58, %s6504_s18  ;;  %2623 = vrot.lane.b32.xlu1 %v2617_v6, %s6505_s19  ;;  %v2684_v46 = vcombine.low %v2682_v41, %v2682_v41  ;;  %v5620_v40 = vrot.slane %v2668_v50, %v4863_v5  ;;  %v2276_v23 = vld [vmem:[#allocation8] sm:$0x3f] }
 0x4a6   : > { %v2554_v6 = vcombine.low %v2552_v55, %v2552_v55  ;;  %v5644_v8 = vrot.slane %v2538_v3, %v4863_v5  ;;  %v2278_v28 = vcombine.low %v2276_v23, %v2276_v23  ;;  %v2813_v34 = vcombine.low %v5591_v36, %v5591_v36 }
 0x4a7   : > { %v2683_v37 = vcombine.low %v5620_v40, %v5620_v40 }
 0x4a8   : > { %v5684_v30 = vrot.slane %v2278_v28, %v4863_v5 }
 0x4a9   : > { %2587 = vrot.lane.b32.xlu0 %v5495_v61, %s6469_s28  ;;  %2493 = vrot.lane.b32.xlu1 %v2487_v42, %s6506_s24  ;;  %s6507_s28 = smov 107   ;;  %v2650_v61 = vcombine.low %v5482_v58, %v5482_v58  ;;  %v5630_v42 = vrot.slane %v2473_v59, %v4863_v5  ;;  %v2422_v58 = vrot.slane %v2406_v2, %v4863_v5 }
 0x4aa   : > { %v2553_v59 = vcombine.low %v5644_v8, %v5644_v8 }
 0x4ad   : > { %2524 = vrot.lane.b32.xlu0 %v5508_v0, %s6473_s15  ;;  %2363 = vrot.lane.b32.xlu1 %v2357_v1, %s6471_s27  ;;  %s6508_s27 = smov 109   ;;  %s6509_s15 = smov 52   ;;  %v2311_v1 = vcombine.high %v5540_v21, %v5540_v21  ;;  %v5654_v21 = vrot.slane %v2343_v13, %v4863_v5 }
 0x4af   : > { %v2325_v4 = vrot.slane %v2311_v1, %v4863_v5 }
 0x4b1   : > { %2457 = vrot.lane.b32.xlu0 %v5522_v10, %s6507_s28  ;;  %2233 = vrot.lane.b32.xlu1 %v2227_v12, %s6475_s17  ;;  %s6510_s17 = smov 124   ;;  %v2424_v12 = vcombine.low %v2422_v58, %v2422_v58  ;;  %v2520_v10 = vcombine.low %v5508_v0, %v5508_v0  ;;  %v2765_v0 = vcombine.high %v5455_v52, %v5455_v52 }
 0x4b2   : > { %v2488_v58 = vcombine.high %v5630_v42, %v5630_v42 }
 0x4b3   : > { %v2779_v52 = vrot.slane %v2765_v0, %v4863_v5  ;;  %v2293_v0 = vcombine.low %v5684_v30, %v5684_v30 }
 0x4b5   : > { %2394 = vrot.lane.b32.xlu0 %v5535_v14, %s6508_s27  ;;  %2996 = vrot.lane.b32.xlu1 %v5538_v19, %s6509_s15 }
 0x4b9   : > { %2327 = vrot.lane.b32.xlu0 %v5548_v15, %s6510_s17  ;;  %2850 = vrot.lane.b32.xlu1 %v2846_v9, %s6499_s22  ;;  %v2390_v15 = vcombine.low %v5535_v14, %v5535_v14  ;;  %v2213_v14 = vcombine.low %v5514_v45, %v5514_v45  ;;  %v2505_v45 = vcombine.high %v5499_v62, %v5499_v62 }
 0x4ba   : > { %v2954_v62 = vcombine.low %v5560_v22, %v5560_v22 }
 0x4bd   : > { %2264 = vrot.lane.b32.xlu0 %v5557_v20, %s6511_s0  ;;  %2958 = vrot.lane.b32.xlu1 %v5560_v22, %s6502_s23 }
 0x4c1   : > { %2994 = vrot.lane.b32.xlu0 %v2846_v9, %s6509_s15  ;;  %2920 = vrot.lane.b32.xlu1 %v2918_v24, %s6497_s25 }
 0x4c5   : > { %2852 = vrot.lane.b32.xlu0 %v5538_v19, %s6499_s22  ;;  %2721 = vrot.lane.b32.xlu1 %v2715_v27, %s6503_s16  ;;  %v2991_v27 = vcombine.high %v5538_v19, %v5538_v19 }
 0x4c9   : > { %2960 = vrot.lane.b32.xlu0 %v2918_v24, %s6502_s23  ;;  %2819 = vrot.lane.b32.xlu1 %v2814_v29, %s6512_s2  ;;  %v2408_v24 = vcombine.low %v2406_v2, %v2406_v2  ;;  %v2635_v29 = vcombine.high %v5473_v56, %v5473_v56  ;;  %v5698_v56 = vrot.slane %v2213_v14, %v4863_v5 }
 0x4cb   : > { %v5667_v44 = vrot.slane %v2408_v24, %v4863_v5 }
 0x4cd   : > { %2884 = vrot.lane.b32.xlu0 %v5560_v22, %s6498_s26  ;;  %2749 = vrot.lane.b32.xlu1 %v5578_v11, %s6501_s20  ;;  %v2748_v22 = vcombine.high %v5578_v11, %v5578_v11  ;;  %v2245_v11 = vcombine.high %v5550_v17, %v5550_v17  ;;  %v2423_v17 = vcombine.low %v5667_v44, %v5667_v44 }
 0x4d1   : > { %2719 = vrot.lane.b32.xlu0 %v2716_v31, %s6503_s16  ;;  %2890 = vrot.lane.b32.xlu1 %v2846_v9, %s6498_s26  ;;  %s6514_s16 = smov 74   ;;  %v2292_v9 = vrot.slane %v2276_v23, %v4863_v5  ;;  %v2781_v31 = vcombine.low %v2779_v52, %v2779_v52 }
 0x4d3   : > { %v2294_v16 = vcombine.low %v2292_v9, %v2292_v9  ;;  %v2260_v9 = vcombine.low %v5557_v20, %v5557_v20 }
 0x4d5   : > { %2817 = vrot.lane.b32.xlu0 %v5591_v36, %s6512_s2  ;;  %2591 = vrot.lane.b32.xlu1 %v2585_v39, %s6513_s3  ;;  %v2649_v39 = vrot.slane %v2635_v29, %v4863_v5  ;;  %v2919_v36 = vcombine.low %v5538_v19, %v5538_v19 }
 0x4d9   : > { %2782 = vrot.lane.b32.xlu0 %v2780_v35, %s6500_s21  ;;  %2689 = vrot.lane.b32.xlu1 %v2684_v46, %s6514_s16  ;;  %v2651_v46 = vcombine.low %v2649_v39, %v2649_v39 }
 0x4dd   : > { %2926 = vrot.lane.b32.xlu0 %v5538_v19, %s6497_s25  ;;  %2619 = vrot.lane.b32.xlu1 %v5605_v49, %s6505_s19  ;;  %v2375_v19 = vcombine.high %v5527_v25, %v5527_v25 }
 0x4df   : > { %v2389_v25 = vrot.slane %v2375_v19, %v4863_v5 }
 0x4e1   : > { %2589 = vrot.lane.b32.xlu0 %v2586_v57, %s6513_s3  ;;  %2461 = vrot.lane.b32.xlu1 %v2455_v53, %s6507_s28  ;;  %v2519_v57 = vrot.slane %v2505_v45, %v4863_v5  ;;  %v2391_v2 = vcombine.low %v2389_v25, %v2389_v25 }
 0x4e3   : > { %v2521_v55 = vcombine.low %v2519_v57, %v2519_v57 }
 0x4e5   : > { %2687 = vrot.lane.b32.xlu0 %v5620_v40, %s6514_s16  ;;  %2559 = vrot.lane.b32.xlu1 %v2554_v6, %s6515_s4 }
 0x4e9   : > { %2652 = vrot.lane.b32.xlu0 %v2650_v61, %s6504_s18  ;;  %2489 = vrot.lane.b32.xlu1 %v5630_v42, %s6506_s24  ;;  %v2358_v42 = vcombine.high %v5654_v21, %v5654_v21 }
 0x4ed   : > { %2459 = vrot.lane.b32.xlu0 %v2456_v60, %s6507_s28  ;;  %2331 = vrot.lane.b32.xlu1 %v2325_v4, %s6510_s17  ;;  %s6517_s28 = smov 92   ;;  %v2618_v60 = vcombine.high %v5605_v49, %v5605_v49 }
 0x4f1   : > { %2557 = vrot.lane.b32.xlu0 %v5644_v8, %s6515_s4  ;;  %2429 = vrot.lane.b32.xlu1 %v2424_v12, %s6516_s5  ;;  %v2259_v8 = vrot.slane %v2245_v11, %v4863_v5 }
 0x4f3   : > { %v2261_v13 = vcombine.low %v2259_v8, %v2259_v8 }
 0x4f5   : > { %2522 = vrot.lane.b32.xlu0 %v2520_v10, %s6517_s28  ;;  %2359 = vrot.lane.b32.xlu1 %v5654_v21, %s6518_s29  ;;  %v3031_v21 = vld [vmem:[%s6392_s7] sm:$0xff] }
 0x4f9   : > { %2329 = vrot.lane.b32.xlu0 %v2326_v63, %s6510_s17  ;;  %2299 = vrot.lane.b32.xlu1 %v2294_v16, %s6519_s14  ;;  %v2228_v63 = vcombine.high %v5698_v56, %v5698_v56  ;;  %s6574_s17 = smov 38  }
 0x4fd   : > { %2427 = vrot.lane.b32.xlu0 %v5667_v44, %s6516_s5  ;;  %2886 = vrot.lane.b32.xlu1 %v2882_v26, %s6498_s26 }
 0x501   : > { %2392 = vrot.lane.b32.xlu0 %v2390_v15, %s6508_s27  ;;  %2998 = vrot.lane.b32.xlu1 %v2991_v27, %s6509_s15  ;;  %s6520_s15 = smov 127  }
 0x505   : > { %2297 = vrot.lane.b32.xlu0 %v5684_v30, %s6519_s14  ;;  %2786 = vrot.lane.b32.xlu1 %v2781_v31, %s6500_s21 }
 0x507   : > { %v5691_v32 = vpop.permute.xlu0 %2992  ;;  %v5693_v33 = vpop.permute.xlu1 %2922 }
 0x509   : > { %2815 = vrot.lane.b32.xlu1 %v2813_v34, %s6512_s2  ;;  %2229 = vrot.lane.b32.xlu0 %v5698_v56, %s6520_s15 }
 0x50b   : > { %v5706_v41 = vpop.permute.xlu0 %2888  ;;  %v5708_v35 = vpop.permute.xlu1 %2848 }
 0x50d   : > { %2656 = vrot.lane.b32.xlu1 %v2651_v46, %s6504_s18  ;;  %2924 = vrot.lane.b32.xlu0 %v2919_v36, %s6497_s25  ;;  %s4646_s18 = smul.u32 6, %s6638_s30  ;;  %s6635_s25 = sld [smem:[#allocation18_spill]] }
 0x50f   : > { %v5714_v48 = vpop.permute.xlu0 %2784  ;;  %v5716_v51 = vpop.permute.xlu1 %2753 }
 0x510   : > { %2762 = vst.msk [vmem:[#allocation4 + $0x70] sm:$0xc] %vm525_vm9, %v5716_v51 }
 0x511   : > { %2685 = vrot.lane.b32.xlu1 %v2683_v37, %s6514_s16  ;;  %2956 = vrot.lane.b32.xlu0 %v2954_v62, %s6502_s23  ;;  %s6596_s23 = smov 19  }
 0x513   : > { %v5729_v53 = vpop.permute.xlu1 %2962  ;;  %v5731_v50 = vpop.permute.xlu0 %2717  ;;  %s467_s26 = scalar_lea.vmem %s6635_s25, %s4646_s18 }
 0x515   : > { %2526 = vrot.lane.b32.xlu1 %v2521_v55, %s6517_s28  ;;  %2751 = vrot.lane.b32.xlu0 %v2748_v22, %s6501_s20 }
 0x517   : > { %v5737_v40 = vpop.permute.xlu0 %2654  ;;  %v5739_v6 = vpop.permute.xlu1 %2623 }
 0x518   : > { %2632 = vst.msk [vmem:[#allocation4 + $0x58] sm:$0xc] %vm525_vm9, %v5739_v6 }
 0x519   : > { %2555 = vrot.lane.b32.xlu1 %v2553_v59, %s6515_s4  ;;  %2854 = vrot.lane.b32.xlu0 %v2991_v27, %s6499_s22 }
 0x51b   : > { %v5750_v61 = vpop.permute.xlu0 %2587  ;;  %v5752_v1 = vpop.permute.xlu1 %2493 }
 0x51c   : > { %2502 = vst.msk [vmem:[#allocation4 + $0x40] sm:$0xc] %vm525_vm9, %v5752_v1 }
 0x51d   : > { %2396 = vrot.lane.b32.xlu1 %v2391_v2, %s6508_s27  ;;  %2621 = vrot.lane.b32.xlu0 %v2618_v60, %s6505_s19 }
 0x51f   : > { %v5760_v4 = vpop.permute.xlu0 %2524  ;;  %v5762_v3 = vpop.permute.xlu1 %2363 }
 0x520   : > { %2372 = vst.msk [vmem:[#allocation4 + $0x28] sm:$0xc] %vm525_vm9, %v5762_v3 }
 0x521   : > { %2425 = vrot.lane.b32.xlu1 %v2423_v17, %s6516_s5  ;;  %2491 = vrot.lane.b32.xlu0 %v2488_v58, %s6506_s24 }
 0x523   : > { %v5775_v49 = vpop.permute.xlu0 %2457  ;;  %v5777_v12 = vpop.permute.xlu1 %2233 }
 0x524   : > { %2242 = vst.msk [vmem:[#allocation4 + $0x10] sm:$0xc] %vm525_vm9, %v5777_v12 }
 0x525   : > { %2266 = vrot.lane.b32.xlu1 %v2261_v13, %s6511_s0  ;;  %2361 = vrot.lane.b32.xlu0 %v2358_v42, %s6518_s29 }
 0x527   : > { %v5785_v23 = vpop.permute.xlu0 %2394  ;;  %v5787_v10 = vpop.permute.xlu1 %2996 }
 0x529   : > { %2262 = vrot.lane.b32.xlu1 %v2260_v9, %s6511_s0  ;;  %2231 = vrot.lane.b32.xlu0 %v2228_v63, %s6520_s15 }
 0x52b   : > { %v5798_v16 = vpop.permute.xlu0 %2327  ;;  %v2851_v24 = vpop.permute.xlu1 %2850 }
 0x52c   : > { %v2856_v20 = vsel %vm6521_vm11, %v5708_v35, %v2851_v24 }
 0x52d   : > { %2862 = vst [vmem:[#allocation4 + $0x78] sm:$0x3] %v2856_v20  ;;  %3034 = vperm.xlu1 %4685, %v3031_v21   ;;  %2295 = vrot.lane.b32.xlu0 %v2293_v0, %s6519_s14 }
 0x52f   : > { %v5805_v44 = vpop.permute.xlu0 %2264  ;;  %v5807_v26 = vpop.permute.xlu1 %2958 }
 0x533   : > { %v2995_v15 = vpop.permute.xlu0 %2994  ;;  %v2921_v27 = vpop.permute.xlu1 %2920 }
 0x534   : > { %v3000_v28 = vsel %vm6522_vm7, %v5691_v32, %v2995_v15  ;;  %v3001_v52 = vsel %vm6523_vm0, %v2995_v15, %v5787_v10  ;;  %v2928_v29 = vsel %vm6524_vm4, %v2921_v27, %v5693_v33  ;;  %vm6525_vm7 = vcmask 433152  }
 0x535   : > { %3006 = vst [vmem:[#allocation4 + $0x90] sm:$0x3] %v3000_v28  ;;  %3007 = vst [vmem:[#allocation4 + $0x98] sm:$0x3] %v3001_v52  ;;  %vm6527_vm4 = vcmask 556038  }
 0x536   : > { %2934 = vst [vmem:[#allocation4 + $0x78] sm:$0x30] %v2928_v29  ;;  %vm6526_vm0 = vmmov %vm6525_vm7 }
 0x537   : > { %v5815_v30 = vpop.permute.xlu0 %2852  ;;  %v2722_v31 = vpop.permute.xlu1 %2721  ;;  %vm6528_vm12 = vmmov %vm6527_vm4 }
 0x538   : > { %v2857_v14 = vsel %vm6521_vm11, %v2851_v24, %v5815_v30  ;;  %2730 = vst.msk [vmem:[#allocation4 + $0x70] sm:$0x3] %vm491_vm5, %v2722_v31  ;;  %vm6530_vm11 = vmmov %vm6529_vm13 }
 0x539   : > { %2863 = vst [vmem:[#allocation4 + $0x80] sm:$0x3] %v2857_v14 }
 0x53b   : > { %v2961_v34 = vpop.permute.xlu0 %2960  ;;  %v2820_v32 = vpop.permute.xlu1 %2819 }
 0x53c   : > { %v2965_v56 = vsel %vm6525_vm7, %v5807_v26, %v2961_v34  ;;  %v2966_v39 = vsel %vm6526_vm0, %v2961_v34, %v5729_v53  ;;  %2828 = vst.msk [vmem:[#allocation4 + $0x70] sm:$0xc0] %vm6527_vm4, %v2820_v32  ;;  %v3028_v45 = vld [vmem:[#allocation4 + $0x98] sm:$0x3]  ;;  %v3027_v35 = vld [vmem:[#allocation4 + $0x90] sm:$0x3] }
 0x53d   : > { %2971 = vst [vmem:[#allocation4 + $0x80] sm:$0xc0] %v2965_v56  ;;  %2972 = vst.msk [vmem:[#allocation4 + $0x88] sm:$0xc0] %vm6528_vm12, %v2966_v39  ;;  %4533 = vmatprep.subr.msk.mxu0 %vm6529_vm13, %v3028_v45  ;;  %vm6531_vm7 = vcmask 596992   ;;  %vm6533_vm4 = vcmask 449536  }
 0x53e   : > { %4534 = vmatpush1.msk.msra.mxu0 %vm6530_vm11, %v3027_v35  ;;  %vm6532_vm0 = vmmov %vm6531_vm7  ;;  %vm6534_vm13 = vcmask 572416   ;;  %vm6535_vm12 = vcmask 580608   ;;  %vm6536_vm11 = vcmask 556038  }
 0x53f   : > { %v5828_v46 = vpop.permute.xlu0 %2884  ;;  %v5830_v36 = vpop.permute.xlu1 %2749 }
 0x543   : > { %v2720_v37 = vpop.permute.xlu0 %2719  ;;  %v2891_v62 = vpop.permute.xlu1 %2890 }
 0x544   : > { %v2723_v57 = vsel %vm6531_vm7, %v5731_v50, %v2720_v37  ;;  %v2724_v19 = vsel %vm6532_vm0, %v2720_v37, %v2722_v31  ;;  %v2894_v53 = vsel %vm6533_vm4, %v5706_v41, %v2891_v62  ;;  %vm6538_vm7 = vmmov %vm6536_vm11  ;;  %vm6539_vm0 = vcmask 719872  }
 0x545   : > { %2728 = vst [vmem:[#allocation4 + $0x60] sm:$0x3] %v2723_v57  ;;  %2729 = vst [vmem:[#allocation4 + $0x68] sm:$0x3] %v2724_v19  ;;  %vm6540_vm4 = vcmask 875520  }
 0x546   : > { %2900 = vst.msk [vmem:[#allocation4 + $0x88] sm:$0xc] %vm525_vm9, %v2894_v53  ;;  %vm6537_vm9 = vcmask 605184  }
 0x547   : > { %v5838_v55 = vpop.permute.xlu0 %2817  ;;  %v2592_v22 = vpop.permute.xlu1 %2591 }
 0x548   : > { %v2822_v59 = vsel %vm6534_vm13, %v5838_v55, %v2820_v32  ;;  %2600 = vst.msk [vmem:[#allocation4 + $0x58] sm:$0x3] %vm491_vm5, %v2592_v22  ;;  %vm6541_vm13 = vmmov %vm6540_vm4 }
 0x549   : > { %2827 = vst [vmem:[#allocation4 + $0x68] sm:$0xc0] %v2822_v59 }
 0x54b   : > { %v2783_v25 = vpop.permute.xlu0 %2782  ;;  %v2690_v50 = vpop.permute.xlu1 %2689 }
 0x54c   : > { %v2788_v11 = vsel %vm6535_vm12, %v2783_v25, %v5714_v48  ;;  %2698 = vst.msk [vmem:[#allocation4 + $0x58] sm:$0xc0] %vm6536_vm11, %v2690_v50  ;;  %vm6542_vm12 = vmmov %vm6538_vm7  ;;  %vm6543_vm11 = vcmask 1014784  }
 0x54d   : > { %2793 = vst [vmem:[#allocation4 + $0x60] sm:$0x30] %v2788_v11 }
 0x54f   : > { %v5846_v2 = vpop.permute.xlu0 %2926  ;;  %v5848_v60 = vpop.permute.xlu1 %2619 }
 0x553   : > { %v2590_v17 = vpop.permute.xlu0 %2589  ;;  %v2462_v58 = vpop.permute.xlu1 %2461 }
 0x554   : > { %v2593_v8 = vsel %vm889_vm15, %v5750_v61, %v2590_v17  ;;  %v2594_v13 = vsel %vm889_vm15, %v2590_v17, %v2592_v22  ;;  %2470 = vst.msk [vmem:[#allocation4 + $0x40] sm:$0x3] %vm491_vm5, %v2462_v58 }
 0x555   : > { %2598 = vst [vmem:[#allocation4 + $0x48] sm:$0x3] %v2593_v8  ;;  %2599 = vst [vmem:[#allocation4 + $0x50] sm:$0x3] %v2594_v13 }
 0x557   : > { %v5854_v42 = vpop.permute.xlu0 %2687  ;;  %v2560_v9 = vpop.permute.xlu1 %2559 }
 0x558   : > { %v2692_v63 = vsel %vm6537_vm9, %v5854_v42, %v2690_v50  ;;  %2568 = vst.msk [vmem:[#allocation4 + $0x40] sm:$0xc0] %vm6538_vm7, %v2560_v9  ;;  %vm6544_vm9 = vmmov %vm6543_vm11 }
 0x559   : > { %2697 = vst [vmem:[#allocation4 + $0x50] sm:$0xc0] %v2692_v63 }
 0x55b   : > { %v2653_v21 = vpop.permute.xlu0 %2652  ;;  %v5859_v24 = vpop.permute.xlu1 %2489 }
 0x55c   : > { %v2658_v61 = vsel %vm6539_vm0, %v2653_v21, %v5737_v40  ;;  %vm6545_vm0 = vcmask 449536  }
 0x55d   : > { %2663 = vst [vmem:[#allocation4 + $0x48] sm:$0x30] %v2658_v61 }
 0x55f   : > { %v2460_v0 = vpop.permute.xlu0 %2459  ;;  %v2332_v20 = vpop.permute.xlu1 %2331 }
 0x560   : > { %v2463_v15 = vsel %vm6540_vm4, %v5775_v49, %v2460_v0  ;;  %v2464_v27 = vsel %vm6541_vm13, %v2460_v0, %v2462_v58  ;;  %2340 = vst.msk [vmem:[#allocation4 + $0x28] sm:$0x3] %vm491_vm5, %v2332_v20  ;;  %vm6546_vm4 = vmmov %vm6545_vm0  ;;  %vm6547_vm13 = vcmask 424960  }
 0x561   : > { %2468 = vst [vmem:[#allocation4 + $0x30] sm:$0x3] %v2463_v15  ;;  %2469 = vst [vmem:[#allocation4 + $0x38] sm:$0x3] %v2464_v27 }
 0x563   : > { %v5867_v28 = vpop.permute.xlu0 %2557  ;;  %v2430_v52 = vpop.permute.xlu1 %2429 }
 0x564   : > { %v2562_v29 = vsel %vm856_vm8, %v5867_v28, %v2560_v9  ;;  %2438 = vst.msk [vmem:[#allocation4 + $0x28] sm:$0xc0] %vm6542_vm12, %v2430_v52  ;;  %vm6548_vm12 = vcmask 1022976  }
 0x565   : > { %2567 = vst [vmem:[#allocation4 + $0x38] sm:$0xc0] %v2562_v29 }
 0x567   : > { %v2523_v31 = vpop.permute.xlu0 %2522  ;;  %v5872_v14 = vpop.permute.xlu1 %2359 }
 0x568   : > { %v2528_v49 = vsel %vm822_vm10, %v2523_v31, %v5760_v4 }
 0x569   : > { %2533 = vst [vmem:[#allocation4 + $0x30] sm:$0x30] %v2528_v49 }
 0x56b   : > { %v2330_v34 = vpop.permute.xlu0 %2329  ;;  %v2300_v32 = vpop.permute.xlu1 %2299 }
 0x56c   : > { %v2333_v56 = vsel %vm6543_vm11, %v5798_v16, %v2330_v34  ;;  %v2334_v39 = vsel %vm6544_vm9, %v2330_v34, %v2332_v20  ;;  %2308 = vst.msk [vmem:[#allocation4 + $0x10] sm:$0xc0] %vm6538_vm7, %v2300_v32  ;;  %vm6549_vm11 = vcmask 580608   ;;  %vm6550_vm9 = vcmask 553988  }
 0x56d   : > { %2338 = vst [vmem:[#allocation4 + $0x18] sm:$0x3] %v2333_v56  ;;  %2339 = vst [vmem:[#allocation4 + $0x20] sm:$0x3] %v2334_v39  ;;  %vm6551_vm7 = vcmask 572416  }
 0x56f   : > { %v5880_v45 = vpop.permute.xlu0 %2427  ;;  %v2887_v35 = vpop.permute.xlu1 %2886 }
 0x570   : > { %v2432_v37 = vsel %vm722_vm6, %v5880_v45, %v2430_v52  ;;  %v2892_v62 = vsel %vm6545_vm0, %v5828_v46, %v2887_v35  ;;  %v2893_v57 = vsel %vm6546_vm4, %v2887_v35, %v5706_v41  ;;  %vm6552_vm0 = vcmask 1041408  }
 0x571   : > { %2437 = vst [vmem:[#allocation4 + $0x20] sm:$0xc0] %v2432_v37  ;;  %2898 = vst [vmem:[#allocation4 + $0x78] sm:$0xc] %v2892_v62  ;;  %vm6553_vm4 = vcmask 719872  }
 0x572   : > { %2899 = vst [vmem:[#allocation4 + $0x80] sm:$0xc] %v2893_v57 }
 0x573   : > { %v2393_v16 = vpop.permute.xlu0 %2392  ;;  %v2999_v19 = vpop.permute.xlu1 %2998 }
 0x574   : > { %v2398_v53 = vsel %vm688_vm3, %v2393_v16, %v5785_v23  ;;  %v3002_v22 = vsel %vm6547_vm13, %v5787_v10, %v2999_v19  ;;  %vm6554_vm13 = vmmov %vm6550_vm9 }
 0x575   : > { %2403 = vst [vmem:[#allocation4 + $0x18] sm:$0x30] %v2398_v53  ;;  %3008 = vst.msk [vmem:[#allocation4 + $0xa0] sm:$0x3] %vm491_vm5, %v3002_v22 }
 0x577   : > { %v5893_v59 = vpop.permute.xlu0 %2297  ;;  %v2787_v46 = vpop.permute.xlu1 %2786 }
 0x578   : > { %v2302_v41 = vsel %vm6548_vm12, %v5893_v59, %v2300_v32  ;;  %v2789_v25 = vsel %vm6549_vm11, %v5714_v48, %v2787_v46  ;;  %2795 = vst.msk [vmem:[#allocation4 + $0x70] sm:$0x30] %vm6550_vm9, %v2787_v46  ;;  %vm6555_vm12 = vcmask 441344  }
 0x579   : > { %2307 = vst [vmem:[#allocation4 + $0x8] sm:$0xc0] %v2302_v41  ;;  %2794 = vst [vmem:[#allocation4 + $0x68] sm:$0x30] %v2789_v25 }
 0x57a   : > { %vm6556_vm11 = vmmov %vm6555_vm12 }
 0x57b   : > { %v2816_v50 = vpop.permute.xlu1 %2815  ;;  %v5900_v11 = vpop.permute.xlu0 %2229 }
 0x57c   : > { %v2821_v10 = vsel %vm6551_vm7, %v2816_v50, %v5838_v55  ;;  %v3029_v17 = vld [vmem:[#allocation4 + $0xa0] sm:$0x3]  ;;  %vm6557_vm7 = vcmask 605184  }
 0x57d   : > { %2826 = vst [vmem:[#allocation4 + $0x60] sm:$0xc0] %v2821_v10  ;;  %4604 = vmatpush3.msk.msra.mxu1 %vm6552_vm0, %v3029_v17  ;;  %vm6558_vm0 = vcmask 433152  }
 0x57e   : > { %4605 = vmatprep.subr.mxu1 %v4764_v38 }
 0x57f   : > { %v2657_v58 = vpop.permute.xlu1 %2656  ;;  %v2925_v8 = vpop.permute.xlu0 %2924 }
 0x580   : > { %v2659_v48 = vsel %vm6553_vm4, %v5737_v40, %v2657_v58  ;;  %2665 = vst.msk [vmem:[#allocation4 + $0x58] sm:$0x30] %vm6554_vm13, %v2657_v58  ;;  %v2929_v13 = vsel %vm6555_vm12, %v5693_v33, %v2925_v8  ;;  %v2930_v9 = vsel %vm6556_vm11, %v2925_v8, %v5846_v2  ;;  %vm6559_vm4 = vmmov %vm6550_vm9  ;;  %vm6560_vm13 = vcmask 588800  }
 0x581   : > { %2664 = vst [vmem:[#allocation4 + $0x50] sm:$0x30] %v2659_v48  ;;  %2935 = vst [vmem:[#allocation4 + $0x80] sm:$0x30] %v2929_v13  ;;  %vm6562_vm11 = vcmask 457728  }
 0x582   : > { %2936 = vst.msk [vmem:[#allocation4 + $0x88] sm:$0x30] %vm6550_vm9, %v2930_v9  ;;  %vm6561_vm12 = vmmov %vm6560_vm13 }
 0x583   : > { %v2686_v55 = vpop.permute.xlu1 %2685  ;;  %v2957_v63 = vpop.permute.xlu0 %2956  ;;  %vm6563_vm9 = vmmov %vm6559_vm4 }
 0x584   : > { %v2691_v21 = vsel %vm6557_vm7, %v2686_v55, %v5854_v42  ;;  %v2964_v40 = vsel %vm6558_vm0, %v2957_v63, %v5807_v26  ;;  %vm6564_vm7 = vcmask 728064  }
 0x585   : > { %2696 = vst [vmem:[#allocation4 + $0x48] sm:$0xc0] %v2691_v21  ;;  %2970 = vst [vmem:[#allocation4 + $0x78] sm:$0xc0] %v2964_v40 }
 0x586   : > { %vm6565_vm0 = vmmov %vm6564_vm7 }
 0x587   : > { %v2527_v61 = vpop.permute.xlu1 %2526  ;;  %v2752_v0 = vpop.permute.xlu0 %2751  ;;  %v3020_v57 = vld [vmem:[#allocation4 + $0x58] sm:$0xff] }
 0x588   : > { %v2529_v33 = vsel %vm822_vm10, %v5760_v4, %v2527_v61  ;;  %2535 = vst.msk [vmem:[#allocation4 + $0x40] sm:$0x30] %vm6559_vm4, %v2527_v61  ;;  %v2755_v2 = vsel %vm6560_vm13, %v5830_v36, %v2752_v0  ;;  %v2756_v20 = vsel %vm6561_vm12, %v2752_v0, %v5716_v51  ;;  %v3025_v15 = vld [vmem:[#allocation4 + $0x80] sm:$0xff]  ;;  %vm6569_vm12 = vcmask 1039360  }
 0x589   : > { %2534 = vst [vmem:[#allocation4 + $0x38] sm:$0x30] %v2529_v33  ;;  %2760 = vst [vmem:[#allocation4 + $0x60] sm:$0xc] %v2755_v2  ;;  %3069 = vmatprep.subr.mxu0 %v3025_v15 }
 0x58a   : > { %2761 = vst [vmem:[#allocation4 + $0x68] sm:$0xc] %v2756_v20 }
 0x58b   : > { %v2556_v26 = vpop.permute.xlu1 %2555  ;;  %v2855_v42 = vpop.permute.xlu0 %2854 }
 0x58c   : > { %v2561_v27 = vsel %vm856_vm8, %v2556_v26, %v5867_v28  ;;  %v2858_v4 = vsel %vm6562_vm11, %v5815_v30, %v2855_v42  ;;  %v3024_v52 = vld [vmem:[#allocation4 + $0x78] sm:$0xff]  ;;  %vm6570_vm11 = vmmov %vm6569_vm12 }
 0x58d   : > { %2566 = vst [vmem:[#allocation4 + $0x30] sm:$0xc0] %v2561_v27  ;;  %2864 = vst.msk [vmem:[#allocation4 + $0x88] sm:$0x3] %vm491_vm5, %v2858_v4  ;;  %3070 = vmatpush1.msra.mxu0 %v3024_v52 }
 0x58e   : > { %vm6566_vm5 = vmmov %vm6559_vm4  ;;  %vm6567_vm4 = vcmask 900096  }
 0x58f   : > { %v2397_v36 = vpop.permute.xlu1 %2396  ;;  %v2622_v51 = vpop.permute.xlu0 %2621  ;;  %vm6568_vm13 = vmmov %vm6567_vm4  ;;  %v3017_v19 = vld [vmem:[#allocation4 + $0x40] sm:$0xff] }
 0x590   : > { %v2399_v29 = vsel %vm688_vm3, %v5785_v23, %v2397_v36  ;;  %2405 = vst.msk [vmem:[#allocation4 + $0x28] sm:$0x30] %vm6563_vm9, %v2397_v36  ;;  %v2625_v31 = vsel %vm6564_vm7, %v5848_v60, %v2622_v51  ;;  %v2626_v28 = vsel %vm6565_vm0, %v2622_v51, %v5739_v6  ;;  %v3021_v30 = vld [vmem:[#allocation4 + $0x60] sm:$0xff]  ;;  %v3023_v6 = vld [vmem:[#allocation4 + $0x70] sm:$0xff]  ;;  %vm6571_vm9 = vcmask 1022976  }
 0x591   : > { %v3022_v49 = vld [vmem:[#allocation4 + $0x68] sm:$0xff]  ;;  %2404 = vst [vmem:[#allocation4 + $0x20] sm:$0x30] %v2399_v29  ;;  %2630 = vst [vmem:[#allocation4 + $0x48] sm:$0xc] %v2625_v31  ;;  %vm6572_vm7 = vcmask 408576  }
 0x592   : > { %2631 = vst [vmem:[#allocation4 + $0x50] sm:$0xc] %v2626_v28  ;;  %3071 = vmatprep.subr.mxu0 %v3022_v49  ;;  %vm6573_vm0 = vmmov %vm6572_vm7  ;;  %v6028_v49 = vld [vmem:[%s6393_s8] sm:$0xff] }
 0x593   : > { %3072 = vmatpush1.msra.mxu0 %v3021_v30  ;;  %v2426_v34 = vpop.permute.xlu1 %2425  ;;  %v2492_v32 = vpop.permute.xlu0 %2491  ;;  %v3425_v30 = vld [vmem:[%s6394_s9] sm:$0xff] }
 0x594   : > { %v2431_v23 = vsel %vm722_vm6, %v2426_v34, %v5880_v45  ;;  %v2495_v56 = vsel %vm788_vm14, %v5859_v24, %v2492_v32  ;;  %v2496_v60 = vsel %vm788_vm14, %v2492_v32, %v5752_v1  ;;  %v3026_v39 = vld [vmem:[#allocation4 + $0x88] sm:$0xff]  ;;  %v3426_v34 = vld [vmem:[%s6394_s9 + $0x8] sm:$0xff] }
 0x595   : > { %2436 = vst [vmem:[#allocation4 + $0x18] sm:$0xc0] %v2431_v23  ;;  %2500 = vst [vmem:[#allocation4 + $0x30] sm:$0xc] %v2495_v56  ;;  %4606 = vmatpush3.msra.mxu1 %v3026_v39 }
 0x596   : > { %2501 = vst [vmem:[#allocation4 + $0x38] sm:$0xc] %v2496_v60  ;;  %4607 = vmatprep.subr.mxu1 %v4764_v38 }
 0x597   : > { %v2267_v35 = vpop.permute.xlu1 %2266  ;;  %4608 = vmatpush3.msra.mxu1 %v3023_v6  ;;  %v2362_v37 = vpop.permute.xlu0 %2361  ;;  %v3014_v25 = vld [vmem:[#allocation4 + $0x28] sm:$0xff] }
 0x598   : > { %v2269_v45 = vsel %vm552_vm2, %v5805_v44, %v2267_v35  ;;  %2275 = vst.msk [vmem:[#allocation4 + $0x10] sm:$0x30] %vm6566_vm5, %v2267_v35  ;;  %v2365_v24 = vsel %vm6567_vm4, %v5872_v14, %v2362_v37  ;;  %v2366_v1 = vsel %vm6568_vm13, %v2362_v37, %v5762_v3  ;;  %4609 = vmatprep.subr.mxu1 %v4764_v38  ;;  %v3018_v16 = vld [vmem:[#allocation4 + $0x48] sm:$0xff] }
 0x599   : > { %v3019_v62 = vld [vmem:[#allocation4 + $0x50] sm:$0xff]  ;;  %2274 = vst [vmem:[#allocation4 + $0x8] sm:$0x30] %v2269_v45  ;;  %2370 = vst [vmem:[#allocation4 + $0x18] sm:$0xc] %v2365_v24  ;;  %4610 = vmatpush3.msra.mxu1 %v3020_v57 }
 0x59a   : > { %2371 = vst [vmem:[#allocation4 + $0x20] sm:$0xc] %v2366_v1  ;;  %3073 = vmatprep.subr.mxu0 %v3019_v62  ;;  %4611 = vmatprep.subr.mxu1 %v4764_v38 }
 0x59b   : > { %3074 = vmatpush1.msra.mxu0 %v3018_v16  ;;  %v2263_v53 = vpop.permute.xlu1 %2262  ;;  %4612 = vmatpush3.msra.mxu1 %v3017_v19  ;;  %v2232_v14 = vpop.permute.xlu0 %2231 }
 0x59c   : > { %v2268_v3 = vsel %vm552_vm2, %v2263_v53, %v5805_v44  ;;  %v2235_v22 = vsel %vm6569_vm12, %v5900_v11, %v2232_v14  ;;  %v2236_v46 = vsel %vm6570_vm11, %v2232_v14, %v5777_v12  ;;  %4613 = vmatprep.subr.mxu1 %v4764_v38  ;;  %v3015_v50 = vld [vmem:[#allocation4 + $0x30] sm:$0xff]  ;;  %v3030_v44 = vld [vmem:[%s6391_s6] sm:$0xff]  ;;  %vm6575_vm11 = vcmask 1047856  }
 0x59d   : > { %v3016_v41 = vld [vmem:[#allocation4 + $0x38] sm:$0xff]  ;;  %2273 = vst [vmem:[#allocation4] sm:$0x30] %v2268_v3  ;;  %2240 = vst [vmem:[#allocation4] sm:$0xc] %v2235_v22  ;;  %4614 = vmatpush3.msra.mxu1 %v3014_v25 }
 0x59e   : > { %2241 = vst [vmem:[#allocation4 + $0x8] sm:$0xc] %v2236_v46  ;;  %3075 = vmatprep.subr.mxu0 %v3016_v41  ;;  %4615 = vmatprep.subr.mxu1 %v4764_v38 }
 0x59f   : > { %3076 = vmatpush1.msra.mxu0 %v3015_v50  ;;  %v2296_v11 = vpop.permute.xlu0 %2295  ;;  %v3011_v10 = vld [vmem:[#allocation4 + $0x10] sm:$0xff] }
 0x5a0   : > { %v2301_v12 = vsel %vm6571_vm9, %v2296_v11, %v5893_v59  ;;  %4616 = vmatpush3.msra.mxu1 %v3011_v10  ;;  %v3012_v58 = vld [vmem:[#allocation4 + $0x18] sm:$0xff]  ;;  %vm6576_vm9 = vcmask 310272  }
 0x5a1   : > { %v3013_v17 = vld [vmem:[#allocation4 + $0x20] sm:$0xff]  ;;  %2306 = vst [vmem:[#allocation4] sm:$0xc0] %v2301_v12  ;;  %4618 = vmatmul.mubr.msk.f32.vlgmr.msra.gmra.mxu1 %vm6572_vm7, %v3030_v44  ;;  %v4538_v59 = vld [vmem:[%s6386_s1 + $0x2] ss:$8 sm:$0x7]  ;;  %vm6577_vm7 = vmmov %vm6576_vm9 }
 0x5a2   : > { %3077 = vmatprep.subr.mxu0 %v3013_v17  ;;  %vm3192_vm5 = vcmp.ne.s32.totalorder %v4538_v59, 0 }
 0x5a3   : > { %3078 = vmatpush1.msra.mxu0 %v3012_v58  ;;  %v3194_v55 = vsel %vm3192_vm5, 1, %v4765_v47 }
 0x5a4   : > { %v3198_v63 = vrot.slane %v3194_v55, %v5186_v54  ;;  %v3202_v21 = vrot.slane %v3194_v55, %v5192_v18  ;;  %v3206_v61 = vrot.slane %v3194_v55, %v5177_v7 }
 0x5a5   : > { %v3010_v8 = vld [vmem:[#allocation4 + $0x8] sm:$0xff] }
 0x5a6   : > { %3079 = vmatprep.subr.mxu0 %v3010_v8  ;;  %vm3207_vm4 = vcmp.eq.s32.totalorder %v3198_v63, 1  ;;  %vm3208_vm13 = vcmp.eq.s32.totalorder %v3202_v21, 1  ;;  %vm3209_vm12 = vcmp.eq.s32.totalorder %v3206_v61, 1 }
 0x5a8   : > { %v3009_v48 = vld [vmem:[#allocation4] sm:$0xff]  ;;  %v3035_v40 = vpop.permute.xlu1 %3034 }
 0x5a9   : > { %3080 = vmatpush1.msra.mxu0 %v3009_v48 }
 0x5aa   : > { %4535 = vmatmul.mubr.msk.f32.vlgmr.msra.gmra.mxu0 %vm6573_vm0, %v3030_v44  ;;  %vm6578_vm0 = vcmask 556032  }
 0x5ab   : > { %3507 = vmatprep.mubr.f32.mxu0 %v4764_v38  ;;  %vm6580_vm5 = vmmov %vm6578_vm0 }
 0x661   : > { %v3186_v13 = vpop.f32.mrf.mxu1 }
 0x662   : > { %v3187_v20 = vadd.f32 %v3186_v13, %v3035_v40 }
 0x663   : > { %v4619_v9 = vpop.f32.mrf.mxu1 }
 0x664   : > { %v3212_v27 = vsel %vm3209_vm12, %v3187_v20, 0.0  ;;  %vm6583_vm12 = vmmov %vm6578_vm0 }
 0x66a   : > { %v3115_v0 = vpop.f32.mrf.mxu0 }
 0x66b   : > { %v3116_v33 = vadd.f32 %v3115_v0, %v3035_v40 }
 0x66c   : > { %v3117_v2 = vpop.f32.mrf.mxu0 }
 0x66d   : > { %v3210_v15 = vsel %vm3207_vm4, %v3116_v33, 0.0  ;;  %v3118_v26 = vadd.f32 %v3117_v2, %v3035_v40  ;;  %vm6581_vm4 = vmmov %vm6578_vm0 }
 0x66e   : > { %3216 = vrot.lane.b32.xlu0 %v3210_v15, %s6574_s17 }
 0x66f   : > { %v3211_v42 = vsel %vm3208_vm13, %v3118_v26, 0.0  ;;  %vm6582_vm13 = vmmov %vm6578_vm0 }
 0x670   : > { %3218 = vrot.lane.b32.xlu1 %v3211_v42, %s6574_s17 }
 0x672   : > { %3220 = vrot.lane.b32.xlu0 %v3212_v27, %s6574_s17 }
 0x6e0   : > { %v3217_v4 = vpop.permute.xlu0 %3216 }
 0x6e1   : > { %3227 = vst.msk [vmem:[#allocation9] sm:$0xff] %vm6575_vm11, %v3217_v4  ;;  %vm6584_vm11 = vmmov %vm6578_vm0 }
 0x6e2   : > { %v3219_v52 = vpop.permute.xlu1 %3218 }
 0x6e3   : > { %v5981_v36 = vsel %vm6576_vm9, %v3217_v4, %v3219_v52  ;;  %vm6585_vm9 = vcmask 900096   ;;  %v3424_v4 = vld [vmem:[%s6393_s8 + $0x8] sm:$0xff] }
 0x6e4   : > { %v3221_v51 = vpop.permute.xlu0 %3220 }
 0x6e5   : > { %v3223_v29 = vsel %vm6577_vm7, %v3219_v52, %v3221_v51  ;;  %vm6586_vm7 = vmmov %vm6585_vm9 }
 0x6e6   : > { %3229 = vst.msk [vmem:[#allocation9 + $0x10] sm:$0xff] %vm788_vm14, %v3223_v29  ;;  %vm6579_vm14 = vcmask 588800  }
 0x6e7   : > { %4638 = vmatprep.mubr.msk.f32.mxu1 %vm6579_vm14, %v6028_v49  ;;  %vm6587_vm14 = vmmov %vm6578_vm0 }
 0x6e8   : > { %v5985_v31 = vld [vmem:[#allocation9] sm:$0xff] }
 0x6e9   : > { %3382 = vrot.lane.b32.xlu1 %v5985_v31, %s6513_s3  ;;  %3362 = vrot.lane.b32.xlu0 %v5985_v31, %s6515_s4 }
 0x6ed   : > { %3342 = vrot.lane.b32.xlu1 %v5985_v31, %s6517_s28  ;;  %3322 = vrot.lane.b32.xlu0 %v5985_v31, %s6516_s5  ;;  %v3378_v28 = vld [vmem:[#allocation9 + $0x10] sm:$0xff] }
 0x6ee   : > { %3235 = vst.msk [vmem:[#allocation5 + $0x10] sm:$0xff] %vm6578_vm0, %v3378_v28 }
 0x6f1   : > { %3302 = vrot.lane.b32.xlu1 %v5985_v31, %s6508_s27  ;;  %3282 = vrot.lane.b32.xlu0 %v5985_v31, %s6518_s29 }
 0x6f5   : > { %3262 = vrot.lane.b32.xlu1 %v5985_v31, %s6511_s0  ;;  %3386 = vrot.lane.b32.xlu0 %v3378_v28, %s6513_s3  ;;  %v3398_v51 = vld [vmem:[#allocation5 + $0x10] sm:$0xff] }
 0x6f9   : > { %3384 = vrot.lane.b32.xlu1 %v5981_v36, %s6513_s3  ;;  %3364 = vrot.lane.b32.xlu0 %v5981_v36, %s6515_s4 }
 0x6fd   : > { %3366 = vrot.lane.b32.xlu1 %v3378_v28, %s6515_s4  ;;  %3346 = vrot.lane.b32.xlu0 %v3378_v28, %s6517_s28 }
 0x701   : > { %3344 = vrot.lane.b32.xlu1 %v5981_v36, %s6517_s28  ;;  %3324 = vrot.lane.b32.xlu0 %v5981_v36, %s6516_s5 }
 0x705   : > { %3326 = vrot.lane.b32.xlu1 %v3378_v28, %s6516_s5  ;;  %3306 = vrot.lane.b32.xlu0 %v3378_v28, %s6508_s27 }
 0x709   : > { %3304 = vrot.lane.b32.xlu1 %v5981_v36, %s6508_s27  ;;  %3284 = vrot.lane.b32.xlu0 %v5981_v36, %s6518_s29 }
 0x70d   : > { %3286 = vrot.lane.b32.xlu1 %v3378_v28, %s6518_s29  ;;  %3266 = vrot.lane.b32.xlu0 %v3378_v28, %s6511_s0 }
 0x711   : > { %3264 = vrot.lane.b32.xlu1 %v5981_v36, %s6511_s0  ;;  %3244 = vrot.lane.b32.xlu0 %v5981_v36, %s6520_s15 }
 0x715   : > { %3242 = vrot.lane.b32.xlu0 %v5985_v31, %s6520_s15  ;;  %3246 = vrot.lane.b32.xlu1 %v3378_v28, %s6520_s15 }
 0x719   : > { %3429 = vperm.xlu0 %4686, %v3425_v30   ;;  %3434 = vperm.xlu1 %4685, %v3426_v34  }
 0x75b   : > { %v3383_v32 = vpop.permute.xlu1 %3382  ;;  %v3363_v23 = vpop.permute.xlu0 %3362 }
 0x75f   : > { %v3343_v56 = vpop.permute.xlu1 %3342  ;;  %v3323_v60 = vpop.permute.xlu0 %3322 }
 0x763   : > { %v3303_v39 = vpop.permute.xlu1 %3302  ;;  %v3283_v6 = vpop.permute.xlu0 %3282 }
 0x767   : > { %v6041_v35 = vpop.permute.xlu1 %3262  ;;  %v3387_v37 = vpop.permute.xlu0 %3386 }
 0x768   : > { %3395 = vst.msk [vmem:[#allocation5 + $0xd0] sm:$0xff] %vm6580_vm5, %v3387_v37  ;;  %vm6588_vm5 = vcmask 1039360  }
 0x76b   : > { %v3385_v45 = vpop.permute.xlu1 %3384  ;;  %v3365_v24 = vpop.permute.xlu0 %3364 }
 0x76c   : > { %v3388_v1 = vsel %vm889_vm15, %v3383_v32, %v3385_v45  ;;  %v3389_v62 = vsel %vm889_vm15, %v3385_v45, %v3387_v37  ;;  %v3368_v57 = vsel %vm856_vm8, %v3363_v23, %v3365_v24 }
 0x76d   : > { %3457 = vmatprep.subr.mxu0 %v3389_v62 }
 0x76e   : > { %3458 = vmatpush1.msra.mxu0 %v3388_v1 }
 0x76f   : > { %v3367_v16 = vpop.permute.xlu1 %3366  ;;  %v3347_v19 = vpop.permute.xlu0 %3346  ;;  %v3422_v53 = vld [vmem:[#allocation5 + $0xd0] sm:$0xff] }
 0x770   : > { %v3369_v14 = vsel %vm856_vm8, %v3365_v24, %v3367_v16  ;;  %3375 = vst.msk [vmem:[#allocation5 + $0xb8] sm:$0xff] %vm6581_vm4, %v3367_v16  ;;  %4620 = vmatprep.subr.mxu1 %v3422_v53  ;;  %vm6589_vm4 = vmmov %vm6578_vm0 }
 0x771   : > { %3355 = vst.msk [vmem:[#allocation5 + $0xa0] sm:$0xff] %vm6582_vm13, %v3347_v19  ;;  %4621 = vmatpush3.msra.mxu1 %v3422_v53  ;;  %3459 = vmatprep.subr.mxu0 %v3369_v14  ;;  %vm6590_vm13 = vmmov %vm6588_vm5 }
 0x772   : > { %3460 = vmatpush1.msra.mxu0 %v3368_v57 }
 0x773   : > { %v3345_v3 = vpop.permute.xlu1 %3344  ;;  %v3325_v22 = vpop.permute.xlu0 %3324 }
 0x774   : > { %v3348_v46 = vsel %vm822_vm10, %v3343_v56, %v3345_v3  ;;  %v3349_v41 = vsel %vm822_vm10, %v3345_v3, %v3347_v19  ;;  %v3328_v25 = vsel %vm722_vm6, %v3323_v60, %v3325_v22 }
 0x775   : > { %3461 = vmatprep.subr.mxu0 %v3349_v41 }
 0x776   : > { %3462 = vmatpush1.msra.mxu0 %v3348_v46 }
 0x777   : > { %v3327_v50 = vpop.permute.xlu1 %3326  ;;  %v3307_v44 = vpop.permute.xlu0 %3306  ;;  %v3419_v11 = vld [vmem:[#allocation5 + $0xb8] sm:$0xff] }
 0x778   : > { %v3329_v10 = vsel %vm722_vm6, %v3325_v22, %v3327_v50  ;;  %3335 = vst.msk [vmem:[#allocation5 + $0x88] sm:$0xff] %vm6583_vm12, %v3327_v50  ;;  %4622 = vmatprep.subr.mxu1 %v3419_v11  ;;  %v3416_v12 = vld [vmem:[#allocation5 + $0xa0] sm:$0xff]  ;;  %vm6591_vm12 = vcmask 588800  }
 0x779   : > { %3315 = vst.msk [vmem:[#allocation5 + $0x70] sm:$0xff] %vm6584_vm11, %v3307_v44  ;;  %4623 = vmatpush3.msra.mxu1 %v3419_v11  ;;  %3463 = vmatprep.subr.mxu0 %v3329_v10  ;;  %vm6592_vm11 = vmmov %vm6591_vm12 }
 0x77a   : > { %4624 = vmatprep.subr.mxu1 %v3416_v12  ;;  %3464 = vmatpush1.msra.mxu0 %v3328_v25 }
 0x77b   : > { %v3305_v17 = vpop.permute.xlu1 %3304  ;;  %4625 = vmatpush3.msra.mxu1 %v3416_v12  ;;  %v3285_v58 = vpop.permute.xlu0 %3284 }
 0x77c   : > { %v3308_v8 = vsel %vm688_vm3, %v3303_v39, %v3305_v17  ;;  %v3309_v48 = vsel %vm688_vm3, %v3305_v17, %v3307_v44  ;;  %v3288_v59 = vsel %vm6585_vm9, %v3283_v6, %v3285_v58  ;;  %vm6593_vm9 = vmmov %vm6592_vm11 }
 0x77d   : > { %3465 = vmatprep.subr.mxu0 %v3309_v48 }
 0x77e   : > { %3466 = vmatpush1.msra.mxu0 %v3308_v8 }
 0x77f   : > { %v3287_v13 = vpop.permute.xlu1 %3286  ;;  %v3267_v9 = vpop.permute.xlu0 %3266  ;;  %v3413_v55 = vld [vmem:[#allocation5 + $0x88] sm:$0xff] }
 0x780   : > { %v3289_v63 = vsel %vm6586_vm7, %v3285_v58, %v3287_v13  ;;  %3295 = vst.msk [vmem:[#allocation5 + $0x58] sm:$0xff] %vm6578_vm0, %v3287_v13  ;;  %4626 = vmatprep.subr.mxu1 %v3413_v55  ;;  %v3410_v21 = vld [vmem:[#allocation5 + $0x70] sm:$0xff] }
 0x781   : > { %3275 = vst.msk [vmem:[#allocation5 + $0x40] sm:$0xff] %vm6587_vm14, %v3267_v9  ;;  %4627 = vmatpush3.msra.mxu1 %v3413_v55  ;;  %3467 = vmatprep.subr.mxu0 %v3289_v63  ;;  %v4045_v63 = vld [vmem:[%s6396_s11] sm:$0x3] }
 0x782   : > { %4628 = vmatprep.subr.mxu1 %v3410_v21  ;;  %3468 = vmatpush1.msra.mxu0 %v3288_v59 }
 0x783   : > { %v3265_v40 = vpop.permute.xlu1 %3264  ;;  %4629 = vmatpush3.msra.mxu1 %v3410_v21  ;;  %v3245_v61 = vpop.permute.xlu0 %3244  ;;  %v4254_v21 = vld [vmem:[%s6398_s13] sm:$0x3] }
 0x784   : > { %v3268_v0 = vsel %vm552_vm2, %v6041_v35, %v3265_v40  ;;  %v3269_v33 = vsel %vm552_vm2, %v3265_v40, %v3267_v9  ;;  %v6196_v9 = vld.sshfl [vmem:[%s6395_s10] sm:$0x33 pattern:$0x76325410] }
 0x785   : > { %3469 = vmatprep.subr.mxu0 %v3269_v33  ;;  %v4059_v55 = vcombine.high %v6196_v9, %v6196_v9 }
 0x786   : > { %3470 = vmatpush1.msra.mxu0 %v3268_v0 }
 0x787   : > { %v3247_v2 = vpop.permute.xlu1 %3246  ;;  %v3243_v20 = vpop.permute.xlu0 %3242  ;;  %v3407_v15 = vld [vmem:[#allocation5 + $0x58] sm:$0xff] }
 0x788   : > { %v3249_v26 = vsel %vm6588_vm5, %v3245_v61, %v3247_v2  ;;  %3255 = vst.msk [vmem:[#allocation5 + $0x28] sm:$0xff] %vm6589_vm4, %v3247_v2  ;;  %v3248_v42 = vsel %vm6590_vm13, %v3243_v20, %v3245_v61  ;;  %4630 = vmatprep.subr.mxu1 %v3407_v15  ;;  %v3404_v27 = vld [vmem:[#allocation5 + $0x40] sm:$0xff]  ;;  %vm3650_vm4 = vcmask 1047704   ;;  %vm3653_vm13 = vcmask 711680  }
 0x789   : > { %4631 = vmatpush3.msra.mxu1 %v3407_v15  ;;  %3471 = vmatprep.subr.mxu0 %v3249_v26 }
 0x78a   : > { %4632 = vmatprep.subr.mxu1 %v3404_v27  ;;  %3472 = vmatpush1.msra.mxu0 %v3248_v42 }
 0x78b   : > { %4633 = vmatpush3.msra.mxu1 %v3404_v27  ;;  %3473 = vmatprep.subr.mxu0 %v5981_v36  ;;  %v4543_v36 = vld [vmem:[%s6386_s1 + $0x3] ss:$8 sm:$0x7] }
 0x78c   : > { %3474 = vmatpush1.msra.mxu0 %v5985_v31  ;;  %vm3597_vm7 = vcmp.ne.s32.totalorder %v4543_v36, 0 }
 0x78d   : > { %4539 = vmatmul.mubr.msk.f32.vlgmr.msra.gmra.mxu0 %vm6591_vm12, %v6028_v49  ;;  %v3600_v29 = vsel %vm3597_vm7, 1, %v4765_v47  ;;  %vm6597_vm12 = vcmask 154624  }
 0x78e   : > { %3513 = vmatprep.mubr.f32.mxu0 %v4764_v38  ;;  %v3604_v31 = vrot.slane %v3600_v29, %v5186_v54  ;;  %v3612_v23 = vrot.slane %v3600_v29, %v5177_v7  ;;  %v3608_v60 = vrot.slane %v3600_v29, %v5192_v18 }
 0x78f   : > { %v3401_v52 = vld [vmem:[#allocation5 + $0x28] sm:$0xff] }
 0x790   : > { %4634 = vmatprep.subr.mxu1 %v3401_v52  ;;  %vm6084_vm0 = vcmp.eq.s32.totalorder %v3604_v31, 1  ;;  %vm3615_vm14 = vcmp.eq.s32.totalorder %v3612_v23, 1  ;;  %vm3614_vm5 = vcmp.eq.s32.totalorder %v3608_v60, 1 }
 0x791   : > { %4635 = vmatpush3.msra.mxu1 %v3401_v52  ;;  %4540 = vmatmul.mubr.msk.f32.gmra.mxu0 %vm6592_vm11, %v3424_v4  ;;  %vm6598_vm11 = vmmov %vm6597_vm12 }
 0x792   : > { %4636 = vmatprep.subr.mxu1 %v3398_v51 }
 0x793   : > { %4637 = vmatpush3.msra.mxu1 %v3398_v51 }
 0x794   : > { %4639 = vmatmul.mubr.msk.f32.vlgmr.msra.gmra.mxu1 %vm6593_vm9, %v3424_v4  ;;  %4134 = vmatprep.subr.mxu1 %v4764_v38  ;;  %v3430_v28 = vpop.permute.xlu0 %3429  ;;  %v3435_v6 = vpop.permute.xlu1 %3434  ;;  %vm6599_vm9 = vmmov %vm6598_vm11 }
 0x795   : > { %vm6600_vm7 = vmmov %vm6599_vm9 }
 0x84d   : > { %v3509_v49 = vpop.f32.mrf.mxu0 }
 0x84e   : > { %v3510_v34 = vadd.f32 %v3509_v49, %v3430_v28 }
 0x84f   : > { %v3511_v32 = vpop.f32.mrf.mxu0 }
 0x850   : > { %v3616_v56 = vsel %vm6084_vm0, %v3510_v34, 0.0  ;;  %v3512_v14 = vadd.f32 %v3511_v32, %v3430_v28 }
 0x851   : > { %v3515_v39 = vpop.f32.mrf.mxu0  ;;  %3628 = vrot.lane.b32.xlu0 %v3616_v56, %s6596_s23 }
 0x852   : > { %v3516_v19 = vadd.f32 %v3515_v39, %v3435_v6  ;;  %v3617_v22 = vsel %vm3614_vm5, %v3512_v14, 0.0 }
 0x853   : > { %v3517_v35 = vpop.f32.mrf.mxu0 }
 0x854   : > { %v4640_v37 = vpop.f32.mrf.mxu1  ;;  %v3518_v45 = vadd.f32 %v3517_v35, %v3435_v6  ;;  %v3619_v3 = vsel %vm6084_vm0, %v3516_v19, 0.0  ;;  %vm6601_vm0 = vcmask 556032  }
 0x855   : > { %v3592_v24 = vadd.f32 %v4640_v37, %v3435_v6 }
 0x856   : > { %v3586_v1 = vpop.f32.mrf.mxu1  ;;  %v3620_v62 = vsel %vm3614_vm5, %v3518_v45, 0.0  ;;  %vm6603_vm5 = vcmask 130048  }
 0x857   : > { %v3621_v57 = vsel %vm3615_vm14, %v3592_v24, 0.0  ;;  %v3587_v16 = vadd.f32 %v3586_v1, %v3430_v28  ;;  %3636 = vrot.lane.b32.xlu0 %v3620_v62, %s6596_s23  ;;  %4546 = vmatprep.mubr.msk.f32.mxu1 %vm6603_vm5, %v4059_v55 }
 0x858   : > { %3638 = vrot.lane.b32.xlu1 %v3621_v57, %s6596_s23 }
 0x859   : > { %v3618_v53 = vsel %vm3615_vm14, %v3587_v16, 0.0  ;;  %vm6602_vm14 = vmmov %vm6601_vm0 }
 0x85b   : > { %3632 = vrot.lane.b32.xlu0 %v3618_v53, %s6596_s23 }
 0x85c   : > { %3634 = vrot.lane.b32.xlu1 %v3619_v3, %s6596_s23 }
 0x860   : > { %3630 = vrot.lane.b32.xlu1 %v3617_v22, %s6596_s23 }
 0x8c3   : > { %v3629_v46 = vpop.permute.xlu0 %3628 }
 0x8c4   : > { %3651 = vst.msk [vmem:[#allocation10] sm:$0xff] %vm3650_vm4, %v3629_v46 }
 0x8c9   : > { %v3637_v41 = vpop.permute.xlu0 %3636 }
 0x8ca   : > { %v3639_v25 = vpop.permute.xlu1 %3638 }
 0x8cb   : > { %v6100_v50 = vld [vmem:[#allocation10] sm:$0xff]  ;;  %v3643_v44 = vsel %vm6597_vm12, %v3637_v41, %v3639_v25  ;;  %vm6606_vm12 = vmmov %vm6601_vm0 }
 0x8cc   : > { %3657 = vst.msk [vmem:[#allocation10 + $0x28] sm:$0xff] %vm3653_vm13, %v3643_v44  ;;  %3922 = vrot.lane.b32.xlu0 %v6100_v50, %s6515_s4 }
 0x8cd   : > { %v3633_v17 = vpop.permute.xlu0 %3632 }
 0x8ce   : > { %v3635_v11 = vpop.permute.xlu1 %3634 }
 0x8cf   : > { %3655 = vst.msk [vmem:[#allocation10 + $0x18] sm:$0xff] %vm3650_vm4, %v3635_v11  ;;  %v6107_v10 = vsel %vm6598_vm11, %v3635_v11, %v3637_v41  ;;  %vm6604_vm4 = vmmov %vm6603_vm5  ;;  %vm6611_vm5 = vcmask 900096  }
 0x8d0   : > { %3882 = vrot.lane.b32.xlu0 %v6100_v50, %s6517_s28  ;;  %4545 = vmatprep.mubr.msk.f32.mxu0 %vm6604_vm4, %v4059_v55  ;;  %vm6607_vm11 = vmmov %vm6601_vm0 }
 0x8d1   : > { %vm6612_vm4 = vmmov %vm6611_vm5 }
 0x8d2   : > { %v3631_v12 = vpop.permute.xlu1 %3630 }
 0x8d3   : > { %v3663_v58 = vld [vmem:[#allocation10 + $0x28] sm:$0xff]  ;;  %v6112_v8 = vsel %vm6599_vm9, %v3629_v46, %v3631_v12  ;;  %v3641_v48 = vsel %vm6600_vm7, %v3631_v12, %v3633_v17  ;;  %vm6608_vm9 = vmmov %vm6601_vm0 }
 0x8d4   : > { %3669 = vst.msk [vmem:[#allocation6 + $0x28] sm:$0xff] %vm6601_vm0, %v3663_v58  ;;  %3842 = vrot.lane.b32.xlu0 %v6100_v50, %s6516_s5  ;;  %vm6609_vm7 = vmmov %vm6601_vm0 }
 0x8d5   : > { %3654 = vst.msk [vmem:[#allocation10 + $0x10] sm:$0xff] %vm3653_vm13, %v3641_v48  ;;  %vm6605_vm13 = vmmov %vm6601_vm0 }
 0x8d6   : > { %v6119_v59 = vld [vmem:[#allocation10 + $0x18] sm:$0xff] }
 0x8d8   : > { %3802 = vrot.lane.b32.xlu0 %v6100_v50, %s6508_s27 }
 0x8dc   : > { %v3660_v13 = vld [vmem:[#allocation10 + $0x10] sm:$0xff]  ;;  %3762 = vrot.lane.b32.xlu0 %v6100_v50, %s6518_s29 }
 0x8dd   : > { %3666 = vst.msk [vmem:[#allocation6 + $0x10] sm:$0xff] %vm6602_vm14, %v3660_v13  ;;  %3926 = vrot.lane.b32.xlu1 %v3660_v13, %s6515_s4  ;;  %vm6610_vm14 = vmmov %vm6601_vm0 }
 0x8e0   : > { %3722 = vrot.lane.b32.xlu0 %v6100_v50, %s6511_s0 }
 0x8e1   : > { %3886 = vrot.lane.b32.xlu1 %v3660_v13, %s6517_s28 }
 0x8e4   : > { %3682 = vrot.lane.b32.xlu0 %v6100_v50, %s6520_s15 }
 0x8e5   : > { %3846 = vrot.lane.b32.xlu1 %v3660_v13, %s6516_s5 }
 0x8e8   : > { %3924 = vrot.lane.b32.xlu0 %v6112_v8, %s6515_s4 }
 0x8e9   : > { %3806 = vrot.lane.b32.xlu1 %v3660_v13, %s6508_s27 }
 0x8ec   : > { %3884 = vrot.lane.b32.xlu0 %v6112_v8, %s6517_s28 }
 0x8ed   : > { %3766 = vrot.lane.b32.xlu1 %v3660_v13, %s6518_s29 }
 0x8f0   : > { %3844 = vrot.lane.b32.xlu0 %v6112_v8, %s6516_s5 }
 0x8f1   : > { %3726 = vrot.lane.b32.xlu1 %v3660_v13, %s6511_s0 }
 0x8f4   : > { %3804 = vrot.lane.b32.xlu0 %v6112_v8, %s6508_s27 }
 0x8f5   : > { %3686 = vrot.lane.b32.xlu1 %v3660_v13, %s6520_s15 }
 0x8f8   : > { %3764 = vrot.lane.b32.xlu0 %v6112_v8, %s6518_s29 }
 0x8f9   : > { %3928 = vrot.lane.b32.xlu1 %v6119_v59, %s6515_s4 }
 0x8fc   : > { %3724 = vrot.lane.b32.xlu0 %v6112_v8, %s6511_s0 }
 0x8fd   : > { %3888 = vrot.lane.b32.xlu1 %v6119_v59, %s6517_s28 }
 0x900   : > { %3684 = vrot.lane.b32.xlu0 %v6112_v8, %s6520_s15 }
 0x901   : > { %3848 = vrot.lane.b32.xlu1 %v6119_v59, %s6516_s5 }
 0x904   : > { %3932 = vrot.lane.b32.xlu0 %v3663_v58, %s6515_s4 }
 0x905   : > { %3808 = vrot.lane.b32.xlu1 %v6119_v59, %s6508_s27 }
 0x908   : > { %3892 = vrot.lane.b32.xlu0 %v3663_v58, %s6517_s28 }
 0x909   : > { %3768 = vrot.lane.b32.xlu1 %v6119_v59, %s6518_s29 }
 0x90c   : > { %3852 = vrot.lane.b32.xlu0 %v3663_v58, %s6516_s5 }
 0x90d   : > { %3728 = vrot.lane.b32.xlu1 %v6119_v59, %s6511_s0 }
 0x910   : > { %3812 = vrot.lane.b32.xlu0 %v3663_v58, %s6508_s27 }
 0x911   : > { %3688 = vrot.lane.b32.xlu1 %v6119_v59, %s6520_s15 }
 0x914   : > { %3772 = vrot.lane.b32.xlu0 %v3663_v58, %s6518_s29 }
 0x915   : > { %3930 = vrot.lane.b32.xlu1 %v6107_v10, %s6515_s4 }
 0x918   : > { %3732 = vrot.lane.b32.xlu0 %v3663_v58, %s6511_s0 }
 0x919   : > { %3890 = vrot.lane.b32.xlu1 %v6107_v10, %s6517_s28 }
 0x91c   : > { %3692 = vrot.lane.b32.xlu0 %v3663_v58, %s6520_s15 }
 0x91d   : > { %3850 = vrot.lane.b32.xlu1 %v6107_v10, %s6516_s5 }
 0x920   : > { %3964 = vrot.lane.b32.xlu0 %v6112_v8, %s6513_s3 }
 0x921   : > { %3810 = vrot.lane.b32.xlu1 %v6107_v10, %s6508_s27 }
 0x924   : > { %3972 = vrot.lane.b32.xlu0 %v3663_v58, %s6513_s3 }
 0x925   : > { %3770 = vrot.lane.b32.xlu1 %v6107_v10, %s6518_s29 }
 0x928   : > { %3962 = vrot.lane.b32.xlu0 %v6100_v50, %s6513_s3 }
 0x929   : > { %3730 = vrot.lane.b32.xlu1 %v6107_v10, %s6511_s0 }
 0x92d   : > { %3690 = vrot.lane.b32.xlu1 %v6107_v10, %s6520_s15 }
 0x931   : > { %3968 = vrot.lane.b32.xlu1 %v6119_v59, %s6513_s3 }
 0x935   : > { %3970 = vrot.lane.b32.xlu1 %v6107_v10, %s6513_s3 }
 0x939   : > { %3966 = vrot.lane.b32.xlu1 %v3660_v13, %s6513_s3 }
 0x93d   : > { %4048 = vperm.xlu1 %4685, %v4045_v63  }
 0x93e   : > { %v3923_v40 = vpop.permute.xlu0 %3922 }
 0x941   : > { %4257 = vperm.xlu1 %4685, %v4254_v21  }
 0x942   : > { %v3883_v61 = vpop.permute.xlu0 %3882 }
 0x946   : > { %v3843_v0 = vpop.permute.xlu0 %3842 }
 0x94a   : > { %v3803_v33 = vpop.permute.xlu0 %3802 }
 0x94e   : > { %v3763_v20 = vpop.permute.xlu0 %3762 }
 0x94f   : > { %v3927_v2 = vpop.permute.xlu1 %3926 }
 0x950   : > { %3946 = vst.msk [vmem:[#allocation6 + $0x160] sm:$0xff] %vm6605_vm13, %v3927_v2  ;;  %vm6613_vm13 = vcmask 1039360  }
 0x952   : > { %v3723_v26 = vpop.permute.xlu0 %3722 }
 0x953   : > { %v3887_v15 = vpop.permute.xlu1 %3886 }
 0x954   : > { %3906 = vst.msk [vmem:[#allocation6 + $0x130] sm:$0xff] %vm6606_vm12, %v3887_v15  ;;  %vm6614_vm12 = vmmov %vm6613_vm13 }
 0x956   : > { %v3683_v27 = vpop.permute.xlu0 %3682 }
 0x957   : > { %v3847_v42 = vpop.permute.xlu1 %3846  ;;  %v4034_v17 = vld [vmem:[#allocation6 + $0x160] sm:$0xff] }
 0x958   : > { %3866 = vst.msk [vmem:[#allocation6 + $0x100] sm:$0xff] %vm6607_vm11, %v3847_v42  ;;  %vm6615_vm11 = vmmov %vm6601_vm0 }
 0x95a   : > { %v3925_v52 = vpop.permute.xlu0 %3924 }
 0x95b   : > { %v3807_v4 = vpop.permute.xlu1 %3806  ;;  %v6216_v51 = vsel %vm856_vm8, %v3923_v40, %v3925_v52  ;;  %v6219_v36 = vsel %vm856_vm8, %v3925_v52, %v3927_v2  ;;  %v4028_v55 = vld [vmem:[#allocation6 + $0x130] sm:$0xff] }
 0x95c   : > { %3826 = vst.msk [vmem:[#allocation6 + $0xd0] sm:$0xff] %vm6608_vm9, %v3807_v4  ;;  %vm6616_vm9 = vmmov %vm6601_vm0 }
 0x95e   : > { %v3885_v31 = vpop.permute.xlu0 %3884 }
 0x95f   : > { %v3767_v29 = vpop.permute.xlu1 %3766  ;;  %v6223_v28 = vsel %vm822_vm10, %v3883_v61, %v3885_v31  ;;  %v6226_v49 = vsel %vm822_vm10, %v3885_v31, %v3887_v15 }
 0x960   : > { %3786 = vst.msk [vmem:[#allocation6 + $0xa0] sm:$0xff] %vm6609_vm7, %v3767_v29  ;;  %vm6617_vm7 = vmmov %vm6601_vm0 }
 0x962   : > { %v3845_v34 = vpop.permute.xlu0 %3844 }
 0x963   : > { %v3727_v30 = vpop.permute.xlu1 %3726  ;;  %v6230_v32 = vsel %vm722_vm6, %v3843_v0, %v3845_v34  ;;  %v6233_v23 = vsel %vm722_vm6, %v3845_v34, %v3847_v42 }
 0x964   : > { %3746 = vst.msk [vmem:[#allocation6 + $0x70] sm:$0xff] %vm6601_vm0, %v3727_v30 }
 0x966   : > { %v3805_v60 = vpop.permute.xlu0 %3804 }
 0x967   : > { %v3687_v56 = vpop.permute.xlu1 %3686  ;;  %v6237_v39 = vsel %vm688_vm3, %v3803_v33, %v3805_v60  ;;  %v6240_v6 = vsel %vm688_vm3, %v3805_v60, %v3807_v4  ;;  %v4022_v33 = vld [vmem:[#allocation6 + $0x100] sm:$0xff] }
 0x968   : > { %3706 = vst.msk [vmem:[#allocation6 + $0x40] sm:$0xff] %vm6610_vm14, %v3687_v56  ;;  %vm6618_vm14 = vmmov %vm6601_vm0 }
 0x96a   : > { %v3765_v37 = vpop.permute.xlu0 %3764 }
 0x96b   : > { %v3929_v35 = vpop.permute.xlu1 %3928  ;;  %v6243_v45 = vsel %vm6611_vm5, %v3763_v20, %v3765_v37  ;;  %v6246_v24 = vsel %vm6612_vm4, %v3765_v37, %v3767_v29  ;;  %vm6623_vm5 = vmmov %vm6601_vm0 }
 0x96e   : > { %v3725_v62 = vpop.permute.xlu0 %3724 }
 0x96f   : > { %v3889_v1 = vpop.permute.xlu1 %3888  ;;  %v6249_v57 = vsel %vm552_vm2, %v3723_v26, %v3725_v62  ;;  %v6252_v16 = vsel %vm552_vm2, %v3725_v62, %v3727_v30 }
 0x972   : > { %v3685_v53 = vpop.permute.xlu0 %3684 }
 0x973   : > { %v3849_v19 = vpop.permute.xlu1 %3848  ;;  %v6255_v14 = vsel %vm6613_vm13, %v3683_v27, %v3685_v53  ;;  %v6258_v3 = vsel %vm6614_vm12, %v3685_v53, %v3687_v56  ;;  %v4016_v27 = vld [vmem:[#allocation6 + $0xd0] sm:$0xff]  ;;  %v3995_v53 = vld [vmem:[#allocation6 + $0x28] sm:$0xff]  ;;  %vm6626_vm13 = vmmov %vm6601_vm0 }
 0x976   : > { %v3933_v46 = vpop.permute.xlu0 %3932 }
 0x977   : > { %v6260_v22 = vpop.permute.xlu1 %3808  ;;  %3949 = vst.msk [vmem:[#allocation6 + $0x178] sm:$0xff] %vm6615_vm11, %v3933_v46 }
 0x97a   : > { %v3893_v25 = vpop.permute.xlu0 %3892 }
 0x97b   : > { %v6263_v41 = vpop.permute.xlu1 %3768  ;;  %3909 = vst.msk [vmem:[#allocation6 + $0x148] sm:$0xff] %vm6616_vm9, %v3893_v25 }
 0x97e   : > { %v3853_v11 = vpop.permute.xlu0 %3852  ;;  %v4037_v12 = vld [vmem:[#allocation6 + $0x178] sm:$0xff] }
 0x97f   : > { %v6266_v44 = vpop.permute.xlu1 %3728  ;;  %3869 = vst.msk [vmem:[#allocation6 + $0x118] sm:$0xff] %vm6617_vm7, %v3853_v11  ;;  %4135 = vmatpush1.msra.mxu1 %v4037_v12 }
 0x980   : > { %4136 = vmatprep.subr.mxu1 %v4764_v38 }
 0x981   : > { %4137 = vmatpush1.msra.mxu1 %v4034_v17 }
 0x982   : > { %4138 = vmatprep.subr.mxu1 %v4764_v38  ;;  %v3813_v48 = vpop.permute.xlu0 %3812  ;;  %v4031_v13 = vld [vmem:[#allocation6 + $0x148] sm:$0xff] }
 0x983   : > { %v6270_v58 = vpop.permute.xlu1 %3688  ;;  %3829 = vst.msk [vmem:[#allocation6 + $0xe8] sm:$0xff] %vm6601_vm0, %v3813_v48  ;;  %4139 = vmatpush1.msra.mxu1 %v4031_v13 }
 0x984   : > { %4140 = vmatprep.subr.mxu1 %v4764_v38 }
 0x985   : > { %4141 = vmatpush1.msra.mxu1 %v4028_v55 }
 0x986   : > { %4142 = vmatprep.subr.mxu1 %v4764_v38  ;;  %v3773_v21 = vpop.permute.xlu0 %3772  ;;  %v4025_v40 = vld [vmem:[#allocation6 + $0x118] sm:$0xff] }
 0x987   : > { %v3931_v63 = vpop.permute.xlu1 %3930  ;;  %3789 = vst.msk [vmem:[#allocation6 + $0xb8] sm:$0xff] %vm6618_vm14, %v3773_v21  ;;  %4143 = vmatpush1.msra.mxu1 %v4025_v40  ;;  %vm4277_vm14 = vcmask 15360  }
 0x988   : > { %v3936_v61 = vsel %vm856_vm8, %v3929_v35, %v3931_v63  ;;  %v3937_v0 = vsel %vm856_vm8, %v3931_v63, %v3933_v46  ;;  %4144 = vmatprep.subr.mxu1 %v4764_v38  ;;  %vm6619_vm8 = vmmov %vm6601_vm0 }
 0x989   : > { %4063 = vmatprep.subr.mxu0 %v3937_v0  ;;  %4145 = vmatpush1.msra.mxu1 %v4022_v33 }
 0x98a   : > { %4064 = vmatpush1.msra.mxu0 %v3936_v61  ;;  %4146 = vmatprep.subr.mxu1 %v4764_v38  ;;  %v6281_v20 = vpop.permute.xlu0 %3732  ;;  %v4019_v15 = vld [vmem:[#allocation6 + $0xe8] sm:$0xff] }
 0x98b   : > { %v3891_v2 = vpop.permute.xlu1 %3890  ;;  %4065 = vmatprep.subr.mxu0 %v6219_v36  ;;  %3749 = vst.msk [vmem:[#allocation6 + $0x88] sm:$0xff] %vm6619_vm8, %v6281_v20  ;;  %4147 = vmatpush1.msra.mxu1 %v4019_v15  ;;  %vm6629_vm8 = vcmask 1041408  }
 0x98c   : > { %v3896_v26 = vsel %vm822_vm10, %v3889_v1, %v3891_v2  ;;  %v3897_v42 = vsel %vm822_vm10, %v3891_v2, %v3893_v25  ;;  %4066 = vmatpush1.msra.mxu0 %v6216_v51  ;;  %4148 = vmatprep.subr.mxu1 %v4764_v38  ;;  %vm6620_vm10 = vmmov %vm6601_vm0  ;;  %v4010_v51 = vld [vmem:[#allocation6 + $0xa0] sm:$0xff]  ;;  %vm6628_vm0 = vcmask 154624  }
 0x98d   : > { %4067 = vmatprep.subr.mxu0 %v3897_v42  ;;  %4149 = vmatpush1.msra.mxu1 %v4016_v27 }
 0x98e   : > { %4068 = vmatpush1.msra.mxu0 %v3896_v26  ;;  %4150 = vmatprep.subr.mxu1 %v4764_v38  ;;  %v6291_v52 = vpop.permute.xlu0 %3692  ;;  %v4013_v36 = vld [vmem:[#allocation6 + $0xb8] sm:$0xff] }
 0x98f   : > { %v3851_v4 = vpop.permute.xlu1 %3850  ;;  %4069 = vmatprep.subr.mxu0 %v6226_v49  ;;  %3709 = vst.msk [vmem:[#allocation6 + $0x58] sm:$0xff] %vm6620_vm10, %v6291_v52  ;;  %4151 = vmatpush1.msra.mxu1 %v4013_v36  ;;  %v4253_v36 = vld [vmem:[%s6397_s12] sm:$0x3]  ;;  %vm6630_vm10 = vmmov %vm6629_vm8 }
 0x990   : > { %v3856_v29 = vsel %vm722_vm6, %v3849_v19, %v3851_v4  ;;  %v3857_v31 = vsel %vm722_vm6, %v3851_v4, %v3853_v11  ;;  %4070 = vmatpush1.msra.mxu0 %v6223_v28  ;;  %4152 = vmatprep.subr.mxu1 %v4764_v38  ;;  %v4004_v28 = vld [vmem:[#allocation6 + $0x70] sm:$0xff]  ;;  %vm6621_vm6 = vmmov %vm6612_vm4 }
 0x991   : > { %4071 = vmatprep.subr.mxu0 %v3857_v31  ;;  %4153 = vmatpush1.msra.mxu1 %v4010_v51 }
 0x992   : > { %4072 = vmatpush1.msra.mxu0 %v3856_v29  ;;  %4154 = vmatprep.subr.mxu1 %v4764_v38  ;;  %v6301_v49 = vpop.permute.xlu0 %3964  ;;  %v4007_v34 = vld [vmem:[#allocation6 + $0x88] sm:$0xff] }
 0x993   : > { %v3811_v30 = vpop.permute.xlu1 %3810  ;;  %4073 = vmatprep.subr.mxu0 %v6233_v23  ;;  %4155 = vmatpush1.msra.mxu1 %v4007_v34 }
 0x994   : > { %v3816_v56 = vsel %vm688_vm3, %v6260_v22, %v3811_v30  ;;  %v3817_v60 = vsel %vm688_vm3, %v3811_v30, %v3813_v48  ;;  %4074 = vmatpush1.msra.mxu0 %v6230_v32  ;;  %4156 = vmatprep.subr.mxu1 %v4764_v38  ;;  %vm6622_vm3 = vmmov %vm6612_vm4  ;;  %v3998_v32 = vld [vmem:[#allocation6 + $0x40] sm:$0xff] }
 0x995   : > { %4075 = vmatprep.subr.mxu0 %v3817_v60  ;;  %4157 = vmatpush1.msra.mxu1 %v4004_v28 }
 0x996   : > { %4076 = vmatpush1.msra.mxu0 %v3816_v56  ;;  %4158 = vmatprep.subr.mxu1 %v4764_v38  ;;  %v3973_v37 = vpop.permute.xlu0 %3972  ;;  %v4001_v1 = vld [vmem:[#allocation6 + $0x58] sm:$0xff] }
 0x997   : > { %v3771_v35 = vpop.permute.xlu1 %3770  ;;  %4077 = vmatprep.subr.mxu0 %v6240_v6  ;;  %3989 = vst.msk [vmem:[#allocation6 + $0x1a8] sm:$0xff] %vm6623_vm5, %v3973_v37  ;;  %4159 = vmatpush1.msra.mxu1 %v4001_v1 }
 0x998   : > { %v3776_v23 = vsel %vm6621_vm6, %v6263_v41, %v3771_v35  ;;  %v3777_v62 = vsel %vm6622_vm3, %v3771_v35, %v3773_v21  ;;  %4078 = vmatpush1.msra.mxu0 %v6237_v39  ;;  %4160 = vmatprep.subr.mxu1 %v4764_v38  ;;  %v3992_v41 = vld [vmem:[#allocation6 + $0x10] sm:$0xff]  ;;  %vm6631_vm6 = vmmov %vm6629_vm8  ;;  %vm6633_vm3 = vcmask 1043458  }
 0x999   : > { %4079 = vmatprep.subr.mxu0 %v3777_v62  ;;  %4161 = vmatpush1.msra.mxu1 %v3998_v32 }
 0x99a   : > { %4080 = vmatpush1.msra.mxu0 %v3776_v23  ;;  %4162 = vmatprep.subr.mxu1 %v4764_v38  ;;  %v3963_v6 = vpop.permute.xlu0 %3962 }
 0x99b   : > { %v3731_v19 = vpop.permute.xlu1 %3730  ;;  %4081 = vmatprep.subr.mxu0 %v6246_v24  ;;  %v3974_v39 = vsel %vm889_vm15, %v3963_v6, %v6301_v49  ;;  %4163 = vmatpush1.msra.mxu1 %v3995_v53 }
 0x99c   : > { %v3736_v22 = vsel %vm552_vm2, %v6266_v44, %v3731_v19  ;;  %v3737_v46 = vsel %vm552_vm2, %v3731_v19, %v6281_v20  ;;  %4082 = vmatpush1.msra.mxu0 %v6243_v45  ;;  %4164 = vmatprep.subr.mxu1 %v4764_v38  ;;  %vm6624_vm2 = vmmov %vm6614_vm12  ;;  %vm6627_vm12 = vmmov 0  }
 0x99d   : > { %4083 = vmatprep.subr.mxu0 %v3737_v46  ;;  %4165 = vmatpush1.msra.mxu1 %v3992_v41  ;;  %vm6625_vm4 = vmmov %vm6624_vm2 }
 0x99e   : > { %4084 = vmatpush1.msra.mxu0 %v3736_v22  ;;  %4194 = vmatprep.subr.mxu1 %v4764_v38  ;;  %v4043_v24 = vld [vmem:[#allocation6 + $0x1a8] sm:$0xff] }
 0x99f   : > { %v3691_v25 = vpop.permute.xlu1 %3690  ;;  %4085 = vmatprep.subr.mxu0 %v6252_v16  ;;  %4195 = vmatpush2.msra.mxu1 %v4043_v24 }
 0x9a0   : > { %v3696_v44 = vsel %vm6624_vm2, %v6270_v58, %v3691_v25  ;;  %v3697_v11 = vsel %vm6625_vm4, %v3691_v25, %v6291_v52  ;;  %4086 = vmatpush1.msra.mxu0 %v6249_v57  ;;  %4196 = vmatprep.subr.mxu1 %v4764_v38  ;;  %vm6634_vm2 = vcmask 553988  }
 0x9a1   : > { %4087 = vmatprep.subr.mxu0 %v3697_v11 }
 0x9a2   : > { %4088 = vmatpush1.msra.mxu0 %v3696_v44 }
 0x9a3   : > { %v3969_v45 = vpop.permute.xlu1 %3968  ;;  %4089 = vmatprep.subr.mxu0 %v6258_v3 }
 0x9a4   : > { %4090 = vmatpush1.msra.mxu0 %v6255_v14 }
 0x9a5   : > { %4091 = vmatprep.subr.mxu0 %v6107_v10 }
 0x9a6   : > { %4092 = vmatpush1.msra.mxu0 %v6119_v59 }
 0x9a7   : > { %v3971_v16 = vpop.permute.xlu1 %3970  ;;  %4093 = vmatprep.subr.mxu0 %v6112_v8 }
 0x9a8   : > { %v3976_v12 = vsel %vm889_vm15, %v3969_v45, %v3971_v16  ;;  %v3977_v57 = vsel %vm889_vm15, %v3971_v16, %v3973_v37  ;;  %4094 = vmatpush1.msra.mxu0 %v6100_v50  ;;  %v4547_v50 = vld [vmem:[%s6386_s1 + $0x4] ss:$8 sm:$0x7] }
 0x9a9   : > { %4123 = vmatprep.subr.mxu0 %v3977_v57 }
 0x9aa   : > { %4124 = vmatpush2.msra.mxu0 %v3976_v12 }
 0x9ab   : > { %v3967_v17 = vpop.permute.xlu1 %3966 }
 0x9ac   : > { %v3975_v3 = vsel %vm889_vm15, %v6301_v49, %v3967_v17  ;;  %3986 = vst.msk [vmem:[#allocation6 + $0x190] sm:$0xff] %vm6626_vm13, %v3967_v17  ;;  %vm4206_vm15 = vcmp.ne.s32.totalorder %v4547_v50, 0 }
 0x9ad   : > { %4125 = vmatprep.subr.mxu0 %v3975_v3  ;;  %v4208_v8 = vsel %vm4206_vm15, 1, %v4765_v47 }
 0x9ae   : > { %4126 = vmatpush2.msra.mxu0 %v3974_v39  ;;  %v4212_v59 = vrot.slane %v4208_v8, %v5186_v54  ;;  %v4216_v14 = vrot.slane %v4208_v8, %v5192_v18 }
 0x9af   : > { %4128 = vmatmul.mubr.f32.vlgmr.msra.gmra.mxu0 %v6196_v9 }
 0x9b0   : > { %4351 = vmatprep.mubr.f32.mxu0 %v4764_v38  ;;  %vm4221_vm11 = vcmp.eq.s32.totalorder %v4212_v59, 1  ;;  %vm4222_vm9 = vcmp.eq.s32.totalorder %v4216_v14, 1 }
 0x9b3   : > { %v4040_v10 = vld [vmem:[#allocation6 + $0x190] sm:$0xff] }
 0x9b4   : > { %4197 = vmatpush2.msra.mxu1 %v4040_v10 }
 0x9b5   : > { %4199 = vmatmul.mubr.f32.vlgmr.msra.gmra.mxu1 %v6196_v9  ;;  %4641 = vmatprep.subr.mxu1 %v4764_v38  ;;  %v4220_v9 = vrot.slane %v4208_v8, %v5177_v7 }
 0x9b6   : > { %4643 = vmatprep.mubr.msk.f32.mxu1 %vm6627_vm12, %v4764_v38 }
 0x9b7   : > { %vm4223_vm7 = vcmp.eq.s32.totalorder %v4220_v9, 1 }
 0x9b8   : > { %v4049_v58 = vpop.permute.xlu1 %4048 }
 0x9bc   : > { %v4258_v43 = vpop.permute.xlu1 %4257 }
 0xa6f   : > { %v4129_v48 = vpop.f32.mrf.mxu0 }
 0xa70   : > { %v4130_v13 = vadd.f32 %v4129_v48, %v4049_v58 }
 0xa71   : > { %v4131_v55 = vpop.f32.mrf.mxu0 }
 0xa72   : > { %v4132_v38 = vadd.f32 %v4131_v55, %v4049_v58  ;;  %v4224_v63 = vsel %vm4221_vm11, %v4130_v13, 0.0 }
 0xa74   : > { %v4225_v21 = vsel %vm4222_vm9, %v4132_v38, 0.0 }
 0xa75   : > { %v4200_v40 = vpop.f32.mrf.mxu1  ;;  %v4230_v61 = vcombine.low %v4224_v63, %v4225_v21 }
 0xa76   : > { %v4201_v0 = vadd.f32 %v4200_v40, %v4049_v58 }
 0xa77   : > { %v4202_v47 = vpop.f32.mrf.mxu1  ;;  %v4237_v18 = vrot.slane %v4230_v61, %v4863_v5 }
 0xa78   : > { %v4226_v33 = vsel %vm4223_vm7, %v4201_v0, 0.0 }
 0xa79   : > { %v4244_v54 = vrot.slane %v4226_v33, %v4863_v5 }
 0xa7b   : > { %v4245_v2 = vcombine.low %v4237_v18, %v4244_v54 }
 0xa7d   : > { %4246 = vrot.lane.b32.xlu0 %v4245_v2, %s6596_s23 }
 0xaef   : > { %v4247_v7 = vpop.permute.xlu0 %4246 }
 0xaf0   : > { %v4248_v20 = vrot.slane %v4247_v7, 6 }
 0xaf2   : > { %v4249_v15 = vsel %vm6628_vm0, %v4248_v20, %v4247_v7 }
 0xaf3   : > { %4251 = vst.msk [vmem:[#allocation11] sm:$0x3f] %vm5445_vm1, %v4249_v15  ;;  %vm6632_vm1 = vmmov %vm6631_vm6 }
 0xaf4   : > { %vm4454_vm5 = vmor %vm6633_vm3, %vm6632_vm1 }
 0xaf5   : > { %vm4455_vm4 = vmor %vm6634_vm2, %vm4454_vm5 }
 0xafa   : > { %v4252_v26 = vld [vmem:[#allocation11] sm:$0x3f] }
 0xafb   : > { %v4261_v42 = vcombine.high %v4252_v26, %v4252_v26  ;;  %v4268_v27 = vrot.slane %v4252_v26, %v4863_v5 }
 0xafd   : > { %v4276_v4 = vcombine.high %v4268_v27, %v4268_v27  ;;  %v4275_v52 = vrot.slane %v4261_v42, %v4863_v5 }
 0xaff   : > { %4548 = vmatprep.subr.msk.mxu0 %vm6629_vm8, %v4276_v4  ;;  %4642 = vmatpush3.msk.msra.mxu1 %vm6630_vm10, %v4275_v52 }
 0xb00   : > { %4549 = vmatpush1.msk.msra.mxu0 %vm6631_vm6, %v4268_v27  ;;  %4644 = vmatmul.mubr.msk.f32.vlgmr.msra.gmra.mxu1 %vm4277_vm14, %v4253_v36 }
 0xb01   : > { %4550 = vmatmul.mubr.msk.f32.vlgmr.msra.gmra.mxu0 %vm4277_vm14, %v4253_v36 }
 0xbc0   : > { %v4424_v29 = vpop.f32.mrf.mxu1 }
 0xbc1   : > { %v4425_v31 = vadd.f32 %v4424_v29, %v4258_v43  ;;  %v4353_v51 = vpop.f32.mrf.mxu0 }
 0xbc2   : > { %v4354_v30 = vadd.f32 %v4353_v51, %v4258_v43  ;;  %v4645_v49 = vpop.f32.mrf.mxu1 }
 0xbc3   : > { %v4355_v34 = vpop.f32.mrf.mxu0  ;;  %v4430_v56 = vmax.f32 %v4425_v31, 0.5 }
 0xbc4   : > { %v4428_v60 = vmax.f32 %v4354_v30, 0.5  ;;  %v4356_v28 = vadd.f32 %v4355_v34, %v4258_v43 }
 0xbc5   : > { %v4433_v37 = vmin.f32 %v4430_v56, 1.0 }
 0xbc6   : > { %v4429_v35 = vmax.f32 %v4356_v28, 0.5  ;;  %v4431_v1 = vmin.f32 %v4428_v60, 1.0 }
 0xbc7   : > { %v4451_v32 = vrot.slane %v4433_v37, %v4863_v5 }
 0xbc8   : > { %v4432_v23 = vmin.f32 %v4429_v35, 1.0 }
 0xbca   : > { %v4437_v62 = vcombine.low %v4431_v1, %v4432_v23 }
 0xbcc   : > { %v4444_v19 = vrot.slane %v4437_v62, %v4863_v5 }
 0xbce   : > { %v4452_v6 = vcombine.low %v4444_v19, %v4451_v32 }
 0xbd0   : > { %4456 = vst.msk [vmem:[%s467_s26] sm:$0x3f] %vm4455_vm4, %v4452_v6 }
 0xbd1 PF: > { %s6636_s16 = sld [smem:[#allocation12_spill]] }
 0xbd7   : > { %s24_s29 = sadd.s32 1, %s6636_s16  }
 0xbd8   : > { %p21_p4 = scmp.ge.s32.totalorder %s24_s29, 4  }
 0xbda   :  { %23 = sbr.rel (!%p21_p4) target bundleno = 7 (0x7), region = 110 }

</bundles_post_ra>
